<compile_context>
chip_gen: v5e
topology: v5e:2x2
jax: 0.10.0
libtpu: 0.0.40
codegen_flags: <defaults>
</compile_context>

<pallas_src>
import functools

import jax
import jax.numpy as jnp
from jax.experimental import pallas as pl
from jax.experimental.pallas import tpu as pltpu


# ----------------------------------------------------------------------------
# Fully-fused 2-layer GAT kernel
# ----------------------------------------------------------------------------

def _fused_gat2_kernel(x_ref, adjb_ref,
                       w1_ref, attn1_ref, bias1_ref,
                       w2_ref, attn2_ref, bias2_ref,
                       o_ref, x1_ref, *, heads1):
    """Whole forward pass for all N nodes (single grid step).

    x_ref    : (N, F_in)        node features
    adjb_ref : (N, N)           additive mask: 0 where edge j->i, -1e30 otherwise
    w1_ref   : (F_in, H*C1)     layer-1 projection weight
    attn1_ref: (H*C1, 2H)       [a_src_blockdiag | a_dst_blockdiag] for layer 1
    bias1_ref: (1, H*C1)
    w2_ref   : (H*C1, C2)       layer-2 projection weight (heads=1)
    attn2_ref: (C2, 2)          [a_src | a_dst] for layer 2
    bias2_ref: (1, C2)
    o_ref    : (N, C2)          log_softmax output
    x1_ref   : (N, H*C1)        VMEM scratch: layer-1 activation (post bias+ELU)
    """
    hc1 = w1_ref.shape[1]
    c1 = hc1 // heads1

    adj_bias = adjb_ref[...]                                            # (N, N)

    # ------------------------- layer 1 (heads=8, concat) --------------------
    h1 = jnp.dot(x_ref[...], w1_ref[...],
                 preferred_element_type=jnp.float32)                    # (N, H*C1)
    scores1 = jnp.dot(h1, attn1_ref[...],
                      preferred_element_type=jnp.float32)               # (N, 2H)
    asrc1_t = scores1[:, :heads1].T                                     # (H, N) one transpose
    adst1 = scores1[:, heads1:]                                         # (N, H)

    for hh in range(heads1):                                            # static unroll
        # e[i, j] = LeakyReLU(a_dst.h_i + a_src.h_j, 0.2) + adj_bias[i, j]
        logits = adst1[:, hh:hh + 1] + asrc1_t[hh:hh + 1, :]            # (N, N)
        logits = jnp.where(logits >= 0, logits, 0.2 * logits)
        masked = logits + adj_bias
        m = jnp.max(masked, axis=-1, keepdims=True)
        p = jnp.exp(masked - m)                # masked entries underflow to exactly 0
        denom = jnp.maximum(jnp.sum(p, axis=-1, keepdims=True), 1e-30)
        attn = p * pl.reciprocal(denom, approx=True)                    # EUP slot
        agg = jnp.dot(attn, h1[:, hh * c1:(hh + 1) * c1],
                      preferred_element_type=jnp.float32)               # (N, C1)
        out_h = agg + bias1_ref[:, hh * c1:(hh + 1) * c1]
        # ELU; exp(min(x,0)) keeps the discarded branch finite.
        x1_ref[:, hh * c1:(hh + 1) * c1] = jnp.where(
            out_h > 0, out_h, jnp.exp(jnp.minimum(out_h, 0.0)) - 1.0)

    x1 = x1_ref[...]                                                    # (N, H*C1)

    # ---------------- layer 2 (heads=1, concat=False -> identity mean) ------
    h2 = jnp.dot(x1, w2_ref[...], preferred_element_type=jnp.float32)   # (N, C2)
    scores2 = jnp.dot(h2, attn2_ref[...],
                      preferred_element_type=jnp.float32)               # (N, 2)
    asrc2_t = scores2[:, 0:1].T                                         # (1, N)
    adst2 = scores2[:, 1:2]                                             # (N, 1)
    logits = adst2 + asrc2_t                                            # (N, N)
    logits = jnp.where(logits >= 0, logits, 0.2 * logits)
    masked = logits + adj_bias
    m = jnp.max(masked, axis=-1, keepdims=True)
    p = jnp.exp(masked - m)
    denom = jnp.maximum(jnp.sum(p, axis=-1, keepdims=True), 1e-30)
    attn = p * pl.reciprocal(denom, approx=True)
    out = jnp.dot(attn, h2, preferred_element_type=jnp.float32) + bias2_ref[...]

    # log_softmax over dim=1 (exact ops)
    mx = jnp.max(out, axis=-1, keepdims=True)
    y = out - mx
    lse = jnp.log(jnp.sum(jnp.exp(y), axis=-1, keepdims=True))
    o_ref[...] = y - lse


# ----------------------------------------------------------------------------
# Wrapper / forward pass glue
# ----------------------------------------------------------------------------

def _blockdiag_attn(a):
    """[H, C] attention vectors -> block-diagonal [H*C, H] matrix so that
    (h [N,H*C]) @ result gives per-head scores [N, H] in one matmul."""
    h, c = a.shape
    eye = jnp.eye(h, dtype=a.dtype)
    return (a[:, :, None] * eye[:, None, :]).reshape(h * c, h)


def gat_forward(x, adj, p1, p2):
    """x:[N,F_in], adj:[N,N] (adj[i,j]=1 iff edge j->i, self-loops included)."""
    n, fin = x.shape
    heads1, c1 = p1["a_src"].shape
    heads2, c2 = p2["a_src"].shape
    assert heads2 == 1, "output_heads != 1 not implemented (matches module default)"
    hc1 = heads1 * c1

    # additive mask: 0 where edge, -1e30 where not (replaces in-kernel select)
    adj_bias = jnp.where(adj > 0, 0.0, -1e30).astype(jnp.float32)

    # merged [a_src | a_dst] score matrices (one MXU pass per layer)
    attn1 = jnp.concatenate([_blockdiag_attn(p1["a_src"]),
                             _blockdiag_attn(p1["a_dst"])], axis=-1)    # (H*C1, 2H)
    attn2 = jnp.concatenate([_blockdiag_attn(p2["a_src"]),
                             _blockdiag_attn(p2["a_dst"])], axis=-1)    # (C2, 2)

    kernel = functools.partial(_fused_gat2_kernel, heads1=heads1)
    return pl.pallas_call(
        kernel,
        out_shape=jax.ShapeDtypeStruct((n, c2), jnp.float32),
        grid=(1,),
        in_specs=[
            pl.BlockSpec((n, fin), lambda i: (0, 0)),            # x
            pl.BlockSpec((n, n), lambda i: (0, 0)),              # adj additive bias
            pl.BlockSpec((fin, hc1), lambda i: (0, 0)),          # w1
            pl.BlockSpec((hc1, 2 * heads1), lambda i: (0, 0)),   # [a_src|a_dst] layer 1
            pl.BlockSpec((1, hc1), lambda i: (0, 0)),            # bias1
            pl.BlockSpec((hc1, c2), lambda i: (0, 0)),           # w2
            pl.BlockSpec((c2, 2), lambda i: (0, 0)),             # [a_src|a_dst] layer 2
            pl.BlockSpec((1, c2), lambda i: (0, 0)),             # bias2
        ],
        out_specs=pl.BlockSpec((n, c2), lambda i: (0, 0)),
        scratch_shapes=[pltpu.VMEM((n, hc1), jnp.float32)],      # layer-1 activation
        compiler_params=pltpu.CompilerParams(
            dimension_semantics=("arbitrary",)),
    )(x, adj_bias, p1["w"], attn1, p1["bias"][None, :],
      p2["w"], attn2, p2["bias"][None, :])


# ----------------------------------------------------------------------------
# Deterministic parameter init (glorot weights, zero bias — matches PyG reset)
# ----------------------------------------------------------------------------

def _glorot(key, shape):
    fan_in, fan_out = shape[-2], shape[-1]
    lim = jnp.sqrt(6.0 / (fan_in + fan_out))
    return jax.random.uniform(key, shape, jnp.float32, -lim, lim)


def init_gat_params(key, in_channels, hidden_channels, out_channels, heads):
    k1, k2, k3, k4, k5, k6 = jax.random.split(key, 6)
    p1 = {
        "w": _glorot(k1, (in_channels, heads * hidden_channels)),
        "a_src": _glorot(k2, (heads, hidden_channels)),
        "a_dst": _glorot(k3, (heads, hidden_channels)),
        "bias": jnp.zeros((heads * hidden_channels,), jnp.float32),
    }
    p2 = {
        "w": _glorot(k4, (heads * hidden_channels, out_channels)),
        "a_src": _glorot(k5, (1, out_channels)),
        "a_dst": _glorot(k6, (1, out_channels)),
        "bias": jnp.zeros((out_channels,), jnp.float32),
    }
    return p1, p2


# ----------------------------------------------------------------------------
# Main
# ----------------------------------------------------------------------------

if __name__ == "__main__":
    N = 64                # number of nodes
    in_channels = 16
    hidden_channels = 8
    out_channels = 4
    heads = 8
    dropout = 0.5         # eval mode -> unused

    key = jax.random.PRNGKey(0)
    kx, kadj, kparam = jax.random.split(key, 3)

    # node features
    x = jax.random.normal(kx, (N, in_channels), dtype=jnp.float32)

    # dense adjacency: adj[i, j] = 1 iff edge j -> i; add self-loops
    adj = (jax.random.uniform(kadj, (N, N)) < 0.15).astype(jnp.float32)
    adj = jnp.maximum(adj, jnp.eye(N, dtype=jnp.float32))

    p1, p2 = init_gat_params(kparam, in_channels, hidden_channels,
                             out_channels, heads)

    fwd = jax.jit(gat_forward)
    out = fwd(x, adj, p1, p2)
    jax.block_until_ready(out)

    assert out.shape == (N, out_channels)
    # rows of log_softmax must sum to ~1 in prob space
    assert jnp.allclose(jnp.sum(jnp.exp(out), axis=1), 1.0, atol=1e-4)

    print("KERNEL_OK")
</pallas_src>

<mosaic_0001>
module attributes {stable_mosaic.version = 11 : i64} {
  func.func @_fused_gat2_kernel(%arg0: i32, %arg1: memref<64x16xf32, #tpu.memory_space<vmem>>, %arg2: memref<64x64xf32, #tpu.memory_space<vmem>>, %arg3: memref<16x64xf32, #tpu.memory_space<vmem>>, %arg4: memref<64x16xf32, #tpu.memory_space<vmem>>, %arg5: memref<1x64xf32, #tpu.memory_space<vmem>>, %arg6: memref<64x4xf32, #tpu.memory_space<vmem>>, %arg7: memref<4x2xf32, #tpu.memory_space<vmem>>, %arg8: memref<1x4xf32, #tpu.memory_space<vmem>>, %arg9: memref<64x4xf32, #tpu.memory_space<vmem>>, %arg10: memref<64x64xf32, #tpu.memory_space<vmem>>) attributes {dimension_semantics = [#tpu.dimension_semantics<arbitrary>], iteration_bounds = array<i64: 1>, scalar_prefetch = 0 : i64, scratch_operands = 1 : i64, tpu.core_type = #tpu.core_type<tc>, window_params = [{pipeline_mode = #tpu.pipeline_mode<synchronous>, transform_indices = @transform_0, window_bounds = array<i64: 64, 16>}, {pipeline_mode = #tpu.pipeline_mode<synchronous>, transform_indices = @transform_1, window_bounds = array<i64: 64, 64>}, {pipeline_mode = #tpu.pipeline_mode<synchronous>, transform_indices = @transform_2, window_bounds = array<i64: 16, 64>}, {pipeline_mode = #tpu.pipeline_mode<synchronous>, transform_indices = @transform_3, window_bounds = array<i64: 64, 16>}, {pipeline_mode = #tpu.pipeline_mode<synchronous>, transform_indices = @transform_4, window_bounds = array<i64: 1, 64>}, {pipeline_mode = #tpu.pipeline_mode<synchronous>, transform_indices = @transform_5, window_bounds = array<i64: 64, 4>}, {pipeline_mode = #tpu.pipeline_mode<synchronous>, transform_indices = @transform_6, window_bounds = array<i64: 4, 2>}, {pipeline_mode = #tpu.pipeline_mode<synchronous>, transform_indices = @transform_7, window_bounds = array<i64: 1, 4>}, {pipeline_mode = #tpu.pipeline_mode<synchronous>, transform_indices = @transform_8, window_bounds = array<i64: 64, 4>}]} {
    %c0 = arith.constant 0 : index
    %c0_0 = arith.constant 0 : index
    %0 = vector.load %arg2[%c0, %c0_0] : memref<64x64xf32, #tpu.memory_space<vmem>>, vector<64x64xf32>
    %c0_1 = arith.constant 0 : index
    %c0_2 = arith.constant 0 : index
    %1 = vector.load %arg1[%c0_1, %c0_2] : memref<64x16xf32, #tpu.memory_space<vmem>>, vector<64x16xf32>
    %c0_3 = arith.constant 0 : index
    %c0_4 = arith.constant 0 : index
    %2 = vector.load %arg3[%c0_3, %c0_4] : memref<16x64xf32, #tpu.memory_space<vmem>>, vector<16x64xf32>
    %cst = arith.constant dense<0.000000e+00> : vector<64x64xf32>
    %3 = tpu.matmul %1, %2, %cst {dimension_numbers = #tpu.dot_dimension_numbers<[1], [0], [0], [1], [0, 0, 1, 1], [], []>} : vector<64x16xf32>, vector<16x64xf32>, vector<64x64xf32> -> vector<64x64xf32>
    %c0_5 = arith.constant 0 : index
    %c0_6 = arith.constant 0 : index
    %4 = vector.load %arg4[%c0_5, %c0_6] : memref<64x16xf32, #tpu.memory_space<vmem>>, vector<64x16xf32>
    %cst_7 = arith.constant dense<0.000000e+00> : vector<64x16xf32>
    %5 = tpu.matmul %3, %4, %cst_7 {dimension_numbers = #tpu.dot_dimension_numbers<[1], [0], [0], [1], [0, 0, 1, 1], [], []>} : vector<64x64xf32>, vector<64x16xf32>, vector<64x16xf32> -> vector<64x16xf32>
    %6 = vector.extract_strided_slice %5 {offsets = [0, 0], sizes = [64, 8], strides = [1, 1]} : vector<64x16xf32> to vector<64x8xf32>
    %7 = tpu.transpose %6, [1, 0] : vector<64x8xf32> -> vector<8x64xf32>
    %8 = vector.extract_strided_slice %5 {offsets = [0, 8], sizes = [64, 8], strides = [1, 1]} : vector<64x16xf32> to vector<64x8xf32>
    %9 = vector.extract_strided_slice %8 {offsets = [0, 0], sizes = [64, 1], strides = [1, 1]} : vector<64x8xf32> to vector<64x1xf32>
    %10 = vector.extract_strided_slice %7 {offsets = [0, 0], sizes = [1, 64], strides = [1, 1]} : vector<8x64xf32> to vector<1x64xf32>
    %11 = vector.broadcast %9 : vector<64x1xf32> to vector<64x64xf32>
    %12 = vector.broadcast %10 : vector<1x64xf32> to vector<64x64xf32>
    %13 = arith.addf %11, %12 : vector<64x64xf32>
    %cst_8 = arith.constant 0.000000e+00 : f32
    %14 = vector.broadcast %cst_8 : f32 to vector<64x64xf32>
    %15 = arith.cmpf oge, %13, %14 : vector<64x64xf32>
    %cst_9 = arith.constant 2.000000e-01 : f32
    %16 = vector.broadcast %cst_9 : f32 to vector<64x64xf32>
    %17 = arith.mulf %16, %13 : vector<64x64xf32>
    %18 = arith.select %15, %13, %17 : vector<64x64xi1>, vector<64x64xf32>
    %19 = arith.addf %18, %0 : vector<64x64xf32>
    %cst_10 = arith.constant dense<0xFF800000> : vector<64xf32>
    %20 = vector.multi_reduction <maximumf>, %19, %cst_10 [1] : vector<64x64xf32> to vector<64xf32>
    %21 = vector.shape_cast %20 : vector<64xf32> to vector<64x1xf32>
    %22 = vector.broadcast %21 : vector<64x1xf32> to vector<64x64xf32>
    %23 = arith.subf %19, %22 : vector<64x64xf32>
    %24 = math.exp %23 : vector<64x64xf32>
    %cst_11 = arith.constant dense<0.000000e+00> : vector<64xf32>
    %25 = vector.multi_reduction <add>, %24, %cst_11 [1] : vector<64x64xf32> to vector<64xf32>
    %26 = vector.shape_cast %25 : vector<64xf32> to vector<64x1xf32>
    %cst_12 = arith.constant 1.000000e-30 : f32
    %27 = vector.broadcast %cst_12 : f32 to vector<64x1xf32>
    %28 = arith.maximumf %26, %27 : vector<64x1xf32>
    %29 = tpu.reciprocal %28 {approx = true} : vector<64x1xf32> -> vector<64x1xf32>
    %30 = vector.broadcast %29 : vector<64x1xf32> to vector<64x64xf32>
    %31 = arith.mulf %24, %30 : vector<64x64xf32>
    %32 = vector.extract_strided_slice %3 {offsets = [0, 0], sizes = [64, 8], strides = [1, 1]} : vector<64x64xf32> to vector<64x8xf32>
    %cst_13 = arith.constant dense<0.000000e+00> : vector<64x8xf32>
    %33 = tpu.matmul %31, %32, %cst_13 {dimension_numbers = #tpu.dot_dimension_numbers<[1], [0], [0], [1], [0, 0, 1, 1], [], []>} : vector<64x64xf32>, vector<64x8xf32>, vector<64x8xf32> -> vector<64x8xf32>
    %c0_14 = arith.constant 0 : index
    %c0_15 = arith.constant 0 : index
    %34 = vector.load %arg5[%c0_14, %c0_15] : memref<1x64xf32, #tpu.memory_space<vmem>>, vector<1x8xf32>
    %35 = vector.broadcast %34 : vector<1x8xf32> to vector<64x8xf32>
    %36 = arith.addf %33, %35 : vector<64x8xf32>
    %cst_16 = arith.constant 0.000000e+00 : f32
    %37 = vector.broadcast %cst_16 : f32 to vector<64x8xf32>
    %38 = arith.cmpf ogt, %36, %37 : vector<64x8xf32>
    %cst_17 = arith.constant 0.000000e+00 : f32
    %39 = vector.broadcast %cst_17 : f32 to vector<64x8xf32>
    %40 = arith.minimumf %36, %39 : vector<64x8xf32>
    %41 = math.exp %40 : vector<64x8xf32>
    %cst_18 = arith.constant 1.000000e+00 : f32
    %42 = vector.broadcast %cst_18 : f32 to vector<64x8xf32>
    %43 = arith.subf %41, %42 : vector<64x8xf32>
    %44 = arith.select %38, %36, %43 : vector<64x8xi1>, vector<64x8xf32>
    %c0_19 = arith.constant 0 : index
    %c0_20 = arith.constant 0 : index
    %45 = vector.load %arg10[%c0_19, %c0_20] : memref<64x64xf32, #tpu.memory_space<vmem>>, vector<64x8xf32>
    tpu.vector_store %arg10[%c0_19, %c0_20], %44 {strides = array<i32>} : memref<64x64xf32, #tpu.memory_space<vmem>>, vector<64x8xf32>,
    %46 = vector.extract_strided_slice %8 {offsets = [0, 1], sizes = [64, 1], strides = [1, 1]} : vector<64x8xf32> to vector<64x1xf32>
    %47 = vector.extract_strided_slice %7 {offsets = [1, 0], sizes = [1, 64], strides = [1, 1]} : vector<8x64xf32> to vector<1x64xf32>
    %48 = vector.broadcast %46 : vector<64x1xf32> to vector<64x64xf32>
    %49 = vector.broadcast %47 : vector<1x64xf32> to vector<64x64xf32>
    %50 = arith.addf %48, %49 : vector<64x64xf32>
    %cst_21 = arith.constant 0.000000e+00 : f32
    %51 = vector.broadcast %cst_21 : f32 to vector<64x64xf32>
    %52 = arith.cmpf oge, %50, %51 : vector<64x64xf32>
    %cst_22 = arith.constant 2.000000e-01 : f32
    %53 = vector.broadcast %cst_22 : f32 to vector<64x64xf32>
    %54 = arith.mulf %53, %50 : vector<64x64xf32>
    %55 = arith.select %52, %50, %54 : vector<64x64xi1>, vector<64x64xf32>
    %56 = arith.addf %55, %0 : vector<64x64xf32>
    %cst_23 = arith.constant dense<0xFF800000> : vector<64xf32>
    %57 = vector.multi_reduction <maximumf>, %56, %cst_23 [1] : vector<64x64xf32> to vector<64xf32>
    %58 = vector.shape_cast %57 : vector<64xf32> to vector<64x1xf32>
    %59 = vector.broadcast %58 : vector<64x1xf32> to vector<64x64xf32>
    %60 = arith.subf %56, %59 : vector<64x64xf32>
    %61 = math.exp %60 : vector<64x64xf32>
    %cst_24 = arith.constant dense<0.000000e+00> : vector<64xf32>
    %62 = vector.multi_reduction <add>, %61, %cst_24 [1] : vector<64x64xf32> to vector<64xf32>
    %63 = vector.shape_cast %62 : vector<64xf32> to vector<64x1xf32>
    %cst_25 = arith.constant 1.000000e-30 : f32
    %64 = vector.broadcast %cst_25 : f32 to vector<64x1xf32>
    %65 = arith.maximumf %63, %64 : vector<64x1xf32>
    %66 = tpu.reciprocal %65 {approx = true} : vector<64x1xf32> -> vector<64x1xf32>
    %67 = vector.broadcast %66 : vector<64x1xf32> to vector<64x64xf32>
    %68 = arith.mulf %61, %67 : vector<64x64xf32>
    %69 = vector.extract_strided_slice %3 {offsets = [0, 8], sizes = [64, 8], strides = [1, 1]} : vector<64x64xf32> to vector<64x8xf32>
    %cst_26 = arith.constant dense<0.000000e+00> : vector<64x8xf32>
    %70 = tpu.matmul %68, %69, %cst_26 {dimension_numbers = #tpu.dot_dimension_numbers<[1], [0], [0], [1], [0, 0, 1, 1], [], []>} : vector<64x64xf32>, vector<64x8xf32>, vector<64x8xf32> -> vector<64x8xf32>
    %c0_27 = arith.constant 0 : index
    %c8 = arith.constant 8 : index
    %71 = vector.load %arg5[%c0_27, %c8] : memref<1x64xf32, #tpu.memory_space<vmem>>, vector<1x8xf32>
    %72 = vector.broadcast %71 : vector<1x8xf32> to vector<64x8xf32>
    %73 = arith.addf %70, %72 : vector<64x8xf32>
    %cst_28 = arith.constant 0.000000e+00 : f32
    %74 = vector.broadcast %cst_28 : f32 to vector<64x8xf32>
    %75 = arith.cmpf ogt, %73, %74 : vector<64x8xf32>
    %cst_29 = arith.constant 0.000000e+00 : f32
    %76 = vector.broadcast %cst_29 : f32 to vector<64x8xf32>
    %77 = arith.minimumf %73, %76 : vector<64x8xf32>
    %78 = math.exp %77 : vector<64x8xf32>
    %cst_30 = arith.constant 1.000000e+00 : f32
    %79 = vector.broadcast %cst_30 : f32 to vector<64x8xf32>
    %80 = arith.subf %78, %79 : vector<64x8xf32>
    %81 = arith.select %75, %73, %80 : vector<64x8xi1>, vector<64x8xf32>
    %c0_31 = arith.constant 0 : index
    %c8_32 = arith.constant 8 : index
    %82 = vector.load %arg10[%c0_31, %c8_32] : memref<64x64xf32, #tpu.memory_space<vmem>>, vector<64x8xf32>
    tpu.vector_store %arg10[%c0_31, %c8_32], %81 {strides = array<i32>} : memref<64x64xf32, #tpu.memory_space<vmem>>, vector<64x8xf32>,
    %83 = vector.extract_strided_slice %8 {offsets = [0, 2], sizes = [64, 1], strides = [1, 1]} : vector<64x8xf32> to vector<64x1xf32>
    %84 = vector.extract_strided_slice %7 {offsets = [2, 0], sizes = [1, 64], strides = [1, 1]} : vector<8x64xf32> to vector<1x64xf32>
    %85 = vector.broadcast %83 : vector<64x1xf32> to vector<64x64xf32>
    %86 = vector.broadcast %84 : vector<1x64xf32> to vector<64x64xf32>
    %87 = arith.addf %85, %86 : vector<64x64xf32>
    %cst_33 = arith.constant 0.000000e+00 : f32
    %88 = vector.broadcast %cst_33 : f32 to vector<64x64xf32>
    %89 = arith.cmpf oge, %87, %88 : vector<64x64xf32>
    %cst_34 = arith.constant 2.000000e-01 : f32
    %90 = vector.broadcast %cst_34 : f32 to vector<64x64xf32>
    %91 = arith.mulf %90, %87 : vector<64x64xf32>
    %92 = arith.select %89, %87, %91 : vector<64x64xi1>, vector<64x64xf32>
    %93 = arith.addf %92, %0 : vector<64x64xf32>
    %cst_35 = arith.constant dense<0xFF800000> : vector<64xf32>
    %94 = vector.multi_reduction <maximumf>, %93, %cst_35 [1] : vector<64x64xf32> to vector<64xf32>
    %95 = vector.shape_cast %94 : vector<64xf32> to vector<64x1xf32>
    %96 = vector.broadcast %95 : vector<64x1xf32> to vector<64x64xf32>
    %97 = arith.subf %93, %96 : vector<64x64xf32>
    %98 = math.exp %97 : vector<64x64xf32>
    %cst_36 = arith.constant dense<0.000000e+00> : vector<64xf32>
    %99 = vector.multi_reduction <add>, %98, %cst_36 [1] : vector<64x64xf32> to vector<64xf32>
    %100 = vector.shape_cast %99 : vector<64xf32> to vector<64x1xf32>
    %cst_37 = arith.constant 1.000000e-30 : f32
    %101 = vector.broadcast %cst_37 : f32 to vector<64x1xf32>
    %102 = arith.maximumf %100, %101 : vector<64x1xf32>
    %103 = tpu.reciprocal %102 {approx = true} : vector<64x1xf32> -> vector<64x1xf32>
    %104 = vector.broadcast %103 : vector<64x1xf32> to vector<64x64xf32>
    %105 = arith.mulf %98, %104 : vector<64x64xf32>
    %106 = vector.extract_strided_slice %3 {offsets = [0, 16], sizes = [64, 8], strides = [1, 1]} : vector<64x64xf32> to vector<64x8xf32>
    %cst_38 = arith.constant dense<0.000000e+00> : vector<64x8xf32>
    %107 = tpu.matmul %105, %106, %cst_38 {dimension_numbers = #tpu.dot_dimension_numbers<[1], [0], [0], [1], [0, 0, 1, 1], [], []>} : vector<64x64xf32>, vector<64x8xf32>, vector<64x8xf32> -> vector<64x8xf32>
    %c0_39 = arith.constant 0 : index
    %c16 = arith.constant 16 : index
    %108 = vector.load %arg5[%c0_39, %c16] : memref<1x64xf32, #tpu.memory_space<vmem>>, vector<1x8xf32>
    %109 = vector.broadcast %108 : vector<1x8xf32> to vector<64x8xf32>
    %110 = arith.addf %107, %109 : vector<64x8xf32>
    %cst_40 = arith.constant 0.000000e+00 : f32
    %111 = vector.broadcast %cst_40 : f32 to vector<64x8xf32>
    %112 = arith.cmpf ogt, %110, %111 : vector<64x8xf32>
    %cst_41 = arith.constant 0.000000e+00 : f32
    %113 = vector.broadcast %cst_41 : f32 to vector<64x8xf32>
    %114 = arith.minimumf %110, %113 : vector<64x8xf32>
    %115 = math.exp %114 : vector<64x8xf32>
    %cst_42 = arith.constant 1.000000e+00 : f32
    %116 = vector.broadcast %cst_42 : f32 to vector<64x8xf32>
    %117 = arith.subf %115, %116 : vector<64x8xf32>
    %118 = arith.select %112, %110, %117 : vector<64x8xi1>, vector<64x8xf32>
    %c0_43 = arith.constant 0 : index
    %c16_44 = arith.constant 16 : index
    %119 = vector.load %arg10[%c0_43, %c16_44] : memref<64x64xf32, #tpu.memory_space<vmem>>, vector<64x8xf32>
    tpu.vector_store %arg10[%c0_43, %c16_44], %118 {strides = array<i32>} : memref<64x64xf32, #tpu.memory_space<vmem>>, vector<64x8xf32>,
    %120 = vector.extract_strided_slice %8 {offsets = [0, 3], sizes = [64, 1], strides = [1, 1]} : vector<64x8xf32> to vector<64x1xf32>
    %121 = vector.extract_strided_slice %7 {offsets = [3, 0], sizes = [1, 64], strides = [1, 1]} : vector<8x64xf32> to vector<1x64xf32>
    %122 = vector.broadcast %120 : vector<64x1xf32> to vector<64x64xf32>
    %123 = vector.broadcast %121 : vector<1x64xf32> to vector<64x64xf32>
    %124 = arith.addf %122, %123 : vector<64x64xf32>
    %cst_45 = arith.constant 0.000000e+00 : f32
    %125 = vector.broadcast %cst_45 : f32 to vector<64x64xf32>
    %126 = arith.cmpf oge, %124, %125 : vector<64x64xf32>
    %cst_46 = arith.constant 2.000000e-01 : f32
    %127 = vector.broadcast %cst_46 : f32 to vector<64x64xf32>
    %128 = arith.mulf %127, %124 : vector<64x64xf32>
    %129 = arith.select %126, %124, %128 : vector<64x64xi1>, vector<64x64xf32>
    %130 = arith.addf %129, %0 : vector<64x64xf32>
    %cst_47 = arith.constant dense<0xFF800000> : vector<64xf32>
    %131 = vector.multi_reduction <maximumf>, %130, %cst_47 [1] : vector<64x64xf32> to vector<64xf32>
    %132 = vector.shape_cast %131 : vector<64xf32> to vector<64x1xf32>
    %133 = vector.broadcast %132 : vector<64x1xf32> to vector<64x64xf32>
    %134 = arith.subf %130, %133 : vector<64x64xf32>
    %135 = math.exp %134 : vector<64x64xf32>
    %cst_48 = arith.constant dense<0.000000e+00> : vector<64xf32>
    %136 = vector.multi_reduction <add>, %135, %cst_48 [1] : vector<64x64xf32> to vector<64xf32>
    %137 = vector.shape_cast %136 : vector<64xf32> to vector<64x1xf32>
    %cst_49 = arith.constant 1.000000e-30 : f32
    %138 = vector.broadcast %cst_49 : f32 to vector<64x1xf32>
    %139 = arith.maximumf %137, %138 : vector<64x1xf32>
    %140 = tpu.reciprocal %139 {approx = true} : vector<64x1xf32> -> vector<64x1xf32>
    %141 = vector.broadcast %140 : vector<64x1xf32> to vector<64x64xf32>
    %142 = arith.mulf %135, %141 : vector<64x64xf32>
    %143 = vector.extract_strided_slice %3 {offsets = [0, 24], sizes = [64, 8], strides = [1, 1]} : vector<64x64xf32> to vector<64x8xf32>
    %cst_50 = arith.constant dense<0.000000e+00> : vector<64x8xf32>
    %144 = tpu.matmul %142, %143, %cst_50 {dimension_numbers = #tpu.dot_dimension_numbers<[1], [0], [0], [1], [0, 0, 1, 1], [], []>} : vector<64x64xf32>, vector<64x8xf32>, vector<64x8xf32> -> vector<64x8xf32>
    %c0_51 = arith.constant 0 : index
    %c24 = arith.constant 24 : index
    %145 = vector.load %arg5[%c0_51, %c24] : memref<1x64xf32, #tpu.memory_space<vmem>>, vector<1x8xf32>
    %146 = vector.broadcast %145 : vector<1x8xf32> to vector<64x8xf32>
    %147 = arith.addf %144, %146 : vector<64x8xf32>
    %cst_52 = arith.constant 0.000000e+00 : f32
    %148 = vector.broadcast %cst_52 : f32 to vector<64x8xf32>
    %149 = arith.cmpf ogt, %147, %148 : vector<64x8xf32>
    %cst_53 = arith.constant 0.000000e+00 : f32
    %150 = vector.broadcast %cst_53 : f32 to vector<64x8xf32>
    %151 = arith.minimumf %147, %150 : vector<64x8xf32>
    %152 = math.exp %151 : vector<64x8xf32>
    %cst_54 = arith.constant 1.000000e+00 : f32
    %153 = vector.broadcast %cst_54 : f32 to vector<64x8xf32>
    %154 = arith.subf %152, %153 : vector<64x8xf32>
    %155 = arith.select %149, %147, %154 : vector<64x8xi1>, vector<64x8xf32>
    %c0_55 = arith.constant 0 : index
    %c24_56 = arith.constant 24 : index
    %156 = vector.load %arg10[%c0_55, %c24_56] : memref<64x64xf32, #tpu.memory_space<vmem>>, vector<64x8xf32>
    tpu.vector_store %arg10[%c0_55, %c24_56], %155 {strides = array<i32>} : memref<64x64xf32, #tpu.memory_space<vmem>>, vector<64x8xf32>,
    %157 = vector.extract_strided_slice %8 {offsets = [0, 4], sizes = [64, 1], strides = [1, 1]} : vector<64x8xf32> to vector<64x1xf32>
    %158 = vector.extract_strided_slice %7 {offsets = [4, 0], sizes = [1, 64], strides = [1, 1]} : vector<8x64xf32> to vector<1x64xf32>
    %159 = vector.broadcast %157 : vector<64x1xf32> to vector<64x64xf32>
    %160 = vector.broadcast %158 : vector<1x64xf32> to vector<64x64xf32>
    %161 = arith.addf %159, %160 : vector<64x64xf32>
    %cst_57 = arith.constant 0.000000e+00 : f32
    %162 = vector.broadcast %cst_57 : f32 to vector<64x64xf32>
    %163 = arith.cmpf oge, %161, %162 : vector<64x64xf32>
    %cst_58 = arith.constant 2.000000e-01 : f32
    %164 = vector.broadcast %cst_58 : f32 to vector<64x64xf32>
    %165 = arith.mulf %164, %161 : vector<64x64xf32>
    %166 = arith.select %163, %161, %165 : vector<64x64xi1>, vector<64x64xf32>
    %167 = arith.addf %166, %0 : vector<64x64xf32>
    %cst_59 = arith.constant dense<0xFF800000> : vector<64xf32>
    %168 = vector.multi_reduction <maximumf>, %167, %cst_59 [1] : vector<64x64xf32> to vector<64xf32>
    %169 = vector.shape_cast %168 : vector<64xf32> to vector<64x1xf32>
    %170 = vector.broadcast %169 : vector<64x1xf32> to vector<64x64xf32>
    %171 = arith.subf %167, %170 : vector<64x64xf32>
    %172 = math.exp %171 : vector<64x64xf32>
    %cst_60 = arith.constant dense<0.000000e+00> : vector<64xf32>
    %173 = vector.multi_reduction <add>, %172, %cst_60 [1] : vector<64x64xf32> to vector<64xf32>
    %174 = vector.shape_cast %173 : vector<64xf32> to vector<64x1xf32>
    %cst_61 = arith.constant 1.000000e-30 : f32
    %175 = vector.broadcast %cst_61 : f32 to vector<64x1xf32>
    %176 = arith.maximumf %174, %175 : vector<64x1xf32>
    %177 = tpu.reciprocal %176 {approx = true} : vector<64x1xf32> -> vector<64x1xf32>
    %178 = vector.broadcast %177 : vector<64x1xf32> to vector<64x64xf32>
    %179 = arith.mulf %172, %178 : vector<64x64xf32>
    %180 = vector.extract_strided_slice %3 {offsets = [0, 32], sizes = [64, 8], strides = [1, 1]} : vector<64x64xf32> to vector<64x8xf32>
    %cst_62 = arith.constant dense<0.000000e+00> : vector<64x8xf32>
    %181 = tpu.matmul %179, %180, %cst_62 {dimension_numbers = #tpu.dot_dimension_numbers<[1], [0], [0], [1], [0, 0, 1, 1], [], []>} : vector<64x64xf32>, vector<64x8xf32>, vector<64x8xf32> -> vector<64x8xf32>
    %c0_63 = arith.constant 0 : index
    %c32 = arith.constant 32 : index
    %182 = vector.load %arg5[%c0_63, %c32] : memref<1x64xf32, #tpu.memory_space<vmem>>, vector<1x8xf32>
    %183 = vector.broadcast %182 : vector<1x8xf32> to vector<64x8xf32>
    %184 = arith.addf %181, %183 : vector<64x8xf32>
    %cst_64 = arith.constant 0.000000e+00 : f32
    %185 = vector.broadcast %cst_64 : f32 to vector<64x8xf32>
    %186 = arith.cmpf ogt, %184, %185 : vector<64x8xf32>
    %cst_65 = arith.constant 0.000000e+00 : f32
    %187 = vector.broadcast %cst_65 : f32 to vector<64x8xf32>
    %188 = arith.minimumf %184, %187 : vector<64x8xf32>
    %189 = math.exp %188 : vector<64x8xf32>
    %cst_66 = arith.constant 1.000000e+00 : f32
    %190 = vector.broadcast %cst_66 : f32 to vector<64x8xf32>
    %191 = arith.subf %189, %190 : vector<64x8xf32>
    %192 = arith.select %186, %184, %191 : vector<64x8xi1>, vector<64x8xf32>
    %c0_67 = arith.constant 0 : index
    %c32_68 = arith.constant 32 : index
    %193 = vector.load %arg10[%c0_67, %c32_68] : memref<64x64xf32, #tpu.memory_space<vmem>>, vector<64x8xf32>
    tpu.vector_store %arg10[%c0_67, %c32_68], %192 {strides = array<i32>} : memref<64x64xf32, #tpu.memory_space<vmem>>, vector<64x8xf32>,
    %194 = vector.extract_strided_slice %8 {offsets = [0, 5], sizes = [64, 1], strides = [1, 1]} : vector<64x8xf32> to vector<64x1xf32>
    %195 = vector.extract_strided_slice %7 {offsets = [5, 0], sizes = [1, 64], strides = [1, 1]} : vector<8x64xf32> to vector<1x64xf32>
    %196 = vector.broadcast %194 : vector<64x1xf32> to vector<64x64xf32>
    %197 = vector.broadcast %195 : vector<1x64xf32> to vector<64x64xf32>
    %198 = arith.addf %196, %197 : vector<64x64xf32>
    %cst_69 = arith.constant 0.000000e+00 : f32
    %199 = vector.broadcast %cst_69 : f32 to vector<64x64xf32>
    %200 = arith.cmpf oge, %198, %199 : vector<64x64xf32>
    %cst_70 = arith.constant 2.000000e-01 : f32
    %201 = vector.broadcast %cst_70 : f32 to vector<64x64xf32>
    %202 = arith.mulf %201, %198 : vector<64x64xf32>
    %203 = arith.select %200, %198, %202 : vector<64x64xi1>, vector<64x64xf32>
    %204 = arith.addf %203, %0 : vector<64x64xf32>
    %cst_71 = arith.constant dense<0xFF800000> : vector<64xf32>
    %205 = vector.multi_reduction <maximumf>, %204, %cst_71 [1] : vector<64x64xf32> to vector<64xf32>
    %206 = vector.shape_cast %205 : vector<64xf32> to vector<64x1xf32>
    %207 = vector.broadcast %206 : vector<64x1xf32> to vector<64x64xf32>
    %208 = arith.subf %204, %207 : vector<64x64xf32>
    %209 = math.exp %208 : vector<64x64xf32>
    %cst_72 = arith.constant dense<0.000000e+00> : vector<64xf32>
    %210 = vector.multi_reduction <add>, %209, %cst_72 [1] : vector<64x64xf32> to vector<64xf32>
    %211 = vector.shape_cast %210 : vector<64xf32> to vector<64x1xf32>
    %cst_73 = arith.constant 1.000000e-30 : f32
    %212 = vector.broadcast %cst_73 : f32 to vector<64x1xf32>
    %213 = arith.maximumf %211, %212 : vector<64x1xf32>
    %214 = tpu.reciprocal %213 {approx = true} : vector<64x1xf32> -> vector<64x1xf32>
    %215 = vector.broadcast %214 : vector<64x1xf32> to vector<64x64xf32>
    %216 = arith.mulf %209, %215 : vector<64x64xf32>
    %217 = vector.extract_strided_slice %3 {offsets = [0, 40], sizes = [64, 8], strides = [1, 1]} : vector<64x64xf32> to vector<64x8xf32>
    %cst_74 = arith.constant dense<0.000000e+00> : vector<64x8xf32>
    %218 = tpu.matmul %216, %217, %cst_74 {dimension_numbers = #tpu.dot_dimension_numbers<[1], [0], [0], [1], [0, 0, 1, 1], [], []>} : vector<64x64xf32>, vector<64x8xf32>, vector<64x8xf32> -> vector<64x8xf32>
    %c0_75 = arith.constant 0 : index
    %c40 = arith.constant 40 : index
    %219 = vector.load %arg5[%c0_75, %c40] : memref<1x64xf32, #tpu.memory_space<vmem>>, vector<1x8xf32>
    %220 = vector.broadcast %219 : vector<1x8xf32> to vector<64x8xf32>
    %221 = arith.addf %218, %220 : vector<64x8xf32>
    %cst_76 = arith.constant 0.000000e+00 : f32
    %222 = vector.broadcast %cst_76 : f32 to vector<64x8xf32>
    %223 = arith.cmpf ogt, %221, %222 : vector<64x8xf32>
    %cst_77 = arith.constant 0.000000e+00 : f32
    %224 = vector.broadcast %cst_77 : f32 to vector<64x8xf32>
    %225 = arith.minimumf %221, %224 : vector<64x8xf32>
    %226 = math.exp %225 : vector<64x8xf32>
    %cst_78 = arith.constant 1.000000e+00 : f32
    %227 = vector.broadcast %cst_78 : f32 to vector<64x8xf32>
    %228 = arith.subf %226, %227 : vector<64x8xf32>
    %229 = arith.select %223, %221, %228 : vector<64x8xi1>, vector<64x8xf32>
    %c0_79 = arith.constant 0 : index
    %c40_80 = arith.constant 40 : index
    %230 = vector.load %arg10[%c0_79, %c40_80] : memref<64x64xf32, #tpu.memory_space<vmem>>, vector<64x8xf32>
    tpu.vector_store %arg10[%c0_79, %c40_80], %229 {strides = array<i32>} : memref<64x64xf32, #tpu.memory_space<vmem>>, vector<64x8xf32>,
    %231 = vector.extract_strided_slice %8 {offsets = [0, 6], sizes = [64, 1], strides = [1, 1]} : vector<64x8xf32> to vector<64x1xf32>
    %232 = vector.extract_strided_slice %7 {offsets = [6, 0], sizes = [1, 64], strides = [1, 1]} : vector<8x64xf32> to vector<1x64xf32>
    %233 = vector.broadcast %231 : vector<64x1xf32> to vector<64x64xf32>
    %234 = vector.broadcast %232 : vector<1x64xf32> to vector<64x64xf32>
    %235 = arith.addf %233, %234 : vector<64x64xf32>
    %cst_81 = arith.constant 0.000000e+00 : f32
    %236 = vector.broadcast %cst_81 : f32 to vector<64x64xf32>
    %237 = arith.cmpf oge, %235, %236 : vector<64x64xf32>
    %cst_82 = arith.constant 2.000000e-01 : f32
    %238 = vector.broadcast %cst_82 : f32 to vector<64x64xf32>
    %239 = arith.mulf %238, %235 : vector<64x64xf32>
    %240 = arith.select %237, %235, %239 : vector<64x64xi1>, vector<64x64xf32>
    %241 = arith.addf %240, %0 : vector<64x64xf32>
    %cst_83 = arith.constant dense<0xFF800000> : vector<64xf32>
    %242 = vector.multi_reduction <maximumf>, %241, %cst_83 [1] : vector<64x64xf32> to vector<64xf32>
    %243 = vector.shape_cast %242 : vector<64xf32> to vector<64x1xf32>
    %244 = vector.broadcast %243 : vector<64x1xf32> to vector<64x64xf32>
    %245 = arith.subf %241, %244 : vector<64x64xf32>
    %246 = math.exp %245 : vector<64x64xf32>
    %cst_84 = arith.constant dense<0.000000e+00> : vector<64xf32>
    %247 = vector.multi_reduction <add>, %246, %cst_84 [1] : vector<64x64xf32> to vector<64xf32>
    %248 = vector.shape_cast %247 : vector<64xf32> to vector<64x1xf32>
    %cst_85 = arith.constant 1.000000e-30 : f32
    %249 = vector.broadcast %cst_85 : f32 to vector<64x1xf32>
    %250 = arith.maximumf %248, %249 : vector<64x1xf32>
    %251 = tpu.reciprocal %250 {approx = true} : vector<64x1xf32> -> vector<64x1xf32>
    %252 = vector.broadcast %251 : vector<64x1xf32> to vector<64x64xf32>
    %253 = arith.mulf %246, %252 : vector<64x64xf32>
    %254 = vector.extract_strided_slice %3 {offsets = [0, 48], sizes = [64, 8], strides = [1, 1]} : vector<64x64xf32> to vector<64x8xf32>
    %cst_86 = arith.constant dense<0.000000e+00> : vector<64x8xf32>
    %255 = tpu.matmul %253, %254, %cst_86 {dimension_numbers = #tpu.dot_dimension_numbers<[1], [0], [0], [1], [0, 0, 1, 1], [], []>} : vector<64x64xf32>, vector<64x8xf32>, vector<64x8xf32> -> vector<64x8xf32>
    %c0_87 = arith.constant 0 : index
    %c48 = arith.constant 48 : index
    %256 = vector.load %arg5[%c0_87, %c48] : memref<1x64xf32, #tpu.memory_space<vmem>>, vector<1x8xf32>
    %257 = vector.broadcast %256 : vector<1x8xf32> to vector<64x8xf32>
    %258 = arith.addf %255, %257 : vector<64x8xf32>
    %cst_88 = arith.constant 0.000000e+00 : f32
    %259 = vector.broadcast %cst_88 : f32 to vector<64x8xf32>
    %260 = arith.cmpf ogt, %258, %259 : vector<64x8xf32>
    %cst_89 = arith.constant 0.000000e+00 : f32
    %261 = vector.broadcast %cst_89 : f32 to vector<64x8xf32>
    %262 = arith.minimumf %258, %261 : vector<64x8xf32>
    %263 = math.exp %262 : vector<64x8xf32>
    %cst_90 = arith.constant 1.000000e+00 : f32
    %264 = vector.broadcast %cst_90 : f32 to vector<64x8xf32>
    %265 = arith.subf %263, %264 : vector<64x8xf32>
    %266 = arith.select %260, %258, %265 : vector<64x8xi1>, vector<64x8xf32>
    %c0_91 = arith.constant 0 : index
    %c48_92 = arith.constant 48 : index
    %267 = vector.load %arg10[%c0_91, %c48_92] : memref<64x64xf32, #tpu.memory_space<vmem>>, vector<64x8xf32>
    tpu.vector_store %arg10[%c0_91, %c48_92], %266 {strides = array<i32>} : memref<64x64xf32, #tpu.memory_space<vmem>>, vector<64x8xf32>,
    %268 = vector.extract_strided_slice %8 {offsets = [0, 7], sizes = [64, 1], strides = [1, 1]} : vector<64x8xf32> to vector<64x1xf32>
    %269 = vector.extract_strided_slice %7 {offsets = [7, 0], sizes = [1, 64], strides = [1, 1]} : vector<8x64xf32> to vector<1x64xf32>
    %270 = vector.broadcast %268 : vector<64x1xf32> to vector<64x64xf32>
    %271 = vector.broadcast %269 : vector<1x64xf32> to vector<64x64xf32>
    %272 = arith.addf %270, %271 : vector<64x64xf32>
    %cst_93 = arith.constant 0.000000e+00 : f32
    %273 = vector.broadcast %cst_93 : f32 to vector<64x64xf32>
    %274 = arith.cmpf oge, %272, %273 : vector<64x64xf32>
    %cst_94 = arith.constant 2.000000e-01 : f32
    %275 = vector.broadcast %cst_94 : f32 to vector<64x64xf32>
    %276 = arith.mulf %275, %272 : vector<64x64xf32>
    %277 = arith.select %274, %272, %276 : vector<64x64xi1>, vector<64x64xf32>
    %278 = arith.addf %277, %0 : vector<64x64xf32>
    %cst_95 = arith.constant dense<0xFF800000> : vector<64xf32>
    %279 = vector.multi_reduction <maximumf>, %278, %cst_95 [1] : vector<64x64xf32> to vector<64xf32>
    %280 = vector.shape_cast %279 : vector<64xf32> to vector<64x1xf32>
    %281 = vector.broadcast %280 : vector<64x1xf32> to vector<64x64xf32>
    %282 = arith.subf %278, %281 : vector<64x64xf32>
    %283 = math.exp %282 : vector<64x64xf32>
    %cst_96 = arith.constant dense<0.000000e+00> : vector<64xf32>
    %284 = vector.multi_reduction <add>, %283, %cst_96 [1] : vector<64x64xf32> to vector<64xf32>
    %285 = vector.shape_cast %284 : vector<64xf32> to vector<64x1xf32>
    %cst_97 = arith.constant 1.000000e-30 : f32
    %286 = vector.broadcast %cst_97 : f32 to vector<64x1xf32>
    %287 = arith.maximumf %285, %286 : vector<64x1xf32>
    %288 = tpu.reciprocal %287 {approx = true} : vector<64x1xf32> -> vector<64x1xf32>
    %289 = vector.broadcast %288 : vector<64x1xf32> to vector<64x64xf32>
    %290 = arith.mulf %283, %289 : vector<64x64xf32>
    %291 = vector.extract_strided_slice %3 {offsets = [0, 56], sizes = [64, 8], strides = [1, 1]} : vector<64x64xf32> to vector<64x8xf32>
    %cst_98 = arith.constant dense<0.000000e+00> : vector<64x8xf32>
    %292 = tpu.matmul %290, %291, %cst_98 {dimension_numbers = #tpu.dot_dimension_numbers<[1], [0], [0], [1], [0, 0, 1, 1], [], []>} : vector<64x64xf32>, vector<64x8xf32>, vector<64x8xf32> -> vector<64x8xf32>
    %c0_99 = arith.constant 0 : index
    %c56 = arith.constant 56 : index
    %293 = vector.load %arg5[%c0_99, %c56] : memref<1x64xf32, #tpu.memory_space<vmem>>, vector<1x8xf32>
    %294 = vector.broadcast %293 : vector<1x8xf32> to vector<64x8xf32>
    %295 = arith.addf %292, %294 : vector<64x8xf32>
    %cst_100 = arith.constant 0.000000e+00 : f32
    %296 = vector.broadcast %cst_100 : f32 to vector<64x8xf32>
    %297 = arith.cmpf ogt, %295, %296 : vector<64x8xf32>
    %cst_101 = arith.constant 0.000000e+00 : f32
    %298 = vector.broadcast %cst_101 : f32 to vector<64x8xf32>
    %299 = arith.minimumf %295, %298 : vector<64x8xf32>
    %300 = math.exp %299 : vector<64x8xf32>
    %cst_102 = arith.constant 1.000000e+00 : f32
    %301 = vector.broadcast %cst_102 : f32 to vector<64x8xf32>
    %302 = arith.subf %300, %301 : vector<64x8xf32>
    %303 = arith.select %297, %295, %302 : vector<64x8xi1>, vector<64x8xf32>
    %c0_103 = arith.constant 0 : index
    %c56_104 = arith.constant 56 : index
    %304 = vector.load %arg10[%c0_103, %c56_104] : memref<64x64xf32, #tpu.memory_space<vmem>>, vector<64x8xf32>
    tpu.vector_store %arg10[%c0_103, %c56_104], %303 {strides = array<i32>} : memref<64x64xf32, #tpu.memory_space<vmem>>, vector<64x8xf32>,
    %c0_105 = arith.constant 0 : index
    %c0_106 = arith.constant 0 : index
    %305 = vector.load %arg10[%c0_105, %c0_106] : memref<64x64xf32, #tpu.memory_space<vmem>>, vector<64x64xf32>
    %c0_107 = arith.constant 0 : index
    %c0_108 = arith.constant 0 : index
    %306 = vector.load %arg6[%c0_107, %c0_108] : memref<64x4xf32, #tpu.memory_space<vmem>>, vector<64x4xf32>
    %cst_109 = arith.constant dense<0.000000e+00> : vector<64x4xf32>
    %307 = tpu.matmul %305, %306, %cst_109 {dimension_numbers = #tpu.dot_dimension_numbers<[1], [0], [0], [1], [0, 0, 1, 1], [], []>} : vector<64x64xf32>, vector<64x4xf32>, vector<64x4xf32> -> vector<64x4xf32>
    %c0_110 = arith.constant 0 : index
    %c0_111 = arith.constant 0 : index
    %308 = vector.load %arg7[%c0_110, %c0_111] : memref<4x2xf32, #tpu.memory_space<vmem>>, vector<4x2xf32>
    %cst_112 = arith.constant dense<0.000000e+00> : vector<64x2xf32>
    %309 = tpu.matmul %307, %308, %cst_112 {dimension_numbers = #tpu.dot_dimension_numbers<[1], [0], [0], [1], [0, 0, 1, 1], [], []>} : vector<64x4xf32>, vector<4x2xf32>, vector<64x2xf32> -> vector<64x2xf32>
    %310 = vector.extract_strided_slice %309 {offsets = [0, 0], sizes = [64, 1], strides = [1, 1]} : vector<64x2xf32> to vector<64x1xf32>
    %311 = tpu.transpose %310, [1, 0] : vector<64x1xf32> -> vector<1x64xf32>
    %312 = vector.extract_strided_slice %309 {offsets = [0, 1], sizes = [64, 1], strides = [1, 1]} : vector<64x2xf32> to vector<64x1xf32>
    %313 = vector.broadcast %312 : vector<64x1xf32> to vector<64x64xf32>
    %314 = vector.broadcast %311 : vector<1x64xf32> to vector<64x64xf32>
    %315 = arith.addf %313, %314 : vector<64x64xf32>
    %cst_113 = arith.constant 0.000000e+00 : f32
    %316 = vector.broadcast %cst_113 : f32 to vector<64x64xf32>
    %317 = arith.cmpf oge, %315, %316 : vector<64x64xf32>
    %cst_114 = arith.constant 2.000000e-01 : f32
    %318 = vector.broadcast %cst_114 : f32 to vector<64x64xf32>
    %319 = arith.mulf %318, %315 : vector<64x64xf32>
    %320 = arith.select %317, %315, %319 : vector<64x64xi1>, vector<64x64xf32>
    %321 = arith.addf %320, %0 : vector<64x64xf32>
    %cst_115 = arith.constant dense<0xFF800000> : vector<64xf32>
    %322 = vector.multi_reduction <maximumf>, %321, %cst_115 [1] : vector<64x64xf32> to vector<64xf32>
    %323 = vector.shape_cast %322 : vector<64xf32> to vector<64x1xf32>
    %324 = vector.broadcast %323 : vector<64x1xf32> to vector<64x64xf32>
    %325 = arith.subf %321, %324 : vector<64x64xf32>
    %326 = math.exp %325 : vector<64x64xf32>
    %cst_116 = arith.constant dense<0.000000e+00> : vector<64xf32>
    %327 = vector.multi_reduction <add>, %326, %cst_116 [1] : vector<64x64xf32> to vector<64xf32>
    %328 = vector.shape_cast %327 : vector<64xf32> to vector<64x1xf32>
    %cst_117 = arith.constant 1.000000e-30 : f32
    %329 = vector.broadcast %cst_117 : f32 to vector<64x1xf32>
    %330 = arith.maximumf %328, %329 : vector<64x1xf32>
    %331 = tpu.reciprocal %330 {approx = true} : vector<64x1xf32> -> vector<64x1xf32>
    %332 = vector.broadcast %331 : vector<64x1xf32> to vector<64x64xf32>
    %333 = arith.mulf %326, %332 : vector<64x64xf32>
    %cst_118 = arith.constant dense<0.000000e+00> : vector<64x4xf32>
    %334 = tpu.matmul %333, %307, %cst_118 {dimension_numbers = #tpu.dot_dimension_numbers<[1], [0], [0], [1], [0, 0, 1, 1], [], []>} : vector<64x64xf32>, vector<64x4xf32>, vector<64x4xf32> -> vector<64x4xf32>
    %c0_119 = arith.constant 0 : index
    %c0_120 = arith.constant 0 : index
    %335 = vector.load %arg8[%c0_119, %c0_120] : memref<1x4xf32, #tpu.memory_space<vmem>>, vector<1x4xf32>
    %336 = vector.broadcast %335 : vector<1x4xf32> to vector<64x4xf32>
    %337 = arith.addf %334, %336 : vector<64x4xf32>
    %cst_121 = arith.constant dense<0xFF800000> : vector<64xf32>
    %338 = vector.multi_reduction <maximumf>, %337, %cst_121 [1] : vector<64x4xf32> to vector<64xf32>
    %339 = vector.shape_cast %338 : vector<64xf32> to vector<64x1xf32>
    %340 = vector.broadcast %339 : vector<64x1xf32> to vector<64x4xf32>
    %341 = arith.subf %337, %340 : vector<64x4xf32>
    %342 = math.exp %341 : vector<64x4xf32>
    %cst_122 = arith.constant dense<0.000000e+00> : vector<64xf32>
    %343 = vector.multi_reduction <add>, %342, %cst_122 [1] : vector<64x4xf32> to vector<64xf32>
    %344 = vector.shape_cast %343 : vector<64xf32> to vector<64x1xf32>
    %345 = math.log %344 : vector<64x1xf32>
    %346 = vector.broadcast %345 : vector<64x1xf32> to vector<64x4xf32>
    %347 = arith.subf %341, %346 : vector<64x4xf32>
    %c0_123 = arith.constant 0 : index
    %c0_124 = arith.constant 0 : index
    %348 = vector.load %arg9[%c0_123, %c0_124] : memref<64x4xf32, #tpu.memory_space<vmem>>, vector<64x4xf32>
    tpu.vector_store %arg9[%c0_123, %c0_124], %347 {strides = array<i32>} : memref<64x4xf32, #tpu.memory_space<vmem>>, vector<64x4xf32>,
    return
  }
  func.func @transform_0(%arg0: i32) -> (i32, i32) {
    %c0_i32 = arith.constant 0 : i32
    %c0_i32_0 = arith.constant 0 : i32
    %c0_i32_1 = arith.constant 0 : i32
    return %c0_i32, %c0_i32_0 : i32, i32
  }
  func.func @transform_1(%arg0: i32) -> (i32, i32) {
    %c0_i32 = arith.constant 0 : i32
    %c0_i32_0 = arith.constant 0 : i32
    %c0_i32_1 = arith.constant 0 : i32
    return %c0_i32, %c0_i32_0 : i32, i32
  }
  func.func @transform_2(%arg0: i32) -> (i32, i32) {
    %c0_i32 = arith.constant 0 : i32
    %c0_i32_0 = arith.constant 0 : i32
    %c0_i32_1 = arith.constant 0 : i32
    return %c0_i32, %c0_i32_0 : i32, i32
  }
  func.func @transform_3(%arg0: i32) -> (i32, i32) {
    %c0_i32 = arith.constant 0 : i32
    %c0_i32_0 = arith.constant 0 : i32
    %c0_i32_1 = arith.constant 0 : i32
    return %c0_i32, %c0_i32_0 : i32, i32
  }
  func.func @transform_4(%arg0: i32) -> (i32, i32) {
    %c0_i32 = arith.constant 0 : i32
    %c0_i32_0 = arith.constant 0 : i32
    %c0_i32_1 = arith.constant 0 : i32
    return %c0_i32, %c0_i32_0 : i32, i32
  }
  func.func @transform_5(%arg0: i32) -> (i32, i32) {
    %c0_i32 = arith.constant 0 : i32
    %c0_i32_0 = arith.constant 0 : i32
    %c0_i32_1 = arith.constant 0 : i32
    return %c0_i32, %c0_i32_0 : i32, i32
  }
  func.func @transform_6(%arg0: i32) -> (i32, i32) {
    %c0_i32 = arith.constant 0 : i32
    %c0_i32_0 = arith.constant 0 : i32
    %c0_i32_1 = arith.constant 0 : i32
    return %c0_i32, %c0_i32_0 : i32, i32
  }
  func.func @transform_7(%arg0: i32) -> (i32, i32) {
    %c0_i32 = arith.constant 0 : i32
    %c0_i32_0 = arith.constant 0 : i32
    %c0_i32_1 = arith.constant 0 : i32
    return %c0_i32, %c0_i32_0 : i32, i32
  }
  func.func @transform_8(%arg0: i32) -> (i32, i32) {
    %c0_i32 = arith.constant 0 : i32
    %c0_i32_0 = arith.constant 0 : i32
    %c0_i32_1 = arith.constant 0 : i32
    return %c0_i32, %c0_i32_0 : i32, i32
  }
}

</mosaic_0001>

<bundles_post_ra>
// kernel: gat_forward.1
= control target key start
LH: loop header
LB: loop body
LE: loop exit
PB: predicated region body
PF: predicated region fallthrough
CT: control target
= control target key end

     0   :  { %vm47_vm0 = vcmask 130048   ;;  %s4395_s19 = smov 120   ;;  %vm121_vm1 = vcmask 523264   ;;  %v4396_v31 = vmov 11   ;;  %v4397_v32 = vmov 8   ;;  %s4404_s12 = smov 112   ;;  %s6673_s2 = inlined_call_operand.vmem [shape: f32[16,64], index: 2, kind: input, shape index: {}]   ;;  %s6674_s0 = inlined_call_operand.vmem [shape: f32[64,16], index: 0, kind: input, shape index: {}]   ;;  %s6675_s3 = inlined_call_operand.vmem [shape: f32[64,16], index: 3, kind: input, shape index: {}]   ;;  %s6676_s4 = inlined_call_operand.vmem [shape: f32[1,64], index: 4, kind: input, shape index: {}]   ;;  %s6677_s1 = inlined_call_operand.vmem [shape: f32[64,64], index: 1, kind: input, shape index: {}]   ;;  %s6678_s5 = inlined_call_operand.vmem [shape: f32[64,4], index: 5, kind: input, shape index: {}]   ;;  %s6679_s6 = inlined_call_operand.vmem [shape: f32[4,2], index: 6, kind: input, shape index: {}]   ;;  %s6680_s7 = inlined_call_operand.vmem [shape: f32[1,4], index: 7, kind: input, shape index: {}]   ;;  %s6681_s8 = inlined_call_operand.vmem [shape: f32[64,4], index: 8, kind: output, shape index: {}]  }
   0x1   :  { %v46_v0 = vld [vmem:[%s6673_s2 + $0x8] sm:$0xff]  ;;  %v45_v1 = vld [vmem:[%s6673_s2] sm:$0xff]  ;;  %v39_v4 = vld [vmem:[%s6674_s0 + $0x10] sm:$0xff]  ;;  %3753 = vset.pattern.permute.xlu2 %v4396_v31  ;;  %3750 = vset.pattern.permute.xlu1 %v4397_v32  ;;  %v6687_v36 = vmov 14   ;;  %v4399_v37 = vmov 9   ;;  %v6686_v43 = vmov 12  }
   0x2   :  { %86 = vmatpush.msra.mxu0 %v46_v0  ;;  %3701 = vmatpush.msra.mxu2 %v46_v0  ;;  %v37_v2 = vld [vmem:[%s6674_s0] sm:$0xff]  ;;  %v44_v5 = vld [vmem:[%s6674_s0 + $0x38] sm:$0xff]  ;;  %v119_v7 = vld [vmem:[%s6675_s3 + $0x30] sm:$0xff]  ;;  %v6682_v44 = vmov 15   ;;  %v4402_v45 = vmov 10   ;;  %v6684_v52 = vmov 13  }
   0x3   :  { %v41_v3 = vld [vmem:[%s6674_s0 + $0x20] sm:$0xff]  ;;  %3700 = vmatpush.msra.mxu1 %v46_v0  ;;  %3702 = vmatpush.msra.mxu3 %v46_v0  ;;  %v120_v6 = vld [vmem:[%s6675_s3 + $0x38] sm:$0xff]  ;;  %v118_v8 = vld [vmem:[%s6675_s3 + $0x28] sm:$0xff]  ;;  %s4405_s13 = smov 104   ;;  %s4407_s28 = smov 88  }
   0x4   :  { %87 = vmatpush.msra.mxu0 %v45_v1  ;;  %3704 = vmatpush.msra.mxu2 %v45_v1  ;;  %v38_v9 = vld [vmem:[%s6674_s0 + $0x8] sm:$0xff]  ;;  %v117_v11 = vld [vmem:[%s6675_s3 + $0x20] sm:$0xff]  ;;  %v40_v12 = vld [vmem:[%s6674_s0 + $0x18] sm:$0xff]  ;;  %s4408_s29 = smov 96   ;;  %s4409_s30 = smov 80  }
   0x5   :  { %3531 = vmatmul.msk.f32.vlgmr.msra.gmra.mxu0 %vm47_vm0, %v37_v2  ;;  %3535 = vmatmul.msk.f32.vlgmr.msra.gmra.mxu2 %vm47_vm0, %v41_v3  ;;  %v42_v10 = vld [vmem:[%s6674_s0 + $0x28] sm:$0xff]  ;;  %v116_v13 = vld [vmem:[%s6675_s3 + $0x18] sm:$0xff]  ;;  %v115_v14 = vld [vmem:[%s6675_s3 + $0x10] sm:$0xff]  ;;  %s4410_s11 = smov 72   ;;  %s4413_s22 = smov 32  }
   0x6   :  { %3703 = vmatpush.msra.mxu1 %v45_v1  ;;  %3705 = vmatpush.msra.mxu3 %v45_v1  ;;  %v114_v15 = vld [vmem:[%s6675_s3 + $0x8] sm:$0xff]  ;;  %v43_v16 = vld [vmem:[%s6674_s0 + $0x30] sm:$0xff]  ;;  %v113_v17 = vld [vmem:[%s6675_s3] sm:$0xff]  ;;  %s4414_s23 = smov 24   ;;  %s4415_s24 = smov 56  }
   0x7   :  { %3533 = vmatmul.msk.f32.vlgmr.msra.gmra.mxu1 %vm47_vm0, %v39_v4  ;;  %3538 = vmatmul.msk.f32.vlgmr.msra.gmra.mxu3 %vm47_vm0, %v44_v5  ;;  %v3922_v18 = vld [vmem:[%s6676_s4] ss:$0 sm:$0xff]  ;;  %s4416_s25 = smov 48  }
   0x8   :  { %154 = vmatpush.msrb.mxu1 %v120_v6  ;;  %718 = vrot.lane.b32.xlu1 %v3922_v18, %s4395_s19 }
   0x9   :  { %3760 = vset.pattern.permute.xlu0 %v4396_v31 }
   0xa   :  { %155 = vmatpush.msrb.mxu1 %v119_v7 }
   0xc   :  { %156 = vmatpush.msrb.mxu1 %v118_v8 }
   0xd   :  { %3532 = vmatmul.msk.f32.gmra.mxu0 %vm47_vm0, %v38_v9  ;;  %3536 = vmatmul.msk.f32.gmra.mxu2 %vm47_vm0, %v42_v10 }
   0xe   :  { %157 = vmatpush.msrb.mxu1 %v117_v11 }
   0xf   :  { %3534 = vmatmul.msk.f32.gmra.mxu1 %vm47_vm0, %v40_v12 }
  0x10   :  { %158 = vmatpush.msrb.mxu1 %v116_v13 }
  0x12   :  { %159 = vmatpush.msrb.mxu1 %v115_v14 }
  0x14   :  { %160 = vmatpush.msrb.mxu1 %v114_v15 }
  0x15   :  { %3537 = vmatmul.msk.f32.gmra.mxu2 %vm47_vm0, %v43_v16 }
  0x16   :  { %161 = vmatpush.msrb.mxu1 %v113_v17 }
  0x7a   :  { %v4590_v41 = vpop.permute.xlu1 %718 }
  0x7b   :  { %6722 = vst [vmem:[#allocation4_spill] sm:$0xff] %v4590_v41 }
  0x82   :  { %v4528_v19 = vpop.f32.mrf.mxu0 }
  0x83   :  { %3539 = vmatmul.msk.f32.vlgmr.msrb.gmra.mxu1 %vm121_vm1, %v4528_v19 }
  0x84   :  { %v4532_v20 = vpop.f32.mrf.mxu1 }
  0x88   :  { %v4534_v21 = vpop.f32.mrf.mxu2 }
  0x8a   :  { %v4536_v22 = vpop.f32.mrf.mxu0  ;;  %v4538_v23 = vpop.f32.mrf.mxu3 }
  0x8b   :  { %3540 = vmatmul.msk.f32.gmra.mxu1 %vm121_vm1, %v4536_v22  ;;  %v3730_v24 = vpack.i.bf16 %v4536_v22, %v4528_v19  ;;  %432 = vmatpush.msrb.mxu2 %v4538_v23 }
  0x8c   :  { %v4545_v25 = vpop.f32.mrf.mxu1 }
  0x8d   :  { %3731 = vrot.lane.b32.xlu1 %v3730_v24, %s4395_s19  ;;  %v3735_v26 = vpack.i.bf16 %v4545_v25, %v4532_v20 }
  0x8f   :  { %3736 = vrot.lane.b32.xlu0 %v3735_v26, %s4395_s19 }
  0x90   :  { %v4549_v27 = vpop.f32.mrf.mxu2 }
  0x91   :  { %v3740_v28 = vpack.i.bf16 %v4549_v27, %v4534_v21 }
  0x93   :  { %3541 = vmatmul.msk.f32.gmra.mxu1 %vm121_vm1, %v4532_v20  ;;  %3741 = vrot.lane.b32.xlu2 %v3740_v28, %s4395_s19 }
  0x98   :  { %v4555_v29 = vpop.f32.mrf.mxu2 }
  0x99   :  { %433 = vmatpush.msrb.mxu2 %v4555_v29  ;;  %v3745_v30 = vpack.i.bf16 %v4538_v23, %v4555_v29 }
  0x9b   :  { %434 = vmatpush.msrb.mxu2 %v4549_v27  ;;  %3746 = vrot.lane.b32.xlu0 %v3745_v30, %s4395_s19  ;;  %s4406_s19 = smov 8  }
  0x9c   :  { %3542 = vmatmul.msk.f32.gmra.mxu1 %vm121_vm1, %v4545_v25 }
  0x9d   :  { %435 = vmatpush.msrb.mxu2 %v4534_v21 }
  0x9f   :  { %436 = vmatpush.msrb.mxu2 %v4545_v25 }
  0xa1   :  { %437 = vmatpush.msrb.mxu2 %v4532_v20 }
  0xa3   :  { %438 = vmatpush.msrb.mxu2 %v4536_v22 }
  0xa4   :  { %3543 = vmatmul.msk.f32.gmra.mxu1 %vm121_vm1, %v4534_v21 }
  0xa5   :  { %439 = vmatpush.msrb.mxu2 %v4528_v19 }
  0xac   :  { %3544 = vmatmul.msk.f32.gmra.mxu1 %vm121_vm1, %v4549_v27 }
  0xb4   :  { %3545 = vmatmul.msk.f32.gmra.mxu1 %vm121_vm1, %v4555_v29 }
  0xbc   :  { %3546 = vmatmul.msk.f32.gmra.mxu1 %vm121_vm1, %v4538_v23 }
  0xed   :  { %v3742_v42 = vpop.permute.xlu2 %3741 }
  0xee   :  { %v3744_v46 = vunpack.i.h.bf16 %v3742_v42  ;;  %v3743_v47 = vunpack.i.l.bf16 %v3742_v42  ;;  %v4737_v42 = vld [vmem:[%s6677_s1] sm:$0xff] }
  0xff   :  { %v3732_v50 = vpop.permute.xlu1 %3731 }
 0x100   :  { %v4579_v33 = vpop.f32.mrf.mxu1  ;;  %v3734_v53 = vunpack.i.h.bf16 %v3732_v50  ;;  %v3733_v54 = vunpack.i.l.bf16 %v3732_v50 }
 0x101   :  { %1229 = vperm.xlu2 %3753, %v4579_v33   ;;  %221 = vperm.xlu1 %3750, %v4579_v33   ;;  %v3737_v34 = vpop.permute.xlu0 %3736 }
 0x102   :  { %v3739_v48 = vunpack.i.h.bf16 %v3737_v34  ;;  %v3738_v51 = vunpack.i.l.bf16 %v3737_v34 }
 0x108   :  { %v4583_v35 = vpop.f32.mrf.mxu1 }
 0x109   :  { %6721 = vst [vmem:[#allocation3_spill] sm:$0xff] %v4583_v35  ;;  %3755 = vset.pattern.permute.xlu2 %v6687_v36  ;;  %3751 = vset.pattern.permute.xlu1 %v4399_v37 }
 0x10a   :  { %1233 = vperm.xlu0 %3760, %v4583_v35   ;;  %2288 = vperm.xlu2 %3755, %v4579_v33  }
 0x10b   :  { %523 = vperm.xlu1 %3751, %v4579_v33  }
 0x10d   :  { %v3747_v38 = vpop.permute.xlu0 %3746 }
 0x10e   :  { %v3749_v39 = vunpack.i.h.bf16 %v3747_v38  ;;  %v3748_v40 = vunpack.i.l.bf16 %v3747_v38 }
 0x110   :  { %753 = vmatpush.msrb.mxu3 %v3749_v39  ;;  %v4598_v49 = vpop.f32.mrf.mxu1  ;;  %v4732_v39 = vld [vmem:[%s6677_s1 + $0x8] sm:$0xff] }
 0x112   :  { %3761 = vset.pattern.permute.xlu0 %v6686_v43  ;;  %754 = vmatpush.msrb.mxu3 %v3748_v40 }
 0x113   :  { %3756 = vset.pattern.permute.xlu2 %v6682_v44  ;;  %3752 = vset.pattern.permute.xlu1 %v4402_v45 }
 0x114   :  { %1586 = vperm.xlu0 %3761, %v4583_v35   ;;  %2641 = vperm.xlu2 %3756, %v4579_v33  }
 0x115   :  { %876 = vperm.xlu1 %3752, %v4579_v33   ;;  %755 = vmatpush.msrb.mxu3 %v3744_v46 }
 0x117   :  { %756 = vmatpush.msrb.mxu3 %v3743_v47 }
 0x119   :  { %757 = vmatpush.msrb.mxu3 %v3739_v48  ;;  %v4606_v55 = vpop.f32.mrf.mxu1 }
 0x11b   :  { %758 = vmatpush.msrb.mxu3 %v3738_v51 }
 0x11c   :  { %3762 = vset.pattern.permute.xlu0 %v6684_v52  ;;  %3758 = vset.pattern.permute.xlu2 %v4399_v37 }
 0x11d   :  { %3754 = vset.pattern.permute.xlu1 %v6686_v43  ;;  %1939 = vperm.xlu0 %3762, %v4583_v35  }
 0x11e   :  { %1582 = vperm.xlu1 %3754, %v4579_v33   ;;  %759 = vmatpush.msrb.mxu3 %v3734_v53 }
 0x11f   :  { %527 = vperm.xlu2 %3758, %v4583_v35  }
 0x120   :  { %760 = vmatpush.msrb.mxu3 %v3733_v54 }
 0x121   :  { %v4614_v56 = vpop.f32.mrf.mxu1 }
 0x125   :  { %3765 = vset.pattern.permute.xlu0 %v4402_v45 }
 0x126   :  { %3757 = vset.pattern.permute.xlu1 %v4397_v32  ;;  %884 = vperm.xlu0 %3765, %v4598_v49  }
 0x127   :  { %3759 = vset.pattern.permute.xlu2 %v4402_v45  ;;  %226 = vperm.xlu1 %3757, %v4583_v35  }
 0x128   :  { %880 = vperm.xlu2 %3759, %v4583_v35  }
 0x129   :  { %v4634_v57 = vpop.f32.mrf.mxu1 }
 0x12e   :  { %3775 = vset.pattern.permute.xlu0 %v4396_v31 }
 0x12f   :  { %3764 = vset.pattern.permute.xlu1 %v4399_v37  ;;  %1245 = vperm.xlu0 %3775, %v4614_v56  }
 0x130   :  { %3763 = vset.pattern.permute.xlu2 %v4397_v32  ;;  %531 = vperm.xlu1 %3764, %v4598_v49  }
 0x131   :  { %231 = vperm.xlu2 %3763, %v4598_v49   ;;  %v4642_v58 = vpop.f32.mrf.mxu1 }
 0x138   :  { %3770 = vset.pattern.permute.xlu1 %v4402_v45 }
 0x139   :  { %3766 = vset.pattern.permute.xlu2 %v4396_v31  ;;  %888 = vperm.xlu1 %3770, %v4606_v55   ;;  %v4668_v61 = vpop.f32.mrf.mxu1 }
 0x13a   :  { %1237 = vperm.xlu2 %3766, %v4598_v49   ;;  %6724 = vst [vmem:[#allocation6_spill] sm:$0xff] %v4668_v61 }
 0x141   :  { %3772 = vset.pattern.permute.xlu1 %v4397_v32 }
 0x142   :  { %3767 = vset.pattern.permute.xlu2 %v6684_v52  ;;  %241 = vperm.xlu1 %3772, %v4614_v56  }
 0x143   :  { %1943 = vperm.xlu2 %3767, %v4598_v49  }
 0x14a   :  { %3773 = vset.pattern.permute.xlu1 %v4399_v37 }
 0x14b   :  { %3768 = vset.pattern.permute.xlu2 %v4397_v32  ;;  %539 = vperm.xlu1 %3773, %v4614_v56  }
 0x14c   :  { %236 = vperm.xlu2 %3768, %v4606_v55  }
 0x151   :  { %187 = vxpose.xlu0.b32.start [1/8] (short) (narrow) %v4579_v33, 8 }
 0x153   :  { %3778 = vset.pattern.permute.xlu1 %v4402_v45 }
 0x154   :  { %3769 = vset.pattern.permute.xlu2 %v4399_v37  ;;  %896 = vperm.xlu1 %3778, %v4634_v57  }
 0x155   :  { %535 = vperm.xlu2 %3769, %v4606_v55  }
 0x159   :  { %188 = vxpose.xlu0.b32.cont [2/8] (short) (narrow) %v4583_v35, 8 }
 0x15b   :  { %v4661_v59 = vpop.permute.xlu2 %1229 }
 0x15c   :  { %3780 = vset.pattern.permute.xlu1 %v4397_v32 }
 0x15d   :  { %3771 = vset.pattern.permute.xlu2 %v4396_v31  ;;  %251 = vperm.xlu1 %3780, %v4642_v58  }
 0x15e   :  { %1241 = vperm.xlu2 %3771, %v4606_v55  }
 0x161   :  { %189 = vxpose.xlu0.b32.cont [3/8] (short) (narrow) %v4598_v49, 8 }
 0x164   :  { %v4666_v60 = vpop.permute.xlu2 %2288 }
 0x165   :  { %3781 = vset.pattern.permute.xlu1 %v4399_v37  ;;  %6723 = vst [vmem:[#allocation5_spill] sm:$0xff] %v4666_v60 }
 0x166   :  { %3774 = vset.pattern.permute.xlu2 %v4402_v45  ;;  %547 = vperm.xlu1 %3781, %v4642_v58  }
 0x167   :  { %892 = vperm.xlu2 %3774, %v4614_v56  }
 0x169   :  { %190 = vxpose.xlu0.b32.cont [4/8] (short) (narrow) %v4606_v55, 8 }
 0x16e   :  { %3789 = vset.pattern.permute.xlu1 %v6682_v44  ;;  %v4673_v62 = vpop.permute.xlu2 %2641 }
 0x16f   :  { %3776 = vset.pattern.permute.xlu2 %v4397_v32  ;;  %6725 = vst [vmem:[#allocation7_spill] sm:$0xff] %v4673_v62 }
 0x170   :  { %246 = vperm.xlu2 %3776, %v4634_v57  }
 0x171   :  { %191 = vxpose.xlu0.b32.cont [5/8] (short) (narrow) %v4614_v56, 8 }
 0x173   :  { %v222_v5 = vpop.permute.xlu1 %221 }
 0x178   :  { %3777 = vset.pattern.permute.xlu2 %v4399_v37 }
 0x179   :  { %543 = vperm.xlu2 %3777, %v4634_v57   ;;  %192 = vxpose.xlu0.b32.cont [6/8] (short) (narrow) %v4634_v57, 8  ;;  %v4677_v63 = vpop.permute.xlu2 %527 }
 0x17c   :  { %v1234_v4 = vpop.permute.xlu0 %1233 }
 0x17d   :  { %v524_v8 = vpop.permute.xlu1 %523 }
 0x181   :  { %3779 = vset.pattern.permute.xlu2 %v4396_v31  ;;  %193 = vxpose.xlu0.b32.cont [7/8] (short) (narrow) %v4642_v58, 8 }
 0x182   :  { %1249 = vperm.xlu2 %3779, %v4634_v57   ;;  %v4681_v0 = vpop.permute.xlu2 %880 }
 0x186   :  { %v4694_v7 = vpop.permute.xlu0 %1586 }
 0x187   :  { %6727 = vst [vmem:[#allocation9_spill] sm:$0xff] %v4694_v7  ;;  %v877_v11 = vpop.permute.xlu1 %876 }
 0x189   :  { %194 = vxpose.xlu0.b32.end [8/8] (short) (narrow) %v4668_v61, 8 }
 0x18a   :  { %3782 = vset.pattern.permute.xlu2 %v4402_v45 }
 0x18b   :  { %900 = vperm.xlu2 %3782, %v4642_v58   ;;  %v4686_v1 = vpop.permute.xlu2 %231 }
 0x18f   :  { %v4698_v10 = vpop.permute.xlu0 %1939 }
 0x190   :  { %v4704_v14 = vpop.permute.xlu1 %1582 }
 0x193   :  { %3783 = vset.pattern.permute.xlu2 %v4396_v31 }
 0x194   :  { %1253 = vperm.xlu2 %3783, %v4642_v58   ;;  %v4688_v2 = vpop.permute.xlu2 %1237 }
 0x198   :  { %v4702_v13 = vpop.permute.xlu0 %884 }
 0x199   :  { %v227_v18 = vpop.permute.xlu1 %226 }
 0x19c   :  { %3784 = vset.pattern.permute.xlu2 %v4397_v32 }
 0x19d   :  { %256 = vperm.xlu2 %3784, %v4668_v61   ;;  %v4690_v3 = vpop.permute.xlu2 %1943 }
 0x19e   :  { %6726 = vst [vmem:[#allocation8_spill] sm:$0xff] %v4690_v3 }
 0x1a1   :  { %v4708_v16 = vpop.permute.xlu0 %1245 }
 0x1a5   :  { %3785 = vset.pattern.permute.xlu2 %v4399_v37 }
 0x1a6   :  { %551 = vperm.xlu2 %3785, %v4668_v61   ;;  %v4692_v6 = vpop.permute.xlu2 %236 }
 0x1ae   :  { %3816 = vset.pattern.permute.xlu2 %v6686_v43 }
 0x1af   :  { %v4696_v9 = vpop.permute.xlu2 %535 }
 0x1b8   :  { %v4700_v12 = vpop.permute.xlu2 %1241 }
 0x1c1   :  { %v4706_v15 = vpop.permute.xlu2 %892 }
 0x1ca   :  { %v4711_v17 = vpop.permute.xlu2 %246 }
 0x1d3   :  { %v4742_v50 = vpop.permute.xlu2 %543 }
 0x1f0   :  { %3786 = vset.pattern.permute.xlu0 %v4402_v45 }
 0x1f5   :  { %v4713_v24 = vpop.trf.xlu0 }
 0x1f6   :  { %v4716_v26 = vperm.slane %v4713_v24, 0  ;;  %v4719_v28 = vperm.slane %v4713_v24, 1  ;;  %v4722_v30 = vperm.slane %v4713_v24, 3  ;;  %v4740_v46 = vperm.slane %v4713_v24, 2 }
 0x1f7   :  { %904 = vperm.xlu0 %3786, %v4668_v61  }
 0x1f8   :  { %v261_v32 = vadd.f32 %v4716_v26, %v227_v18  ;;  %v260_v34 = vadd.f32 %v4716_v26, %v222_v5  ;;  %v1262_v37 = vadd.f32 %v4722_v30, %v1234_v4  ;;  %v555_v38 = vadd.f32 %v4719_v28, %v524_v8  ;;  %v532_v5 = vpop.permute.xlu1 %531 }
 0x1fa   :  { %vm269_vm2 = vcmp.ge.f32.partialorder %v261_v32, 0.0  ;;  %v277_v40 = vmul.f32 0.2, %v261_v32  ;;  %vm268_vm3 = vcmp.ge.f32.partialorder %v260_v34, 0.0  ;;  %v276_v45 = vmul.f32 0.2, %v260_v34 }
 0x1fb   :  { %v1278_v48 = vmul.f32 0.2, %v1262_v37  ;;  %vm1270_vm4 = vcmp.ge.f32.partialorder %v1262_v37, 0.0  ;;  %v571_v54 = vmul.f32 0.2, %v555_v38  ;;  %vm563_vm5 = vcmp.ge.f32.partialorder %v555_v38, 0.0 }
 0x1fc   :  { %v285_v47 = vsel %vm269_vm2, %v261_v32, %v277_v40  ;;  %v284_v53 = vsel %vm268_vm3, %v260_v34, %v276_v45  ;;  %v557_v34 = vadd.f32 %v4719_v28, %v532_v5  ;;  %v908_v45 = vadd.f32 %v4740_v46, %v877_v11  ;;  %v4773_v11 = vld [vmem:[%s6677_s1 + $0x10] sm:$0xff] }
 0x1fd   :  { %v4745_v51 = vadd.f32 %v285_v47, %v4732_v39  ;;  %v4748_v4 = vadd.f32 %v284_v53, %v4737_v42  ;;  %v1286_v32 = vsel %vm1270_vm4, %v1262_v37, %v1278_v48  ;;  %v579_v40 = vsel %vm563_vm5, %v555_v38, %v571_v54 }
 0x1fe   :  { %v4759_v47 = vadd.f32 %v1286_v32, %v4732_v39  ;;  %v573_v53 = vmul.f32 0.2, %v557_v34  ;;  %vm565_vm6 = vcmp.ge.f32.partialorder %v557_v34, 0.0  ;;  %v924_v44 = vmul.f32 0.2, %v908_v45 }
 0x1ff   :  { %3787 = vset.pattern.permute.xlu0 %v4396_v31  ;;  %v303_v8 = vsel %vm121_vm1, %v4745_v51, -inf  ;;  %v300_v18 = vsel %vm121_vm1, %v4748_v4, -inf  ;;  %v4762_v31 = vadd.f32 %v579_v40, %v4737_v42  ;;  %vm916_vm7 = vcmp.ge.f32.partialorder %v908_v45, 0.0 }
 0x200   :  { %1257 = vperm.xlu0 %3787, %v4668_v61   ;;  %304 = vmax.xlane.f32.xlu2 %v303_v8  ;;  %v4764_v8 = vpop.permute.xlu2 %1249  ;;  %v1304_v37 = vsel %vm121_vm1, %v4759_v47, -inf  ;;  %v581_v48 = vsel %vm565_vm6, %v557_v34, %v573_v53  ;;  %v1263_v54 = vadd.f32 %v4722_v30, %v4688_v2  ;;  %v932_v5 = vsel %vm916_vm7, %v908_v45, %v924_v44  ;;  %v4780_v32 = vpop.permute.xlu1 %888 }
 0x201   :  { %301 = vmax.xlane.f32.xlu1 %v300_v18  ;;  %v595_v38 = vsel %vm121_vm1, %v4762_v31, -inf  ;;  %v909_v18 = vadd.f32 %v4740_v46, %v4681_v0  ;;  %v4783_v40 = vadd.f32 %v581_v48, %v4773_v11  ;;  %v263_v45 = vadd.f32 %v4716_v26, %v4692_v6 }
 0x202   :  { %v1279_v52 = vmul.f32 0.2, %v1263_v54  ;;  %vm1271_vm8 = vcmp.ge.f32.partialorder %v1263_v54, 0.0  ;;  %v910_v48 = vadd.f32 %v4740_v46, %v4702_v13  ;;  %v4811_v13 = vld [vmem:[%s6677_s1 + $0x18] sm:$0xff] }
 0x203   :  { %v925_v34 = vmul.f32 0.2, %v909_v18  ;;  %vm917_vm9 = vcmp.ge.f32.partialorder %v909_v18, 0.0  ;;  %v601_v2 = vsel %vm121_vm1, %v4783_v40, -inf  ;;  %v279_v36 = vmul.f32 0.2, %v263_v45 }
 0x204   :  { %v1287_v0 = vsel %vm1271_vm8, %v1263_v54, %v1279_v52  ;;  %vm271_vm10 = vcmp.ge.f32.partialorder %v263_v45, 0.0  ;;  %v926_v52 = vmul.f32 0.2, %v910_v48  ;;  %vm918_vm11 = vcmp.ge.f32.partialorder %v910_v48, 0.0 }
 0x208   :  { %1305 = vmax.xlane.f32.xlu2 %v1304_v37  ;;  %3788 = vset.pattern.permute.xlu0 %v6686_v43  ;;  %v4786_v37 = vadd.f32 %v932_v5, %v4737_v42  ;;  %v4794_v53 = vpop.permute.xlu2 %900  ;;  %v4799_v5 = vadd.f32 %v1287_v0, %v4773_v11  ;;  %v242_v43 = vpop.permute.xlu1 %241  ;;  %v1264_v0 = vadd.f32 %v4722_v30, %v4700_v12 }
 0x209   :  { %596 = vmax.xlane.f32.xlu1 %v595_v38  ;;  %v933_v38 = vsel %vm917_vm9, %v909_v18, %v925_v34  ;;  %v287_v18 = vsel %vm271_vm10, %v263_v45, %v279_v36  ;;  %v912_v34 = vadd.f32 %v4740_v46, %v4706_v15  ;;  %v264_v7 = vadd.f32 %v4716_v26, %v242_v43 }
 0x20a   :  { %v948_v44 = vsel %vm121_vm1, %v4786_v37, -inf  ;;  %6728 = vst [vmem:[#allocation10_spill] sm:$0xff] %v4799_v5  ;;  %v1307_v6 = vsel %vm121_vm1, %v4799_v5, -inf  ;;  %v4822_v3 = vadd.f32 %v287_v18, %v4811_v13  ;;  %v1280_v45 = vmul.f32 0.2, %v1264_v0 }
 0x20b   :  { %v928_v36 = vmul.f32 0.2, %v912_v34  ;;  %vm920_vm12 = vcmp.ge.f32.partialorder %v912_v34, 0.0  ;;  %vm1272_vm13 = vcmp.ge.f32.partialorder %v1264_v0, 0.0  ;;  %v265_v18 = vadd.f32 %v4716_v26, %v4711_v17 }
 0x20c   :  { %v309_v12 = vsel %vm121_vm1, %v4822_v3, -inf  ;;  %v280_v17 = vmul.f32 0.2, %v264_v7  ;;  %vm272_vm0 = vcmp.ge.f32.partialorder %v264_v7, 0.0 }
 0x20d   :  { %v281_v61 = vmul.f32 0.2, %v265_v18  ;;  %vm273_vm15 = vcmp.ge.f32.partialorder %v265_v18, 0.0 }
 0x210   :  { %602 = vmax.xlane.f32.xlu2 %v601_v2  ;;  %v4802_v2 = vadd.f32 %v933_v38, %v4732_v39  ;;  %v1261_v38 = vadd.f32 %v4722_v30, %v4661_v59  ;;  %v4827_v15 = vpop.permute.xlu1 %539 }
 0x211   :  { %949 = vmax.xlane.f32.xlu1 %v948_v44  ;;  %v934_v44 = vsel %vm918_vm11, %v910_v48, %v926_v52  ;;  %v4836_v52 = vld [vmem:[%s6677_s1 + $0x20] sm:$0xff] }
 0x212   :  { %v951_v54 = vsel %vm121_vm1, %v4802_v2, -inf  ;;  %v4825_v62 = vadd.f32 %v934_v44, %v4773_v11  ;;  %v1277_v48 = vmul.f32 0.2, %v1261_v38  ;;  %vm1269_vm14 = vcmp.ge.f32.partialorder %v1261_v38, 0.0 }
 0x213   :  { %v1288_v44 = vsel %vm1272_vm13, %v1264_v0, %v1280_v45  ;;  %v289_v45 = vsel %vm273_vm15, %v265_v18, %v281_v61 }
 0x214   :  { %6729 = vst [vmem:[#allocation11_spill] sm:$0xff] %v4825_v62  ;;  %v954_v59 = vsel %vm121_vm1, %v4825_v62, -inf  ;;  %v1285_v35 = vsel %vm1269_vm14, %v1261_v38, %v1277_v48  ;;  %v4847_v62 = vadd.f32 %v1288_v44, %v4811_v13  ;;  %v262_v44 = vadd.f32 %v4716_v26, %v4686_v1 }
 0x216   :  { %6731 = vst [vmem:[#allocation13_spill] sm:$0xff] %v4847_v62  ;;  %v278_v18 = vmul.f32 0.2, %v262_v44  ;;  %vm270_vm5 = vcmp.ge.f32.partialorder %v262_v44, 0.0 }
 0x218   :  { %1308 = vmax.xlane.f32.xlu2 %v1307_v6  ;;  %v4819_v6 = vpop.permute.xlu2 %1253  ;;  %v897_v0 = vpop.permute.xlu1 %896 }
 0x219   :  { %952 = vmax.xlane.f32.xlu1 %v951_v54  ;;  %v936_v54 = vsel %vm920_vm12, %v912_v34, %v928_v36  ;;  %v4850_v34 = vadd.f32 %v1285_v35, %v4737_v42  ;;  %v1310_v36 = vsel %vm121_vm1, %v4847_v62, -inf  ;;  %v4860_v35 = vld [vmem:[%s6677_s1 + $0x28] sm:$0xff] }
 0x21a   :  { %v4844_v41 = vadd.f32 %v936_v54, %v4836_v52  ;;  %v1265_v54 = vadd.f32 %v4722_v30, %v4708_v16 }
 0x21b   :  { %v1301_v48 = vsel %vm121_vm1, %v4850_v34, -inf }
 0x21c   :  { %6730 = vst [vmem:[#allocation12_spill] sm:$0xff] %v4844_v41  ;;  %v960_v38 = vsel %vm121_vm1, %v4844_v41, -inf  ;;  %vm1273_vm4 = vcmp.ge.f32.partialorder %v1265_v54, 0.0 }
 0x220   :  { %310 = vmax.xlane.f32.xlu2 %v309_v12  ;;  %v556_v12 = vadd.f32 %v4719_v28, %v4677_v63  ;;  %v257_v5 = vpop.permute.xlu2 %256 }
 0x221   :  { %955 = vmax.xlane.f32.xlu1 %v954_v59  ;;  %v267_v63 = vadd.f32 %v4716_v26, %v257_v5  ;;  %v288_v59 = vsel %vm272_vm0, %v264_v7, %v280_v17  ;;  %v1281_v7 = vmul.f32 0.2, %v1265_v54  ;;  %v4884_v17 = vld [vmem:[%s6677_s1 + $0x38] sm:$0xff] }
 0x222   :  { %v572_v43 = vmul.f32 0.2, %v556_v12  ;;  %vm564_vm2 = vcmp.ge.f32.partialorder %v556_v12, 0.0  ;;  %v4872_v62 = vadd.f32 %v288_v59, %v4836_v52  ;;  %v286_v59 = vsel %vm270_vm5, %v262_v44, %v278_v18 }
 0x223   :  { %v283_v41 = vmul.f32 0.2, %v267_v63  ;;  %vm275_vm3 = vcmp.ge.f32.partialorder %v267_v63, 0.0  ;;  %v914_v18 = vadd.f32 %v4740_v46, %v4794_v53 }
 0x224   :  { %v580_v5 = vsel %vm564_vm2, %v556_v12, %v572_v43  ;;  %v252_v12 = vpop.permute.xlu1 %251  ;;  %v312_v1 = vsel %vm121_vm1, %v4872_v62, -inf  ;;  %v913_v43 = vadd.f32 %v4740_v46, %v897_v0  ;;  %v4899_v0 = vadd.f32 %v286_v59, %v4773_v11 }
 0x225   :  { %v4875_v61 = vadd.f32 %v580_v5, %v4732_v39  ;;  %v291_v39 = vsel %vm275_vm3, %v267_v63, %v283_v41  ;;  %v558_v5 = vadd.f32 %v4719_v28, %v4696_v9  ;;  %v930_v59 = vmul.f32 0.2, %v914_v18 }
 0x226   :  { %v929_v41 = vmul.f32 0.2, %v913_v43  ;;  %vm921_vm6 = vcmp.ge.f32.partialorder %v913_v43, 0.0  ;;  %vm922_vm9 = vcmp.ge.f32.partialorder %v914_v18, 0.0 }
 0x227   :  { %vm566_vm8 = vcmp.ge.f32.partialorder %v558_v5, 0.0 }
 0x228   :  { %961 = vmax.xlane.f32.xlu2 %v960_v38  ;;  %v4869_v38 = vadd.f32 %v289_v45, %v4860_v35  ;;  %v1289_v45 = vsel %vm1273_vm4, %v1265_v54, %v1281_v7  ;;  %v552_v54 = vpop.permute.xlu2 %551  ;;  %v937_v7 = vsel %vm921_vm6, %v913_v43, %v929_v41 }
 0x229   :  { %1311 = vmax.xlane.f32.xlu1 %v1310_v36  ;;  %v598_v36 = vsel %vm121_vm1, %v4875_v61, -inf  ;;  %v4896_v60 = vadd.f32 %v1289_v45, %v4836_v52  ;;  %v562_v11 = vadd.f32 %v4719_v28, %v552_v54  ;;  %v911_v45 = vadd.f32 %v4740_v46, %v4780_v32 }
 0x22a   :  { %1302 = vmax.xlane.f32.xlu0 %v1301_v48  ;;  %v315_v16 = vsel %vm121_vm1, %v4869_v38, -inf  ;;  %v266_v48 = vadd.f32 %v4716_v26, %v252_v12  ;;  %v574_v26 = vmul.f32 0.2, %v558_v5  ;;  %v306_v12 = vsel %vm121_vm1, %v4899_v0, -inf }
 0x22b   :  { %6732 = vst [vmem:[#allocation14_spill] sm:$0xff] %v4896_v60  ;;  %v1313_v9 = vsel %vm121_vm1, %v4896_v60, -inf  ;;  %v4916_v43 = vadd.f32 %v937_v7, %v4860_v35  ;;  %v578_v41 = vmul.f32 0.2, %v562_v11  ;;  %vm570_vm10 = vcmp.ge.f32.partialorder %v562_v11, 0.0 }
 0x22c   :  { %v282_v63 = vmul.f32 0.2, %v266_v48  ;;  %vm274_vm7 = vcmp.ge.f32.partialorder %v266_v48, 0.0  ;;  %vm919_vm11 = vcmp.ge.f32.partialorder %v911_v45, 0.0 }
 0x22d   :  { %6733 = vst [vmem:[#allocation15_spill] sm:$0xff] %v4916_v43 }
 0x230   :  { %316 = vmax.xlane.f32.xlu2 %v315_v16  ;;  %v4893_v16 = vadd.f32 %v291_v39, %v4884_v17  ;;  %v290_v39 = vsel %vm274_vm7, %v266_v48, %v282_v63  ;;  %v963_v48 = vsel %vm121_vm1, %v4916_v43, -inf  ;;  %v1267_v63 = vadd.f32 %v4722_v30, %v4819_v6 }
 0x231   :  { %313 = vmax.xlane.f32.xlu1 %v312_v1  ;;  %v35_v1 = vld [vmem:[%s6677_s1 + $0x30] sm:$0xff]  ;;  %vm513_vm7 = vcmask 64512  }
 0x232   :  { %599 = vmax.xlane.f32.xlu0 %v598_v36  ;;  %v321_v44 = vsel %vm121_vm1, %v4893_v16, -inf  ;;  %v582_v36 = vsel %vm566_vm8, %v558_v5, %v574_v26  ;;  %v4918_v53 = vadd.f32 %v290_v39, %v35_v1  ;;  %v938_v5 = vsel %vm922_vm9, %v914_v18, %v930_v59 }
 0x233   :  { %v4921_v54 = vadd.f32 %v582_v36, %v4811_v13  ;;  %v4933_v39 = vadd.f32 %v938_v5, %v35_v1  ;;  %vm1275_vm12 = vcmp.ge.f32.partialorder %v1267_v63, 0.0 }
 0x234   :  { %v318_v32 = vsel %vm121_vm1, %v4918_v53, -inf }
 0x235   :  { %v604_v26 = vsel %vm121_vm1, %v4921_v54, -inf  ;;  %6734 = vst [vmem:[#allocation16_spill] sm:$0xff] %v4933_v39  ;;  %v966_v59 = vsel %vm121_vm1, %v4933_v39, -inf }
 0x238   :  { %322 = vmax.xlane.f32.xlu2 %v321_v44  ;;  %v927_v44 = vmul.f32 0.2, %v911_v45 }
 0x239   :  { %1314 = vmax.xlane.f32.xlu1 %v1313_v9  ;;  %v586_v9 = vsel %vm570_vm10, %v562_v11, %v578_v41 }
 0x23a   :  { %307 = vmax.xlane.f32.xlu0 %v306_v12  ;;  %v935_v7 = vsel %vm919_vm11, %v911_v45, %v927_v44  ;;  %v559_v12 = vadd.f32 %v4719_v28, %v4827_v15  ;;  %v4936_v36 = vadd.f32 %v586_v9, %v4884_v17 }
 0x23b   :  { %v4939_v18 = vadd.f32 %v935_v7, %v4811_v13  ;;  %v560_v13 = vadd.f32 %v4719_v28, %v4742_v50 }
 0x23c   :  { %v575_v6 = vmul.f32 0.2, %v559_v12  ;;  %vm567_vm13 = vcmp.ge.f32.partialorder %v559_v12, 0.0  ;;  %v616_v11 = vsel %vm121_vm1, %v4936_v36, -inf }
 0x23d   :  { %6735 = vst [vmem:[#allocation17_spill] sm:$0xff] %v4939_v18  ;;  %v957_v45 = vsel %vm121_vm1, %v4939_v18, -inf  ;;  %v576_v5 = vmul.f32 0.2, %v560_v13  ;;  %vm568_vm14 = vcmp.ge.f32.partialorder %v560_v13, 0.0 }
 0x23e   :  { %v583_v41 = vsel %vm567_vm13, %v559_v12, %v575_v6 }
 0x23f   :  { %v584_v7 = vsel %vm568_vm14, %v560_v13, %v576_v5 }
 0x240   :  { %964 = vmax.xlane.f32.xlu2 %v963_v48  ;;  %v1283_v48 = vmul.f32 0.2, %v1267_v63  ;;  %v4960_v50 = vadd.f32 %v584_v7, %v4860_v35 }
 0x241   :  { %319 = vmax.xlane.f32.xlu1 %v318_v32  ;;  %v4952_v32 = vadd.f32 %v583_v41, %v4836_v52 }
 0x242   :  { %605 = vmax.xlane.f32.xlu0 %v604_v26  ;;  %v1291_v15 = vsel %vm1275_vm12, %v1267_v63, %v1283_v48  ;;  %v548_v63 = vpop.permute.xlu1 %547  ;;  %v610_v52 = vsel %vm121_vm1, %v4960_v50, -inf }
 0x243   :  { %v4949_v44 = vadd.f32 %v1291_v15, %v35_v1  ;;  %v607_v9 = vsel %vm121_vm1, %v4952_v32, -inf  ;;  %v561_v12 = vadd.f32 %v4719_v28, %v548_v63 }
 0x245   :  { %6736 = vst [vmem:[#allocation18_spill] sm:$0xff] %v4949_v44  ;;  %v1319_v26 = vsel %vm121_vm1, %v4949_v44, -inf  ;;  %v577_v48 = vmul.f32 0.2, %v561_v12  ;;  %vm569_vm15 = vcmp.ge.f32.partialorder %v561_v12, 0.0 }
 0x247   :  { %v585_v6 = vsel %vm569_vm15, %v561_v12, %v577_v48 }
 0x248   :  { %967 = vmax.xlane.f32.xlu2 %v966_v59  ;;  %v4964_v59 = vadd.f32 %v585_v6, %v35_v1 }
 0x249   :  { %617 = vmax.xlane.f32.xlu1 %v616_v11 }
 0x24a   :  { %958 = vmax.xlane.f32.xlu0 %v957_v45  ;;  %v613_v11 = vsel %vm121_vm1, %v4964_v59, -inf }
 0x250   :  { %1320 = vmax.xlane.f32.xlu2 %v1319_v26 }
 0x252   :  { %608 = vmax.xlane.f32.xlu0 %v607_v9 }
 0x25a   :  { %611 = vmax.xlane.f32.xlu0 %v610_v52 }
 0x262   :  { %614 = vmax.xlane.f32.xlu0 %v613_v11  ;;  %v1266_v11 = vadd.f32 %v4722_v30, %v4764_v8 }
 0x264   :  { %vm1274_vm0 = vcmp.ge.f32.partialorder %v1266_v11, 0.0 }
 0x273   :  { %v305_v15 = vpop.xlane.xlu2 %304 }
 0x274   :  { %v325_v45 = vsub.f32 %v4745_v51, %v305_v15  ;;  %v302_v28 = vpop.xlane.xlu1 %301 }
 0x275   :  { %v324_v41 = vsub.f32 %v4748_v4, %v302_v28  ;;  %v4981_v4 = vpop.permute.xlu0 %904 }
 0x276   :  { %v334_v13 = vmul.f32 1.442695, %v325_v45  ;;  %1594 = vperm.xlu0 %3788, %v4606_v55  }
 0x277   :  { %v332_v5 = vmul.f32 1.442695, %v324_v41  ;;  %v1282_v41 = vmul.f32 0.2, %v1266_v11 }
 0x278   :  { %3931 = vpow2.f32 %v334_v13 }
 0x279   :  { %3933 = vpow2.f32 %v332_v5  ;;  %v5001_v5 = vpack.i.bf16 %v4555_v29, %v4538_v23  ;;  %v1290_v8 = vsel %vm1274_vm0, %v1266_v11, %v1282_v41 }
 0x27b   :  { %v4979_v9 = vpop.xlane.xlu2 %1305  ;;  %6737 = vst [vmem:[#allocation19_spill] sm:$0xff] %v5001_v5 }
 0x27c   :  { %v597_v7 = vpop.xlane.xlu1 %596 }
 0x27d   :  { %v619_v12 = vsub.f32 %v4762_v31, %v597_v7  ;;  %v4984_v6 = vpop.permute.xlu0 %1257 }
 0x27e   :  { %v4971_v26 = vpop.eup %3931 }
 0x27f   :  { %v4973_v1 = vpop.eup %3933  ;;  %v351_v63 = vsel %vm121_vm1, %v4971_v26, 0.0  ;;  %v627_v52 = vmul.f32 1.442695, %v619_v12 }
 0x280   :  { %352 = vadd.xlane.f32.xlu2 %v351_v63  ;;  %v348_v51 = vsel %vm121_vm1, %v4973_v1, 0.0  ;;  %v5006_v63 = vadd.f32 %v1290_v8, %v4860_v35 }
 0x281   :  { %349 = vadd.xlane.f32.xlu1 %v348_v51  ;;  %3935 = vpow2.f32 %v627_v52 }
 0x282   :  { %6738 = vst [vmem:[#allocation20_spill] sm:$0xff] %v5006_v63 }
 0x283   :  { %v603_v48 = vpop.xlane.xlu2 %602 }
 0x284   :  { %v4988_v15 = vpop.xlane.xlu1 %949  ;;  %v621_v44 = vsub.f32 %v4783_v40, %v603_v48 }
 0x287   :  { %v4993_v28 = vpop.eup %3935 }
 0x288   :  { %v643_v31 = vsel %vm121_vm1, %v4993_v28, 0.0 }
 0x28b   :  { %v4991_v45 = vpop.xlane.xlu2 %1308 }
 0x28c   :  { %v5008_v51 = vpop.xlane.xlu1 %952 }
 0x293   :  { %v311_v7 = vpop.xlane.xlu2 %310 }
 0x294   :  { %v327_v23 = vsub.f32 %v4822_v3, %v311_v7  ;;  %v5014_v39 = vpop.xlane.xlu1 %955 }
 0x296   :  { %v338_v11 = vmul.f32 1.442695, %v327_v23 }
 0x29a   :  { %2653 = vperm.xlu1 %3789, %v4606_v55  }
 0x29b   :  { %v5028_v23 = vpop.xlane.xlu2 %961 }
 0x29c   :  { %v5023_v7 = vpop.xlane.xlu1 %1311 }
 0x29d   :  { %v4995_v13 = vpop.xlane.xlu0 %1302 }
 0x2a0   :  { %644 = vadd.xlane.f32.xlu0 %v643_v31  ;;  %v1316_v31 = vsel %vm121_vm1, %v5006_v63, -inf }
 0x2a2   :  { %3791 = vrot.lane.b32.xlu1 %v5001_v5, %s4404_s12 }
 0x2a3   :  { %v317_v63 = vpop.xlane.xlu2 %316 }
 0x2a5   :  { %v600_v12 = vpop.xlane.xlu0 %599 }
 0x2a6   :  { %v620_v52 = vsub.f32 %v4875_v61, %v600_v12 }
 0x2a8   :  { %v629_v29 = vmul.f32 1.442695, %v620_v52  ;;  %1317 = vmax.xlane.f32.xlu0 %v1316_v31 }
 0x2aa   :  { %3937 = vpow2.f32 %v629_v29 }
 0x2ab   :  { %3939 = vpow2.f32 %v338_v11 }
 0x2ad   :  { %v308_v41 = vpop.xlane.xlu0 %307 }
 0x2ae   :  { %v326_v31 = vsub.f32 %v4899_v0, %v308_v41 }
 0x2b0   :  { %v5016_v35 = vpop.eup %3937  ;;  %v336_v11 = vmul.f32 1.442695, %v326_v31 }
 0x2b1   :  { %v646_v8 = vsel %vm121_vm1, %v5016_v35, 0.0  ;;  %v5020_v12 = vpop.eup %3939 }
 0x2b2   :  { %647 = vadd.xlane.f32.xlu2 %v646_v8  ;;  %v357_v52 = vsel %vm121_vm1, %v5020_v12, 0.0 }
 0x2b5   :  { %v606_v61 = vpop.xlane.xlu0 %605 }
 0x2b6   :  { %v622_v43 = vsub.f32 %v4921_v54, %v606_v61  ;;  %v314_v54 = vpop.xlane.xlu1 %313  ;;  %v631_v61 = vmul.f32 1.442695, %v621_v44 }
 0x2b7   :  { %v328_v60 = vsub.f32 %v4872_v62, %v314_v54 }
 0x2b8   :  { %v633_v3 = vmul.f32 1.442695, %v622_v43 }
 0x2ba   :  { %3941 = vpow2.f32 %v633_v3  ;;  %358 = vadd.xlane.f32.xlu2 %v357_v52  ;;  %v329_v52 = vsub.f32 %v4869_v38, %v317_v63  ;;  %v5050_v38 = vpop.xlane.xlu2 %322 }
 0x2bb   :  { %3943 = vpow2.f32 %v336_v11 }
 0x2bc   :  { %3945 = vpow2.f32 %v631_v61  ;;  %v342_v48 = vmul.f32 1.442695, %v329_v52 }
 0x2bd   :  { %v5030_v29 = vpop.xlane.xlu0 %958 }
 0x2be   :  { %v5044_v11 = vpop.xlane.xlu1 %1314 }
 0x2c0   :  { %v5032_v8 = vpop.eup %3941 }
 0x2c1   :  { %v652_v43 = vsel %vm121_vm1, %v5032_v8, 0.0  ;;  %v5038_v3 = vpop.eup %3943 }
 0x2c2   :  { %653 = vadd.xlane.f32.xlu0 %v652_v43  ;;  %v354_v40 = vsel %vm121_vm1, %v5038_v3, 0.0  ;;  %v340_v43 = vmul.f32 1.442695, %v328_v60  ;;  %v5046_v18 = vpop.eup %3945 }
 0x2c3   :  { %v649_v54 = vsel %vm121_vm1, %v5046_v18, 0.0 }
 0x2c5   :  { %v609_v0 = vpop.xlane.xlu0 %608 }
 0x2c6   :  { %v623_v41 = vsub.f32 %v4952_v32, %v609_v0  ;;  %v320_v52 = vpop.xlane.xlu1 %319 }
 0x2c8   :  { %v635_v31 = vmul.f32 1.442695, %v623_v41 }
 0x2ca   :  { %3947 = vpow2.f32 %v635_v31 }
 0x2cb   :  { %3949 = vpow2.f32 %v342_v48  ;;  %v5064_v48 = vpop.xlane.xlu2 %964 }
 0x2cc   :  { %355 = vadd.xlane.f32.xlu1 %v354_v40  ;;  %3951 = vpow2.f32 %v340_v43  ;;  %6739 = vst [vmem:[#allocation21_spill] sm:$0xff] %v5064_v48 }
 0x2cd   :  { %v612_v44 = vpop.xlane.xlu0 %611 }
 0x2ce   :  { %v624_v63 = vsub.f32 %v4960_v50, %v612_v44  ;;  %v330_v44 = vsub.f32 %v4918_v53, %v320_v52  ;;  %v618_v52 = vpop.xlane.xlu1 %617 }
 0x2d0   :  { %v5048_v32 = vpop.eup %3947  ;;  %v637_v61 = vmul.f32 1.442695, %v624_v63  ;;  %v344_v63 = vmul.f32 1.442695, %v330_v44 }
 0x2d1   :  { %v655_v62 = vsel %vm121_vm1, %v5048_v32, 0.0  ;;  %v5057_v0 = vpop.eup %3949 }
 0x2d2   :  { %656 = vadd.xlane.f32.xlu2 %v655_v62  ;;  %v5060_v31 = vpop.eup %3951  ;;  %3953 = vpow2.f32 %v637_v61  ;;  %v363_v50 = vsel %vm121_vm1, %v5057_v0, 0.0 }
 0x2d3   :  { %v360_v43 = vsel %vm121_vm1, %v5060_v31, 0.0  ;;  %v5077_v53 = vpop.xlane.xlu2 %967 }
 0x2d4   :  { %650 = vadd.xlane.f32.xlu1 %v649_v54  ;;  %6740 = vst [vmem:[#allocation22_spill] sm:$0xff] %v5077_v53 }
 0x2d5   :  { %v615_v60 = vpop.xlane.xlu0 %614 }
 0x2d6   :  { %v625_v41 = vsub.f32 %v4964_v59, %v615_v60 }
 0x2d8   :  { %v639_v40 = vmul.f32 1.442695, %v625_v41  ;;  %v5069_v59 = vpop.eup %3953 }
 0x2d9   :  { %v658_v61 = vsel %vm121_vm1, %v5069_v59, 0.0 }
 0x2da   :  { %3955 = vpow2.f32 %v639_v40  ;;  %364 = vadd.xlane.f32.xlu2 %v363_v50 }
 0x2db   :  { %3957 = vpow2.f32 %v344_v63  ;;  %v5083_v40 = vpop.xlane.xlu2 %1320  ;;  %v5090_v63 = vpack.i.bf16 %v4534_v21, %v4549_v27 }
 0x2dc   :  { %361 = vadd.xlane.f32.xlu1 %v360_v43  ;;  %6741 = vst [vmem:[#allocation23_spill] sm:$0xff] %v5083_v40 }
 0x2dd   :  { %6742 = vst [vmem:[#allocation24_spill] sm:$0xff] %v5090_v63 }
 0x2e0   :  { %v5071_v62 = vpop.eup %3955 }
 0x2e1   :  { %v661_v54 = vsel %vm121_vm1, %v5071_v62, 0.0  ;;  %v5079_v60 = vpop.eup %3957 }
 0x2e2   :  { %662 = vadd.xlane.f32.xlu0 %v661_v54  ;;  %v366_v41 = vsel %vm121_vm1, %v5079_v60, 0.0 }
 0x2e4   :  { %659 = vadd.xlane.f32.xlu1 %v658_v61 }
 0x2e8   :  { %v5102_v27 = vpop.permute.xlu0 %1594 }
 0x2ec   :  { %367 = vadd.xlane.f32.xlu1 %v366_v41 }
 0x2f2   :  { %3796 = vrot.lane.b32.xlu2 %v5001_v5, %s4405_s13 }
 0x2f3   :  { %v353_v43 = vpop.xlane.xlu2 %352 }
 0x2f4   :  { %v350_v50 = vpop.xlane.xlu1 %349  ;;  %v373_v54 = vmax.f32 %v353_v43, 1e-30 }
 0x2f5   :  { %v372_v44 = vmax.f32 %v350_v50, 1e-30  ;;  %v6743_v50 = vmov 14  }
 0x2f6   :  { %1602 = vperm.xlu0 %3788, %v4634_v57  }
 0x2f7   :  { %3959 = vrcp.f32 %v372_v44 }
 0x2f8   :  { %3961 = vrcp.f32 %v373_v54  ;;  %v6744_v54 = vmov 13  }
 0x2fa   :  { %3801 = vrot.lane.b32.xlu2 %v5090_v63, %s4404_s12 }
 0x2fd   :  { %v3960_v61 = vpop.eup %3959 }
 0x2fe   :  { %3806 = vrot.lane.b32.xlu0 %v5090_v63, %s4405_s13  ;;  %v388_v41 = vmul.f32 %v3960_v61, %v4973_v1  ;;  %v3962_v44 = vpop.eup %3961  ;;  %v331_v1 = vsub.f32 %v4893_v16, %v5050_v38  ;;  %v972_v16 = vsub.f32 %v4786_v37, %v4988_v15 }
 0x2ff   :  { %3817 = vset.pattern.permute.xlu0 %v6743_v50  ;;  %v389_v21 = vmul.f32 %v3962_v44, %v4971_v26  ;;  %v915_v26 = vadd.f32 %v4740_v46, %v4981_v4  ;;  %v626_v44 = vsub.f32 %v4936_v36, %v618_v52  ;;  %v1325_v46 = vsub.f32 %v4850_v34, %v4995_v13 }
 0x300   :  { %3547 = vmatmul.msk.f32.vlgmr.msrb.gmra.mxu2 %vm121_vm1, %v388_v41  ;;  %v346_v41 = vmul.f32 1.442695, %v331_v1  ;;  %v5123_v4 = vperm.slane %v4713_v24, 4 }
 0x301   :  { %v931_v5 = vmul.f32 0.2, %v915_v26  ;;  %v641_v38 = vmul.f32 1.442695, %v626_v44  ;;  %vm923_vm2 = vcmp.ge.f32.partialorder %v915_v26, 0.0 }
 0x302   :  { %v1333_v15 = vmul.f32 1.442695, %v1325_v46  ;;  %v1614_v13 = vadd.f32 %v5123_v4, %v4704_v14 }
 0x304   :  { %vm1622_vm3 = vcmp.ge.f32.partialorder %v1614_v13, 0.0 }
 0x305   :  { %2657 = vperm.xlu1 %3789, %v4614_v56  }
 0x308   :  { %3548 = vmatmul.msk.f32.gmra.mxu2 %vm121_vm1, %v389_v21 }
 0x30c   :  { %v5104_v43 = vpop.permute.xlu1 %2653 }
 0x30d   :  { %3810 = vset.pattern.permute.xlu1 %v6744_v54 }
 0x313   :  { %v645_v61 = vpop.xlane.xlu0 %644 }
 0x314   :  { %v3792_v53 = vpop.permute.xlu1 %3791  ;;  %v667_v48 = vmax.f32 %v645_v61, 1e-30 }
 0x315   :  { %v3793_v40 = vunpack.i.l.bf16 %v3792_v53  ;;  %v3794_v63 = vunpack.i.h.bf16 %v3792_v53  ;;  %v980_v53 = vmul.f32 1.442695, %v972_v16 }
 0x316   :  { %3963 = vrcp.f32 %v667_v48  ;;  %v939_v48 = vsel %vm923_vm2, %v915_v26, %v931_v5  ;;  %v1630_v26 = vmul.f32 0.2, %v1614_v13 }
 0x317   :  { %1106 = vmatpush.msrb.mxu0 %v3793_v40  ;;  %3965 = vpow2.f32 %v346_v41  ;;  %v5126_v37 = vadd.f32 %v939_v48, %v4884_v17  ;;  %v1268_v41 = vadd.f32 %v4722_v30, %v4984_v6 }
 0x318   :  { %3967 = vpow2.f32 %v641_v38 }
 0x319   :  { %1107 = vmatpush.msrb.mxu0 %v3794_v63  ;;  %6745 = vst [vmem:[#allocation25_spill] sm:$0xff] %v5126_v37  ;;  %3969 = vpow2.f32 %v980_v53  ;;  %v969_v34 = vsel %vm121_vm1, %v5126_v37, -inf  ;;  %v1284_v14 = vmul.f32 0.2, %v1268_v41  ;;  %vm1276_vm4 = vcmp.ge.f32.partialorder %v1268_v41, 0.0 }
 0x31b   :  { %v1292_v48 = vsel %vm1276_vm4, %v1268_v41, %v1284_v14 }
 0x31c   :  { %v3964_v21 = vpop.eup %3963  ;;  %v5154_v46 = vadd.f32 %v1292_v48, %v4884_v17 }
 0x31d   :  { %v683_v61 = vmul.f32 %v3964_v21, %v4993_v28  ;;  %v5115_v1 = vpop.eup %3965 }
 0x31e   :  { %v369_v36 = vsel %vm121_vm1, %v5115_v1, 0.0  ;;  %v5128_v5 = vpop.eup %3967 }
 0x31f   :  { %3563 = vmatmul.msk.f32.vlgmr.msrb.gmra.mxu3 %vm121_vm1, %v683_v61  ;;  %v664_v40 = vsel %vm121_vm1, %v5128_v5, 0.0  ;;  %v5136_v63 = vpop.eup %3969  ;;  %v1638_v61 = vsel %vm1622_vm3, %v1614_v13, %v1630_v26 }
 0x320   :  { %v996_v21 = vsel %vm121_vm1, %v5136_v63, 0.0  ;;  %v5149_v6 = vadd.f32 %v1638_v61, %v4737_v42 }
 0x322   :  { %6746 = vst [vmem:[#allocation26_spill] sm:$0xff] %v5149_v6  ;;  %v1654_v53 = vsel %vm121_vm1, %v5149_v6, -inf }
 0x323   :  { %370 = vadd.xlane.f32.xlu2 %v369_v36 }
 0x325   :  { %v648_v28 = vpop.xlane.xlu2 %647 }
 0x326   :  { %v668_v52 = vmax.f32 %v648_v28, 1e-30 }
 0x328   :  { %3971 = vrcp.f32 %v668_v52  ;;  %970 = vmax.xlane.f32.xlu0 %v969_v34  ;;  %v5158_v52 = vpop.xlane.xlu0 %1317 }
 0x329   :  { %3973 = vpow2.f32 %v1333_v15 }
 0x32b   :  { %665 = vadd.xlane.f32.xlu2 %v664_v40 }
 0x32d   :  { %v359_v36 = vpop.xlane.xlu2 %358 }
 0x32e   :  { %v3972_v44 = vpop.eup %3971  ;;  %v375_v42 = vmax.f32 %v359_v36, 1e-30 }
 0x32f   :  { %v5142_v16 = vpop.eup %3973  ;;  %997 = vadd.xlane.f32.xlu1 %v996_v21  ;;  %v684_v38 = vmul.f32 %v3972_v44, %v5016_v35  ;;  %v1322_v35 = vsel %vm121_vm1, %v5154_v46, -inf }
 0x330   :  { %v1349_v30 = vsel %vm121_vm1, %v5142_v16, 0.0 }
 0x331   :  { %3564 = vmatmul.msk.f32.gmra.mxu3 %vm121_vm1, %v684_v38 }
 0x333   :  { %1350 = vadd.xlane.f32.xlu2 %v1349_v30 }
 0x335   :  { %v654_v26 = vpop.xlane.xlu0 %653 }
 0x336   :  { %v670_v44 = vmax.f32 %v654_v26, 1e-30 }
 0x337   :  { %1655 = vmax.xlane.f32.xlu1 %v1654_v53 }
 0x33b   :  { %1323 = vmax.xlane.f32.xlu2 %v1322_v35 }
 0x33f   :  { %v356_v15 = vpop.xlane.xlu1 %355 }
 0x340   :  { %v374_v28 = vmax.f32 %v356_v15, 1e-30 }
 0x342   :  { %3975 = vrcp.f32 %v374_v28 }
 0x343   :  { %3977 = vrcp.f32 %v375_v42 }
 0x345   :  { %v657_v34 = vpop.xlane.xlu2 %656 }
 0x346   :  { %v671_v35 = vmax.f32 %v657_v34, 1e-30 }
 0x347   :  { %v651_v13 = vpop.xlane.xlu1 %650 }
 0x348   :  { %v3976_v40 = vpop.eup %3975  ;;  %v669_v41 = vmax.f32 %v651_v13, 1e-30 }
 0x349   :  { %v390_v17 = vmul.f32 %v3976_v40, %v5038_v3  ;;  %v3978_v14 = vpop.eup %3977 }
 0x34a   :  { %3979 = vrcp.f32 %v669_v41  ;;  %v391_v48 = vmul.f32 %v3978_v14, %v5020_v12 }
 0x34b   :  { %3549 = vmatmul.msk.f32.gmra.mxu2 %vm121_vm1, %v390_v17  ;;  %3981 = vrcp.f32 %v670_v44 }
 0x34d   :  { %v365_v21 = vpop.xlane.xlu2 %364 }
 0x34e   :  { %v377_v3 = vmax.f32 %v365_v21, 1e-30 }
 0x34f   :  { %v362_v38 = vpop.xlane.xlu1 %361 }
 0x350   :  { %v3980_v61 = vpop.eup %3979  ;;  %v376_v30 = vmax.f32 %v362_v38, 1e-30  ;;  %1935 = vperm.xlu1 %3810, %v4579_v33  }
 0x351   :  { %v685_v53 = vmul.f32 %v3980_v61, %v5046_v18  ;;  %v3982_v15 = vpop.eup %3981  ;;  %v5179_v61 = vpack.i.bf16 %v4528_v19, %v4536_v22 }
 0x352   :  { %3983 = vrcp.f32 %v376_v30  ;;  %v686_v12 = vmul.f32 %v3982_v15, %v5032_v8 }
 0x353   :  { %3550 = vmatmul.msk.f32.gmra.mxu2 %vm121_vm1, %v391_v48  ;;  %3565 = vmatmul.msk.f32.gmra.mxu3 %vm121_vm1, %v685_v53  ;;  %3985 = vrcp.f32 %v671_v35  ;;  %v5195_v35 = vpack.i.bf16 %v4532_v20, %v4545_v25  ;;  %v5207_v25 = vperm.slane %v4713_v24, 5 }
 0x354   :  { %1590 = vperm.xlu2 %3816, %v4598_v49   ;;  %3987 = vrcp.f32 %v377_v3 }
 0x355   :  { %v3797_v36 = vpop.permute.xlu2 %3796  ;;  %v663_v21 = vpop.xlane.xlu0 %662  ;;  %6747 = vst [vmem:[#allocation27_spill] sm:$0xff] %v5195_v35 }
 0x356   :  { %v3798_v28 = vunpack.i.l.bf16 %v3797_v36  ;;  %v3799_v33 = vunpack.i.h.bf16 %v3797_v36  ;;  %v673_v30 = vmax.f32 %v663_v21, 1e-30 }
 0x357   :  { %v660_v42 = vpop.xlane.xlu1 %659 }
 0x358   :  { %v3984_v13 = vpop.eup %3983  ;;  %1947 = vperm.xlu1 %3810, %v4606_v55   ;;  %1459 = vmatpush.msra.mxu1 %v3798_v28  ;;  %v672_v34 = vmax.f32 %v660_v42, 1e-30  ;;  %v5214_v42 = vld [vmem:[%s6676_s4] ss:$0 sm:$0xff] }
 0x359   :  { %v392_v18 = vmul.f32 %v3984_v13, %v5060_v31  ;;  %v3986_v40 = vpop.eup %3985  ;;  %v6748_v13 = vmov 12  }
 0x35a   :  { %1460 = vmatpush.msra.mxu1 %v3799_v33  ;;  %v3988_v26 = vpop.eup %3987  ;;  %3989 = vrcp.f32 %v672_v34  ;;  %v687_v38 = vmul.f32 %v3986_v40, %v5048_v32  ;;  %v5225_v40 = vld [vmem:[%s6677_s1 + $0x8] sm:$0xff] }
 0x35b   :  { %3551 = vmatmul.msk.f32.gmra.mxu2 %vm121_vm1, %v392_v18  ;;  %3566 = vmatmul.msk.f32.gmra.mxu3 %vm121_vm1, %v686_v12  ;;  %v393_v31 = vmul.f32 %v3988_v26, %v5057_v0 }
 0x35c   :  { %1606 = vperm.xlu2 %3816, %v4642_v58  }
 0x35d   :  { %v3802_v41 = vpop.permute.xlu2 %3801 }
 0x35e   :  { %v3803_v17 = vunpack.i.l.bf16 %v3802_v41  ;;  %v3804_v8 = vunpack.i.h.bf16 %v3802_v41 }
 0x35f   :  { %v368_v44 = vpop.xlane.xlu1 %367 }
 0x360   :  { %v378_v14 = vmax.f32 %v368_v44, 1e-30  ;;  %1951 = vperm.xlu1 %3810, %v4614_v56   ;;  %1108 = vmatpush.msrb.mxu0 %v3803_v17  ;;  %v3990_v48 = vpop.eup %3989 }
 0x361   :  { %v688_v22 = vmul.f32 %v3990_v48, %v5069_v59  ;;  %v1326_v59 = vsub.f32 %v4759_v47, %v4979_v9 }
 0x362   :  { %3991 = vrcp.f32 %v378_v14  ;;  %1109 = vmatpush.msrb.mxu0 %v3804_v8 }
 0x363   :  { %3552 = vmatmul.msk.f32.gmra.mxu2 %vm121_vm1, %v393_v31  ;;  %3567 = vmatmul.msk.f32.gmra.mxu3 %vm121_vm1, %v687_v38  ;;  %3993 = vrcp.f32 %v673_v30  ;;  %v1335_v20 = vmul.f32 1.442695, %v1326_v59  ;;  %v973_v31 = vsub.f32 %v4802_v2, %v5008_v51  ;;  %v6750_v2 = vld [vmem:[#allocation5_spill] sm:$0xff] }
 0x364   :  { %3824 = vrot.lane.b32.xlu2 %v5179_v61, %s4404_s12 }
 0x365   :  { %3834 = vset.pattern.permute.xlu2 %v6743_v50  ;;  %3995 = vpow2.f32 %v1335_v20  ;;  %v982_v48 = vmul.f32 1.442695, %v973_v31 }
 0x368   :  { %v3992_v0 = vpop.eup %3991  ;;  %1955 = vperm.xlu1 %3810, %v4634_v57   ;;  %v5187_v32 = vpop.permute.xlu0 %1602 }
 0x369   :  { %v394_v19 = vmul.f32 %v3992_v0, %v5079_v60  ;;  %v3994_v53 = vpop.eup %3993  ;;  %v5236_v0 = vperm.slane %v4713_v24, 6 }
 0x36a   :  { %v689_v15 = vmul.f32 %v3994_v53, %v5071_v62  ;;  %v1968_v62 = vadd.f32 %v5207_v25, %v4698_v10 }
 0x36b   :  { %3553 = vmatmul.msk.f32.gmra.mxu2 %vm121_vm1, %v394_v19  ;;  %3568 = vmatmul.msk.f32.gmra.mxu3 %vm121_vm1, %v688_v22  ;;  %v5217_v33 = vpop.eup %3995  ;;  %v2320_v51 = vadd.f32 %v5236_v0, %v6750_v2 }
 0x36c   :  { %v1984_v47 = vmul.f32 0.2, %v1968_v62  ;;  %vm1976_vm5 = vcmp.ge.f32.partialorder %v1968_v62, 0.0  ;;  %v1352_v18 = vsel %vm121_vm1, %v5217_v33, 0.0 }
 0x36d   :  { %v2336_v20 = vmul.f32 0.2, %v2320_v51  ;;  %vm2328_vm8 = vcmp.ge.f32.partialorder %v2320_v51, 0.0 }
 0x36e   :  { %v1992_v12 = vsel %vm1976_vm5, %v1968_v62, %v1984_v47 }
 0x36f   :  { %v5228_v41 = vadd.f32 %v5225_v40, %v1992_v12  ;;  %v5256_v12 = vld [vmem:[%s6677_s1] sm:$0xff] }
 0x370   :  { %3812 = vrot.lane.b32.xlu1 %v5195_v35, %s4404_s12  ;;  %v3807_v3 = vpop.permute.xlu0 %3806 }
 0x371   :  { %v3808_v36 = vunpack.i.l.bf16 %v3807_v3  ;;  %v3809_v28 = vunpack.i.h.bf16 %v3807_v3  ;;  %6749 = vst [vmem:[#allocation28_spill] sm:$0xff] %v5228_v41  ;;  %v2010_v44 = vsel %vm121_vm1, %v5228_v41, -inf }
 0x373   :  { %3569 = vmatmul.msk.f32.gmra.mxu3 %vm121_vm1, %v689_v15  ;;  %1461 = vmatpush.msra.mxu1 %v3808_v36 }
 0x375   :  { %1462 = vmatpush.msra.mxu1 %v3809_v28 }
 0x378   :  { %3819 = vrot.lane.b32.xlu1 %v5195_v35, %s4405_s13 }
 0x380   :  { %1959 = vperm.xlu1 %3810, %v4642_v58  }
 0x383   :  { %v441_v60 = vpop.f32.mrf.mxu2 }
 0x384   :  { %v442_v9 = vadd.f32 %v5214_v42, %v441_v60 }
 0x386   :  { %v473_v34 = vmin.f32 %v442_v9, 0.0  ;;  %vm465_vm6 = vcmp.gt.f32.partialorder %v442_v9, 0.0 }
 0x388   :  { %3833 = vset.pattern.permute.xlu1 %v6748_v13  ;;  %v481_v26 = vmul.f32 1.442695, %v473_v34  ;;  %v5245_v13 = vpop.permute.xlu1 %2657 }
 0x38a   :  { %3997 = vpow2.f32 %v481_v26 }
 0x38b   :  { %v444_v10 = vpop.f32.mrf.mxu2 }
 0x38c   :  { %v445_v17 = vadd.f32 %v5214_v42, %v444_v10 }
 0x38d   :  { %1353 = vadd.xlane.f32.xlu2 %v1352_v18 }
 0x38e   :  { %v474_v21 = vmin.f32 %v445_v17, 0.0  ;;  %vm466_vm9 = vcmp.gt.f32.partialorder %v445_v17, 0.0 }
 0x390   :  { %v483_v38 = vmul.f32 1.442695, %v474_v21  ;;  %v3998_v30 = vpop.eup %3997 }
 0x391   :  { %v3555_v53 = vadd.f32 -1.0, %v3998_v30 }
 0x393   :  { %v505_v15 = vsel %vm465_vm6, %v442_v9, %v3555_v53  ;;  %v2344_v9 = vsel %vm2328_vm8, %v2320_v51, %v2336_v20  ;;  %v6754_v53 = vld [vmem:[#allocation10_spill] sm:$0xff] }
 0x394   :  { %514 = vst.msk [vmem:[#allocation2] sm:$0xff] %vm513_vm7, %v505_v15  ;;  %v6755_v20 = vld [vmem:[#allocation6_spill] sm:$0xff] }
 0x395   :  { %2011 = vmax.xlane.f32.xlu2 %v2010_v44  ;;  %v6752_v44 = vmov 15  }
 0x396   :  { %v371_v14 = vpop.xlane.xlu2 %370 }
 0x397   :  { %v379_v8 = vmax.f32 %v371_v14, 1e-30 }
 0x399   :  { %3999 = vrcp.f32 %v379_v8 }
 0x39a   :  { %4001 = vpow2.f32 %v483_v38 }
 0x39b   :  { %4003 = vpow2.f32 %v982_v48 }
 0x39e   :  { %v666_v19 = vpop.xlane.xlu2 %665 }
 0x39f   :  { %v4000_v22 = vpop.eup %3999  ;;  %v674_v3 = vmax.f32 %v666_v19, 1e-30 }
 0x3a0   :  { %v395_v36 = vmul.f32 %v4000_v22, %v5115_v1  ;;  %v4002_v28 = vpop.eup %4001 }
 0x3a1   :  { %4005 = vrcp.f32 %v674_v3  ;;  %v5243_v59 = vpop.eup %4003  ;;  %v3556_v62 = vadd.f32 -1.0, %v4002_v28  ;;  %v1327_v3 = vsub.f32 %v6754_v53, %v4991_v45 }
 0x3a2   :  { %3554 = vmatmul.msk.f32.gmra.mxu2 %vm121_vm1, %v395_v36  ;;  %v999_v47 = vsel %vm121_vm1, %v5243_v59, 0.0  ;;  %v998_v34 = vpop.xlane.xlu1 %997  ;;  %v762_v31 = vpop.f32.mrf.mxu3 }
 0x3a3   :  { %v506_v18 = vsel %vm466_vm9, %v445_v17, %v3556_v62  ;;  %v1337_v51 = vmul.f32 1.442695, %v1327_v3 }
 0x3a4   :  { %515 = vst.msk [vmem:[#allocation2 + $0x8] sm:$0xff] %vm513_vm7, %v506_v18 }
 0x3a5   :  { %4007 = vpow2.f32 %v1337_v51 }
 0x3a6   :  { %v5266_v17 = vpop.xlane.xlu2 %1350 }
 0x3a7   :  { %v4006_v60 = vpop.eup %4005 }
 0x3a8   :  { %v690_v1 = vmul.f32 %v4006_v60, %v5128_v5  ;;  %v5259_v5 = vadd.f32 %v5256_v12, %v2344_v9 }
 0x3aa   :  { %1000 = vadd.xlane.f32.xlu1 %v999_v47  ;;  %3570 = vmatmul.msk.f32.gmra.mxu3 %vm121_vm1, %v690_v1  ;;  %v2360_v10 = vsel %vm121_vm1, %v5259_v5, -inf  ;;  %v5264_v26 = vpop.xlane.xlu1 %1655 }
 0x3ab   :  { %6751 = vst [vmem:[#allocation5_spill] sm:$0xff] %v5264_v26  ;;  %v5292_v9 = vpop.eup %4007 }
 0x3ad   :  { %2296 = vperm.xlu2 %3834, %v4598_v49  }
 0x3ae   :  { %v5270_v38 = vpop.xlane.xlu2 %1323 }
 0x3b2   :  { %2361 = vmax.xlane.f32.xlu1 %v2360_v10  ;;  %v1020_v10 = vmax.f32 %v998_v34, 1e-30 }
 0x3b4   :  { %v5282_v36 = vpop.f32.mrf.mxu3  ;;  %4009 = vrcp.f32 %v1020_v10 }
 0x3b5   :  { %2312 = vperm.xlu2 %3834, %v4642_v58  }
 0x3b6   :  { %v5284_v15 = vpop.permute.xlu2 %1590 }
 0x3ba   :  { %v4010_v35 = vpop.eup %4009 }
 0x3bd   :  { %3838 = vset.pattern.permute.xlu2 %v6752_v44 }
 0x3be   :  { %v5294_v45 = vpop.permute.xlu2 %1606 }
 0x3c2   :  { %v1936_v21 = vpop.permute.xlu1 %1935 }
 0x3c3   :  { %v1967_v14 = vadd.f32 %v5207_v25, %v1936_v21  ;;  %v6756_v21 = vld [vmem:[#allocation4_spill] sm:$0xff] }
 0x3c5   :  { %v1983_v8 = vmul.f32 0.2, %v1967_v14  ;;  %vm1975_vm10 = vcmp.ge.f32.partialorder %v1967_v14, 0.0 }
 0x3c7   :  { %v1991_v30 = vsel %vm1975_vm10, %v1967_v14, %v1983_v8  ;;  %v5300_v14 = vadd.f32 %v762_v31, %v6756_v21 }
 0x3c8   :  { %v5273_v48 = vadd.f32 %v5256_v12, %v1991_v30 }
 0x3c9   :  { %vm786_vm12 = vcmp.gt.f32.partialorder %v5300_v14, 0.0 }
 0x3ca   :  { %6753 = vst [vmem:[#allocation29_spill] sm:$0xff] %v5273_v48  ;;  %v5275_v19 = vpop.permute.xlu1 %1947  ;;  %v2007_v22 = vsel %vm121_vm1, %v5273_v48, -inf }
 0x3cb   :  { %1598 = vperm.xlu1 %3833, %v4614_v56   ;;  %2008 = vmax.xlane.f32.xlu0 %v2007_v22  ;;  %v1355_v22 = vsel %vm121_vm1, %v5292_v9, 0.0 }
 0x3ce   :  { %v447_v2 = vpop.f32.mrf.mxu2 }
 0x3cf   :  { %v448_v60 = vadd.f32 %v5214_v42, %v447_v2 }
 0x3d1   :  { %v475_v47 = vmin.f32 %v448_v60, 0.0  ;;  %vm467_vm11 = vcmp.gt.f32.partialorder %v448_v60, 0.0 }
 0x3d2   :  { %v5286_v28 = vpop.permute.xlu1 %1951 }
 0x3d3   :  { %1610 = vperm.xlu1 %3833, %v6755_v20   ;;  %v485_v8 = vmul.f32 1.442695, %v475_v47  ;;  %v3825_v47 = vpop.permute.xlu2 %3824 }
 0x3d5   :  { %4011 = vpow2.f32 %v485_v8  ;;  %v3826_v8 = vunpack.i.l.bf16 %v3825_v47 }
 0x3d6   :  { %v450_v62 = vpop.f32.mrf.mxu2  ;;  %v5290_v1 = vpop.f32.mrf.mxu3 }
 0x3d7   :  { %v5304_v30 = vadd.f32 %v5214_v42, %v450_v62 }
 0x3d9   :  { %v476_v34 = vmin.f32 %v5304_v30, 0.0  ;;  %vm468_vm13 = vcmp.gt.f32.partialorder %v5304_v30, 0.0 }
 0x3da   :  { %v5296_v18 = vpop.permute.xlu1 %1955 }
 0x3db   :  { %3836 = vset.pattern.permute.xlu1 %v6744_v54  ;;  %v794_v54 = vmin.f32 %v5300_v14, 0.0  ;;  %v487_v62 = vmul.f32 1.442695, %v476_v34  ;;  %v4012_v10 = vpop.eup %4011 }
 0x3dc   :  { %1963 = vperm.xlu1 %3836, %v6755_v20   ;;  %v3557_v34 = vadd.f32 -1.0, %v4012_v10 }
 0x3dd   :  { %v802_v51 = vmul.f32 1.442695, %v794_v54 }
 0x3de   :  { %v453_v53 = vpop.f32.mrf.mxu2  ;;  %1356 = vadd.xlane.f32.xlu2 %v1355_v22  ;;  %v771_v3 = vpop.f32.mrf.mxu3 }
 0x3df   :  { %2308 = vperm.xlu0 %3817, %v4634_v57   ;;  %v5313_v41 = vadd.f32 %v5214_v42, %v453_v53  ;;  %4013 = vpow2.f32 %v802_v51  ;;  %v3827_v53 = vunpack.i.h.bf16 %v3825_v47  ;;  %v507_v47 = vsel %vm467_vm11, %v448_v60, %v3557_v34 }
 0x3e0   :  { %4015 = vpow2.f32 %v487_v62  ;;  %516 = vst.msk [vmem:[#allocation2 + $0x10] sm:$0xff] %vm513_vm7, %v507_v47 }
 0x3e1   :  { %vm469_vm14 = vcmp.gt.f32.partialorder %v5313_v41, 0.0 }
 0x3e2   :  { %v3813_v31 = vpop.permute.xlu1 %3812 }
 0x3e3   :  { %v3814_v2 = vunpack.i.l.bf16 %v3813_v31  ;;  %v3815_v22 = vunpack.i.h.bf16 %v3813_v31 }
 0x3e4   :  { %3837 = vset.pattern.permute.xlu1 %v6743_v50  ;;  %v477_v50 = vmin.f32 %v5313_v41, 0.0 }
 0x3e5   :  { %1110 = vmatpush.msrb.mxu0 %v3814_v2  ;;  %v1036_v2 = vmul.f32 %v4010_v35, %v5136_v63  ;;  %v4014_v62 = vpop.eup %4013 }
 0x3e6   :  { %v5315_v48 = vpop.f32.mrf.mxu3  ;;  %v456_v54 = vpop.f32.mrf.mxu2  ;;  %v489_v51 = vmul.f32 1.442695, %v477_v50  ;;  %v3571_v35 = vadd.f32 -1.0, %v4014_v62  ;;  %v6757_v50 = vld [vmem:[#allocation11_spill] sm:$0xff] }
 0x3e7   :  { %1111 = vmatpush.msrb.mxu0 %v3815_v22  ;;  %3829 = vrot.lane.b32.xlu0 %v5179_v61, %s4405_s13  ;;  %v772_v22 = vadd.f32 %v771_v3, %v6756_v21  ;;  %v457_v26 = vadd.f32 %v5214_v42, %v456_v54  ;;  %v4016_v10 = vpop.eup %4015 }
 0x3e8   :  { %3835 = vset.pattern.permute.xlu0 %v6752_v44  ;;  %4017 = vpow2.f32 %v489_v51  ;;  %v826_v34 = vsel %vm786_vm12, %v5300_v14, %v3571_v35 }
 0x3e9   :  { %1112 = vmatpush.msrb.mxu0 %v3826_v8  ;;  %v797_v63 = vmin.f32 %v772_v22, 0.0  ;;  %v478_v3 = vmin.f32 %v457_v26, 0.0  ;;  %v3558_v8 = vadd.f32 -1.0, %v4016_v10  ;;  %vm789_vm15 = vcmp.gt.f32.partialorder %v772_v22, 0.0 }
 0x3ea   :  { %v3820_v31 = vpop.permute.xlu1 %3819  ;;  %vm470_vm0 = vcmp.gt.f32.partialorder %v457_v26, 0.0 }
 0x3eb   :  { %v3821_v6 = vunpack.i.l.bf16 %v3820_v31  ;;  %1113 = vmatpush.msrb.mxu0 %v3827_v53  ;;  %v3822_v44 = vunpack.i.h.bf16 %v3820_v31  ;;  %v491_v54 = vmul.f32 1.442695, %v478_v3  ;;  %v508_v51 = vsel %vm468_vm13, %v5304_v30, %v3558_v8 }
 0x3ec   :  { %3579 = vmatmul.msk.f32.vlgmr.msrb.gmra.mxu0 %vm121_vm1, %v1036_v2  ;;  %v974_v2 = vsub.f32 %v6757_v50, %v5014_v39  ;;  %517 = vst.msk [vmem:[#allocation2 + $0x18] sm:$0xff] %vm513_vm7, %v508_v51 }
 0x3ed   :  { %1463 = vmatpush.msra.mxu1 %v3821_v6  ;;  %v808_v6 = vmul.f32 1.442695, %v797_v63 }
 0x3ee   :  { %v5325_v37 = vpop.f32.mrf.mxu3  ;;  %v459_v53 = vpop.f32.mrf.mxu2  ;;  %v984_v39 = vmul.f32 1.442695, %v974_v2  ;;  %v6759_v2 = vld [vmem:[#allocation9_spill] sm:$0xff] }
 0x3ef   :  { %1464 = vmatpush.msra.mxu1 %v3822_v44  ;;  %v460_v60 = vadd.f32 %v5214_v42, %v459_v53  ;;  %v4018_v44 = vpop.eup %4017  ;;  %4019 = vpow2.f32 %v808_v6  ;;  %v6758_v53 = vld [vmem:[#allocation3_spill] sm:$0xff]  ;;  %v1615_v6 = vadd.f32 %v5123_v4, %v6759_v2 }
 0x3f0   :  { %4021 = vpow2.f32 %v491_v54  ;;  %v3559_v63 = vadd.f32 -1.0, %v4018_v44 }
 0x3f1   :  { %v479_v47 = vmin.f32 %v460_v60, 0.0  ;;  %4023 = vpow2.f32 %v984_v39  ;;  %v1631_v44 = vmul.f32 0.2, %v1615_v6  ;;  %vm1623_vm2 = vcmp.ge.f32.partialorder %v1615_v6, 0.0 }
 0x3f2   :  { %v509_v30 = vsel %vm469_vm14, %v5313_v41, %v3559_v63  ;;  %vm471_vm4 = vcmp.gt.f32.partialorder %v460_v60, 0.0  ;;  %vm866_vm14 = vcmask 130112  }
 0x3f3   :  { %v493_v14 = vmul.f32 1.442695, %v479_v47  ;;  %518 = vst.msk [vmem:[#allocation2 + $0x20] sm:$0xff] %vm513_vm7, %v509_v30 }
 0x3f5   :  { %v4020_v35 = vpop.eup %4019 }
 0x3f6   :  { %842 = vrot.lane.b32.xlu2 %v826_v34, %s4406_s19  ;;  %v780_v31 = vpop.f32.mrf.mxu3  ;;  %v4022_v8 = vpop.eup %4021  ;;  %v3574_v50 = vadd.f32 -1.0, %v4020_v35 }
 0x3f7   :  { %v781_v62 = vadd.f32 %v780_v31, %v6756_v21  ;;  %v5344_v54 = vpop.eup %4023  ;;  %v3560_v34 = vadd.f32 -1.0, %v4022_v8  ;;  %v5347_v31 = vperm.slane %v4713_v24, 7  ;;  %v6760_v24 = vld [vmem:[#allocation7_spill] sm:$0xff] }
 0x3f8   :  { %v1002_v41 = vsel %vm121_vm1, %v5344_v54, 0.0  ;;  %v829_v51 = vsel %vm789_vm15, %v772_v22, %v3574_v50  ;;  %v769_v22 = vadd.f32 %v5290_v1, %v6756_v21  ;;  %v778_v1 = vadd.f32 %v5325_v37, %v6756_v21 }
 0x3f9   :  { %v800_v10 = vmin.f32 %v781_v62, 0.0  ;;  %v510_v47 = vsel %vm470_vm0, %v457_v26, %v3560_v34  ;;  %vm792_vm3 = vcmp.gt.f32.partialorder %v781_v62, 0.0  ;;  %v766_v37 = vadd.f32 %v5282_v36, %v6756_v21 }
 0x3fa   :  { %519 = vst.msk [vmem:[#allocation2 + $0x28] sm:$0xff] %vm513_vm7, %v510_v47  ;;  %vm788_vm6 = vcmp.gt.f32.partialorder %v769_v22, 0.0  ;;  %v775_v36 = vadd.f32 %v5315_v48, %v6756_v21  ;;  %vm791_vm9 = vcmp.gt.f32.partialorder %v778_v1, 0.0  ;;  %v5391_v48 = vld [vmem:[%s6677_s1 + $0x10] sm:$0xff] }
 0x3fb   :  { %v814_v3 = vmul.f32 1.442695, %v800_v10  ;;  %vm787_vm10 = vcmp.gt.f32.partialorder %v766_v37, 0.0 }
 0x3fc   :  { %vm790_vm11 = vcmp.gt.f32.partialorder %v775_v36, 0.0 }
 0x3fd   :  { %4025 = vpow2.f32 %v814_v3  ;;  %v1639_v3 = vsel %vm1623_vm2, %v1615_v6, %v1631_v44  ;;  %v796_v6 = vmin.f32 %v769_v22, 0.0  ;;  %v799_v44 = vmin.f32 %v778_v1, 0.0 }
 0x3fe   :  { %2645 = vperm.xlu2 %3838, %v6758_v53   ;;  %4027 = vpow2.f32 %v493_v14  ;;  %v2673_v14 = vadd.f32 %v5347_v31, %v6760_v24  ;;  %v5356_v30 = vadd.f32 %v5225_v40, %v1639_v3 }
 0x400   :  { %v2689_v50 = vmul.f32 0.2, %v2673_v14  ;;  %vm2681_vm5 = vcmp.ge.f32.partialorder %v2673_v14, 0.0  ;;  %v1657_v2 = vsel %vm121_vm1, %v5356_v30, -inf }
 0x402   :  { %v2697_v34 = vsel %vm2681_vm5, %v2673_v14, %v2689_v50  ;;  %v6761_v50 = vld [vmem:[#allocation8_spill] sm:$0xff] }
 0x403   :  { %v4026_v39 = vpop.eup %4025 }
 0x404   :  { %v4028_v10 = vpop.eup %4027  ;;  %v3577_v63 = vadd.f32 -1.0, %v4026_v39  ;;  %v812_v39 = vmul.f32 1.442695, %v799_v44 }
 0x405   :  { %v3561_v35 = vadd.f32 -1.0, %v4028_v10 }
 0x406   :  { %1003 = vadd.xlane.f32.xlu1 %v1002_v41  ;;  %848 = vrot.lane.b32.xlu2 %v829_v51, %s4406_s19  ;;  %v832_v8 = vsel %vm792_vm3, %v781_v62, %v3577_v63  ;;  %v5365_v41 = vadd.f32 %v5256_v12, %v2697_v34  ;;  %v806_v51 = vmul.f32 1.442695, %v796_v6  ;;  %v5369_v62 = vpop.permute.xlu1 %1959  ;;  %v5383_v34 = vpop.xlane.xlu2 %1353 }
 0x407   :  { %v511_v26 = vsel %vm471_vm4, %v460_v60, %v3561_v35  ;;  %v795_v35 = vmin.f32 %v766_v37, 0.0 }
 0x408   :  { %520 = vst.msk [vmem:[#allocation2 + $0x30] sm:$0xff] %vm513_vm7, %v511_v26  ;;  %v2713_v60 = vsel %vm121_vm1, %v5365_v41, -inf  ;;  %4029 = vpow2.f32 %v806_v51  ;;  %v1969_v26 = vadd.f32 %v5207_v25, %v6761_v50 }
 0x409   :  { %v804_v6 = vmul.f32 1.442695, %v795_v35 }
 0x40a   :  { %vm1977_vm8 = vcmp.ge.f32.partialorder %v1969_v26, 0.0 }
 0x40e   :  { %854 = vrot.lane.b32.xlu2 %v832_v8, %s4406_s19  ;;  %v4030_v63 = vpop.eup %4029 }
 0x40f   :  { %v3573_v12 = vadd.f32 -1.0, %v4030_v63 }
 0x411   :  { %1658 = vmax.xlane.f32.xlu0 %v1657_v2  ;;  %v828_v24 = vsel %vm788_vm6, %v769_v22, %v3573_v12  ;;  %v1985_v22 = vmul.f32 0.2, %v1969_v26 }
 0x413   :  { %v1993_v44 = vsel %vm1977_vm8, %v1969_v26, %v1985_v22 }
 0x419   :  { %2714 = vmax.xlane.f32.xlu0 %v2713_v60  ;;  %v798_v60 = vmin.f32 %v775_v36, 0.0 }
 0x41b   :  { %v810_v63 = vmul.f32 1.442695, %v798_v60 }
 0x41d   :  { %v1001_v47 = vpop.xlane.xlu1 %1000 }
 0x41e   :  { %v1021_v10 = vmax.f32 %v1001_v47, 1e-30 }
 0x41f   :  { %2292 = vperm.xlu1 %3837, %v6758_v53  }
 0x420   :  { %4031 = vrcp.f32 %v1021_v10  ;;  %v5394_v10 = vadd.f32 %v5391_v48, %v1993_v44 }
 0x421   :  { %4033 = vpow2.f32 %v812_v39 }
 0x422   :  { %4035 = vpow2.f32 %v804_v6 }
 0x423   :  { %4037 = vpow2.f32 %v810_v63 }
 0x425   :  { %v462_v2 = vpop.f32.mrf.mxu2 }
 0x426   :  { %v4032_v3 = vpop.eup %4031  ;;  %v463_v51 = vadd.f32 %v5214_v42, %v462_v2 }
 0x427   :  { %v4034_v14 = vpop.eup %4033  ;;  %846 = vrot.lane.b32.xlu1 %v828_v24, %s4406_s19  ;;  %v1037_v8 = vmul.f32 %v4032_v3, %v5243_v59  ;;  %v2013_v3 = vsel %vm121_vm1, %v5394_v10, -inf }
 0x428   :  { %v3576_v53 = vadd.f32 -1.0, %v4034_v14  ;;  %v480_v47 = vmin.f32 %v463_v51, 0.0  ;;  %vm472_vm12 = vcmp.gt.f32.partialorder %v463_v51, 0.0 }
 0x429   :  { %3580 = vmatmul.msk.f32.gmra.mxu0 %vm121_vm1, %v1037_v8 }
 0x42a   :  { %v831_v59 = vsel %vm791_vm9, %v778_v1, %v3576_v53  ;;  %v5397_v1 = vpop.xlane.xlu2 %2011  ;;  %v495_v12 = vmul.f32 1.442695, %v480_v47  ;;  %v1373_v47 = vmax.f32 %v5266_v17, 1e-30 }
 0x42c   :  { %4039 = vpow2.f32 %v495_v12 }
 0x42d   :  { %2649 = vperm.xlu0 %3835, %v4598_v49   ;;  %v783_v39 = vpop.f32.mrf.mxu3  ;;  %v4036_v49 = vpop.eup %4035 }
 0x42e   :  { %v784_v42 = vadd.f32 %v783_v39, %v6756_v21  ;;  %v3572_v14 = vadd.f32 -1.0, %v4036_v49  ;;  %v4038_v50 = vpop.eup %4037  ;;  %v5417_v49 = vpop.xlane.xlu1 %2361 }
 0x42f   :  { %852 = vrot.lane.b32.xlu1 %v831_v59, %s4406_s19  ;;  %v3575_v53 = vadd.f32 -1.0, %v4038_v50 }
 0x430   :  { %v801_v24 = vmin.f32 %v784_v42, 0.0  ;;  %v827_v8 = vsel %vm787_vm10, %v766_v37, %v3572_v14  ;;  %vm793_vm13 = vcmp.gt.f32.partialorder %v784_v42, 0.0 }
 0x431   :  { %v830_v6 = vsel %vm790_vm11, %v775_v36, %v3575_v53 }
 0x432   :  { %v816_v35 = vmul.f32 1.442695, %v801_v24  ;;  %v4040_v21 = vpop.eup %4039  ;;  %v5403_v26 = vpop.permute.xlu2 %2296 }
 0x433   :  { %v3562_v2 = vadd.f32 -1.0, %v4040_v21 }
 0x434   :  { %4041 = vpow2.f32 %v816_v35 }
 0x435   :  { %2665 = vperm.xlu0 %3835, %v4642_v58   ;;  %v5405_v58 = vpop.xlane.xlu0 %970  ;;  %v512_v59 = vsel %vm472_vm12, %v463_v51, %v3562_v2  ;;  %4043 = vrcp.f32 %v1373_v47  ;;  %v1374_v51 = vmax.f32 %v5383_v34, 1e-30 }
 0x436   :  { %521 = vst.msk [vmem:[#allocation2 + $0x38] sm:$0xff] %vm513_vm7, %v512_v59 }
 0x437   :  { %2014 = vmax.xlane.f32.xlu2 %v2013_v3  ;;  %4045 = vrcp.f32 %v1374_v51 }
 0x43a   :  { %v4042_v22 = vpop.eup %4041  ;;  %v5409_v60 = vpop.permute.xlu2 %2312 }
 0x43b   :  { %v3578_v37 = vadd.f32 -1.0, %v4042_v22  ;;  %v4044_v24 = vpop.eup %4043  ;;  %v1616_v22 = vadd.f32 %v5123_v4, %v5284_v15 }
 0x43c   :  { %v1389_v17 = vmul.f32 %v4044_v24, %v5142_v16 }
 0x43d   :  { %844 = vrot.lane.b32.xlu0 %v827_v8, %s4406_s19  ;;  %v833_v39 = vsel %vm793_vm13, %v784_v42, %v3578_v37  ;;  %v5422_v35 = vpop.permute.xlu1 %1598  ;;  %v4046_v21 = vpop.eup %4045  ;;  %vm1624_vm15 = vcmp.ge.f32.partialorder %v1616_v22, 0.0 }
 0x43e   :  { %v5411_v44 = vpop.xlane.xlu0 %2008  ;;  %v1390_v2 = vmul.f32 %v4046_v21, %v5217_v33  ;;  %v1632_v33 = vmul.f32 0.2, %v1616_v22 }
 0x445   :  { %850 = vrot.lane.b32.xlu0 %v830_v6, %s4406_s19  ;;  %v5429_v16 = vpop.permute.xlu1 %1610 }
 0x44d   :  { %856 = vrot.lane.b32.xlu0 %v833_v39, %s4406_s19 }
 0x44e   :  { %v5442_v24 = vpop.permute.xlu1 %1963 }
 0x451   :  { %v1357_v63 = vpop.xlane.xlu2 %1356  ;;  %v5415_v36 = vpop.permute.xlu0 %2308 }
 0x452   :  { %v1375_v8 = vmax.f32 %v1357_v63, 1e-30  ;;  %v6762_v63 = vld [vmem:[#allocation13_spill] sm:$0xff] }
 0x453   :  { %v1328_v15 = vsub.f32 %v6762_v63, %v5023_v7  ;;  %v2322_v7 = vadd.f32 %v5236_v0, %v5403_v26 }
 0x454   :  { %4047 = vrcp.f32 %v1375_v8 }
 0x455   :  { %v2338_v21 = vmul.f32 0.2, %v2322_v7  ;;  %vm2330_vm0 = vcmp.ge.f32.partialorder %v2322_v7, 0.0 }
 0x459   :  { %v843_v12 = vpop.permute.xlu2 %842  ;;  %v3830_v3 = vpop.permute.xlu0 %3829 }
 0x45a   :  { %867 = vst.msk [vmem:[#allocation2] sm:$0xff] %vm866_vm14, %v843_v12  ;;  %v3831_v14 = vunpack.i.l.bf16 %v3830_v3  ;;  %v3832_v42 = vunpack.i.h.bf16 %v3830_v3  ;;  %v4048_v47 = vpop.eup %4047  ;;  %v1640_v12 = vsel %vm1624_vm15, %v1616_v22, %v1632_v33  ;;  %v1339_v3 = vmul.f32 1.442695, %v1328_v15 }
 0x45b   :  { %v1391_v51 = vmul.f32 %v4048_v47, %v5292_v9 }
 0x45c   :  { %1465 = vmatpush.msra.mxu1 %v3831_v14  ;;  %4049 = vpow2.f32 %v1339_v3 }
 0x45e   :  { %1466 = vmatpush.msra.mxu1 %v3832_v42  ;;  %v5446_v42 = vadd.f32 %v5391_v48, %v1640_v12 }
 0x45f   :  { %3595 = vmatmul.msk.f32.vlgmr.msra.gmra.mxu1 %vm121_vm1, %v1389_v17 }
 0x460   :  { %v1660_v17 = vsel %vm121_vm1, %v5446_v42, -inf }
 0x461   :  { %v2646_v50 = vpop.permute.xlu2 %2645 }
 0x462   :  { %v2674_v34 = vadd.f32 %v5347_v31, %v2646_v50  ;;  %v5452_v50 = vpop.eup %4049 }
 0x464   :  { %vm2682_vm7 = vcmp.ge.f32.partialorder %v2674_v34, 0.0  ;;  %v2690_v53 = vmul.f32 0.2, %v2674_v34 }
 0x466   :  { %v2698_v6 = vsel %vm2682_vm7, %v2674_v34, %v2690_v53  ;;  %v1358_v34 = vsel %vm121_vm1, %v5452_v50, 0.0  ;;  %v1970_v53 = vadd.f32 %v5207_v25, %v5275_v19 }
 0x467   :  { %3596 = vmatmul.msk.f32.gmra.mxu1 %vm121_vm1, %v1390_v2  ;;  %v5433_v59 = vadd.f32 %v5225_v40, %v2698_v6  ;;  %v2346_v2 = vsel %vm2330_vm0, %v2322_v7, %v2338_v21 }
 0x468   :  { %v5460_v26 = vadd.f32 %v5391_v48, %v2346_v2  ;;  %v1986_v22 = vmul.f32 0.2, %v1970_v53  ;;  %vm1978_vm2 = vcmp.ge.f32.partialorder %v1970_v53, 0.0 }
 0x469   :  { %v849_v37 = vpop.permute.xlu2 %848  ;;  %v2716_v39 = vsel %vm121_vm1, %v5433_v59, -inf }
 0x46a   :  { %870 = vst.msk [vmem:[#allocation2 + $0x18] sm:$0xff] %vm866_vm14, %v849_v37  ;;  %2717 = vmax.xlane.f32.xlu2 %v2716_v39  ;;  %v2366_v39 = vsel %vm121_vm1, %v5460_v26, -inf  ;;  %v1994_v47 = vsel %vm1978_vm2, %v1970_v53, %v1986_v22 }
 0x46f   :  { %3597 = vmatmul.msk.f32.gmra.mxu1 %vm121_vm1, %v1391_v51 }
 0x471   :  { %v855_v14 = vpop.permute.xlu2 %854 }
 0x472   :  { %873 = vst.msk [vmem:[#allocation2 + $0x30] sm:$0xff] %vm866_vm14, %v855_v14 }
 0x477   :  { %1661 = vmax.xlane.f32.xlu0 %v1660_v17 }
 0x479   :  { %v1004_v9 = vpop.xlane.xlu1 %1003 }
 0x47a   :  { %v1022_v8 = vmax.f32 %v1004_v9, 1e-30  ;;  %v6763_v9 = vld [vmem:[#allocation12_spill] sm:$0xff] }
 0x47c   :  { %4051 = vrcp.f32 %v1022_v8  ;;  %v976_v8 = vsub.f32 %v6763_v9, %v5028_v23  ;;  %v5519_v9 = vld [vmem:[%s6677_s1 + $0x20] sm:$0xff] }
 0x47e   :  { %v988_v2 = vmul.f32 1.442695, %v976_v8 }
 0x47f   :  { %1359 = vadd.xlane.f32.xlu0 %v1358_v34 }
 0x480   :  { %4053 = vpow2.f32 %v988_v2 }
 0x482   :  { %v4052_v6 = vpop.eup %4051  ;;  %2661 = vperm.xlu2 %3838, %v4634_v57   ;;  %v5470_v57 = vld [vmem:[%s6677_s1 + $0x18] sm:$0xff] }
 0x483   :  { %v1038_v37 = vmul.f32 %v4052_v6, %v5344_v54  ;;  %v5473_v19 = vadd.f32 %v5470_v57, %v1994_v47 }
 0x484   :  { %v5475_v33 = vpop.xlane.xlu0 %1658 }
 0x485   :  { %3581 = vmatmul.msk.f32.gmra.mxu0 %vm121_vm1, %v1038_v37  ;;  %v2016_v54 = vsel %vm121_vm1, %v5473_v19, -inf }
 0x487   :  { %2367 = vmax.xlane.f32.xlu0 %v2366_v39 }
 0x48a   :  { %2669 = vperm.xlu2 %3838, %v6755_v20  }
 0x48c   :  { %v5480_v3 = vpop.xlane.xlu0 %2714 }
 0x48f   :  { %2017 = vmax.xlane.f32.xlu0 %v2016_v54  ;;  %v1618_v54 = vadd.f32 %v5123_v4, %v5422_v35 }
 0x491   :  { %v2293_v63 = vpop.permute.xlu1 %2292  ;;  %vm1626_vm6 = vcmp.ge.f32.partialorder %v1618_v54, 0.0 }
 0x492   :  { %v2321_v15 = vadd.f32 %v5236_v0, %v2293_v63 }
 0x494   :  { %vm2329_vm3 = vcmp.ge.f32.partialorder %v2321_v15, 0.0  ;;  %v2337_v51 = vmul.f32 0.2, %v2321_v15 }
 0x496   :  { %v2345_v12 = vsel %vm2329_vm3, %v2321_v15, %v2337_v51  ;;  %v5503_v15 = vpop.eup %4053 }
 0x497   :  { %v5483_v14 = vadd.f32 %v5225_v40, %v2345_v12  ;;  %v1617_v40 = vadd.f32 %v5123_v4, %v5102_v27  ;;  %v1634_v27 = vmul.f32 0.2, %v1618_v54  ;;  %v1008_v12 = vsel %vm121_vm1, %v5503_v15, 0.0 }
 0x499   :  { %v847_v17 = vpop.permute.xlu1 %846  ;;  %v2363_v7 = vsel %vm121_vm1, %v5483_v14, -inf  ;;  %v1633_v39 = vmul.f32 0.2, %v1617_v40  ;;  %vm1625_vm5 = vcmp.ge.f32.partialorder %v1617_v40, 0.0  ;;  %v1642_v35 = vsel %vm1626_vm6, %v1618_v54, %v1634_v27 }
 0x49a   :  { %869 = vst.msk [vmem:[#allocation2 + $0x10] sm:$0xff] %vm866_vm14, %v847_v17  ;;  %2364 = vmax.xlane.f32.xlu1 %v2363_v7  ;;  %v2676_v17 = vadd.f32 %v5347_v31, %v5104_v43  ;;  %v5522_v8 = vadd.f32 %v5519_v9, %v1642_v35 }
 0x49b   :  { %v1641_v63 = vsel %vm1625_vm5, %v1617_v40, %v1633_v39  ;;  %v2677_v39 = vadd.f32 %v5347_v31, %v5245_v13  ;;  %v1620_v13 = vadd.f32 %v5123_v4, %v5294_v45 }
 0x49c   :  { %vm2684_vm8 = vcmp.ge.f32.partialorder %v2676_v17, 0.0 }
 0x49d   :  { %v2693_v54 = vmul.f32 0.2, %v2677_v39  ;;  %vm2685_vm10 = vcmp.ge.f32.partialorder %v2677_v39, 0.0  ;;  %vm1628_vm11 = vcmp.ge.f32.partialorder %v1620_v13, 0.0 }
 0x49f   :  { %v2650_v21 = vpop.permute.xlu0 %2649  ;;  %v2701_v27 = vsel %vm2685_vm10, %v2677_v39, %v2693_v54 }
 0x4a0   :  { %v2675_v34 = vadd.f32 %v5347_v31, %v2650_v21  ;;  %v2692_v21 = vmul.f32 0.2, %v2676_v17 }
 0x4a1   :  { %v853_v53 = vpop.permute.xlu1 %852 }
 0x4a2   :  { %v2691_v6 = vmul.f32 0.2, %v2675_v34  ;;  %872 = vst.msk [vmem:[#allocation2 + $0x28] sm:$0xff] %vm866_vm14, %v853_v53  ;;  %vm2683_vm4 = vcmp.ge.f32.partialorder %v2675_v34, 0.0  ;;  %v1619_v53 = vadd.f32 %v5123_v4, %v5187_v32 }
 0x4a4   :  { %v2699_v22 = vsel %vm2683_vm4, %v2675_v34, %v2691_v6  ;;  %v1666_v34 = vsel %vm121_vm1, %v5522_v8, -inf  ;;  %v1635_v6 = vmul.f32 0.2, %v1619_v53  ;;  %vm1627_vm9 = vcmp.ge.f32.partialorder %v1619_v53, 0.0 }
 0x4a5   :  { %v5495_v37 = vadd.f32 %v5391_v48, %v2699_v22  ;;  %v5506_v48 = vadd.f32 %v5470_v57, %v1641_v63 }
 0x4a6   :  { %v1643_v32 = vsel %vm1627_vm9, %v1619_v53, %v1635_v6  ;;  %v6767_v53 = vld [vmem:[#allocation17_spill] sm:$0xff] }
 0x4a7   :  { %v5497_v47 = vpop.permute.xlu0 %2665  ;;  %v2719_v23 = vsel %vm121_vm1, %v5495_v37, -inf  ;;  %6764 = vst [vmem:[#allocation10_spill] sm:$0xff] %v5506_v48  ;;  %v1663_v7 = vsel %vm121_vm1, %v5506_v48, -inf }
 0x4a8   :  { %2720 = vmax.xlane.f32.xlu0 %v2719_v23 }
 0x4af   :  { %v845_v51 = vpop.permute.xlu0 %844 }
 0x4b0   :  { %868 = vst.msk [vmem:[#allocation2 + $0x8] sm:$0xff] %vm866_vm14, %v845_v51  ;;  %1009 = vadd.xlane.f32.xlu0 %v1008_v12  ;;  %v1636_v51 = vmul.f32 0.2, %v1620_v13 }
 0x4b2   :  { %v1644_v35 = vsel %vm1628_vm11, %v1620_v13, %v1636_v51  ;;  %v1971_v13 = vadd.f32 %v5207_v25, %v5286_v28 }
 0x4b3   :  { %2300 = vperm.xlu1 %3837, %v4606_v55   ;;  %1664 = vmax.xlane.f32.xlu2 %v1663_v7  ;;  %v2700_v55 = vsel %vm2684_vm8, %v2676_v17, %v2692_v21  ;;  %v1973_v17 = vadd.f32 %v5207_v25, %v5369_v62  ;;  %v5561_v7 = vld [vmem:[%s6677_s1 + $0x30] sm:$0xff]  ;;  %v975_v62 = vsub.f32 %v6767_v53, %v5030_v29 }
 0x4b4   :  { %v5531_v2 = vadd.f32 %v5470_v57, %v2700_v55  ;;  %v5564_v45 = vadd.f32 %v5561_v7, %v1644_v35  ;;  %v1987_v51 = vmul.f32 0.2, %v1971_v13  ;;  %vm1979_vm13 = vcmp.ge.f32.partialorder %v1971_v13, 0.0 }
 0x4b5   :  { %v1989_v21 = vmul.f32 0.2, %v1973_v17  ;;  %vm1981_vm12 = vcmp.ge.f32.partialorder %v1973_v17, 0.0  ;;  %v986_v6 = vmul.f32 1.442695, %v975_v62 }
 0x4b6   :  { %6765 = vst [vmem:[#allocation6_spill] sm:$0xff] %v5531_v2  ;;  %v2722_v22 = vsel %vm121_vm1, %v5531_v2, -inf  ;;  %v1995_v28 = vsel %vm1979_vm13, %v1971_v13, %v1987_v51  ;;  %v6774_v13 = vld [vmem:[#allocation18_spill] sm:$0xff] }
 0x4b7   :  { %v851_v43 = vpop.permute.xlu0 %850  ;;  %4055 = vpow2.f32 %v986_v6  ;;  %v5594_v53 = vadd.f32 %v5519_v9, %v1995_v28 }
 0x4b8   :  { %871 = vst.msk [vmem:[#allocation2 + $0x20] sm:$0xff] %vm866_vm14, %v851_v43  ;;  %1667 = vmax.xlane.f32.xlu0 %v1666_v34  ;;  %v1672_v43 = vsel %vm121_vm1, %v5564_v45, -inf  ;;  %v1997_v34 = vsel %vm1981_vm12, %v1973_v17, %v1989_v21  ;;  %v6771_v21 = vld [vmem:[#allocation19_spill] sm:$0xff] }
 0x4b9   :  { %v5571_v55 = vadd.f32 %v5561_v7, %v1997_v34  ;;  %v2019_v6 = vsel %vm121_vm1, %v5594_v53, -inf }
 0x4bb   :  { %2304 = vperm.xlu1 %3837, %v4614_v56   ;;  %v5542_v56 = vld [vmem:[%s6677_s1 + $0x28] sm:$0xff]  ;;  %6768 = vst [vmem:[#allocation11_spill] sm:$0xff] %v5571_v55 }
 0x4bc   :  { %v5545_v23 = vadd.f32 %v5542_v56, %v1643_v32 }
 0x4bd   :  { %v5577_v54 = vpop.eup %4055 }
 0x4be   :  { %v1669_v63 = vsel %vm121_vm1, %v5545_v23, -inf  ;;  %v1005_v29 = vsel %vm121_vm1, %v5577_v54, 0.0 }
 0x4bf   :  { %v857_v40 = vpop.permute.xlu0 %856 }
 0x4c0   :  { %874 = vst.msk [vmem:[#allocation2 + $0x38] sm:$0xff] %vm866_vm14, %v857_v40  ;;  %2723 = vmax.xlane.f32.xlu0 %v2722_v22  ;;  %v2025_v40 = vsel %vm121_vm1, %v5571_v55, -inf  ;;  %v6769_v22 = vld [vmem:[#allocation14_spill] sm:$0xff] }
 0x4c1   :  { %v1329_v39 = vsub.f32 %v6769_v22, %v5044_v11  ;;  %v6770_v11 = vld [vmem:[#allocation20_spill] sm:$0xff]  ;;  %v1972_v22 = vadd.f32 %v5207_v25, %v5296_v18 }
 0x4c2   :  { %v1330_v17 = vsub.f32 %v6770_v11, %v5158_v52  ;;  %v6772_v52 = vld [vmem:[#allocation24_spill] sm:$0xff] }
 0x4c3   :  { %2316 = vperm.xlu1 %3837, %v6755_v20   ;;  %v5552_v20 = vadd.f32 %v5519_v9, %v2701_v27  ;;  %v1341_v32 = vmul.f32 1.442695, %v1329_v39  ;;  %vm1980_vm14 = vcmp.ge.f32.partialorder %v1972_v22, 0.0 }
 0x4c4   :  { %v1343_v34 = vmul.f32 1.442695, %v1330_v17 }
 0x4c5   :  { %6766 = vst [vmem:[#allocation4_spill] sm:$0xff] %v5552_v20  ;;  %v2725_v12 = vsel %vm121_vm1, %v5552_v20, -inf  ;;  %4057 = vpow2.f32 %v1341_v32  ;;  %v1988_v32 = vmul.f32 0.2, %v1972_v22 }
 0x4c8   :  { %1670 = vmax.xlane.f32.xlu0 %v1669_v63 }
 0x4cb   :  { %v5585_v27 = vpop.eup %4057 }
 0x4d0   :  { %2726 = vmax.xlane.f32.xlu0 %v2725_v12 }
 0x4d8   :  { %1673 = vmax.xlane.f32.xlu0 %v1672_v43  ;;  %v1361_v43 = vsel %vm121_vm1, %v5585_v27, 0.0 }
 0x4e0   :  { %2026 = vmax.xlane.f32.xlu0 %v2025_v40 }
 0x4ea   :  { %v5579_v63 = vpop.xlane.xlu0 %1661 }
 0x4ed   :  { %1006 = vadd.xlane.f32.xlu1 %v1005_v29  ;;  %v6773_v29 = vld [vmem:[#allocation23_spill] sm:$0xff] }
 0x4ee   :  { %v1331_v51 = vsub.f32 %v6774_v13, %v6773_v29  ;;  %v6775_v29 = vld [vmem:[#allocation21_spill] sm:$0xff]  ;;  %v6776_v13 = vld [vmem:[#allocation15_spill] sm:$0xff] }
 0x4f0   :  { %v1345_v11 = vmul.f32 1.442695, %v1331_v51  ;;  %v977_v51 = vsub.f32 %v6776_v13, %v6775_v29  ;;  %v6779_v13 = vld [vmem:[#allocation22_spill] sm:$0xff] }
 0x4f2   :  { %v1360_v12 = vpop.xlane.xlu0 %1359 }
 0x4f3   :  { %v1376_v35 = vmax.f32 %v1360_v12, 1e-30 }
 0x4f4   :  { %3845 = vrot.lane.b32.xlu0 %v6771_v21, %s4407_s28 }
 0x4f5   :  { %4059 = vrcp.f32 %v1376_v35  ;;  %1362 = vadd.xlane.f32.xlu1 %v1361_v43 }
 0x4f6   :  { %4061 = vpow2.f32 %v1343_v34 }
 0x4f7   :  { %4063 = vpow2.f32 %v1345_v11 }
 0x4fa   :  { %v5615_v17 = vpop.xlane.xlu0 %2367 }
 0x4fb   :  { %v4060_v62 = vpop.eup %4059 }
 0x4fc   :  { %3850 = vrot.lane.b32.xlu0 %v6772_v52, %s4408_s29  ;;  %v1392_v40 = vmul.f32 %v4060_v62, %v5452_v50  ;;  %v5604_v39 = vpop.eup %4061  ;;  %v1996_v50 = vsel %vm1980_vm14, %v1972_v22, %v1988_v32 }
 0x4fd   :  { %2020 = vmax.xlane.f32.xlu1 %v2019_v6  ;;  %v1364_v12 = vsel %vm121_vm1, %v5604_v39, 0.0  ;;  %v5613_v18 = vadd.f32 %v5542_v56, %v1996_v50  ;;  %v5619_v43 = vpop.eup %4063 }
 0x4fe   :  { %3598 = vmatmul.msk.f32.gmra.mxu1 %vm121_vm1, %v1392_v40  ;;  %v1367_v34 = vsel %vm121_vm1, %v5619_v43, 0.0  ;;  %v2326_v40 = vadd.f32 %v5236_v0, %v5409_v60 }
 0x4ff   :  { %v2022_v35 = vsel %vm121_vm1, %v5613_v18, -inf }
 0x500   :  { %v2342_v22 = vmul.f32 0.2, %v2326_v40  ;;  %vm2334_vm7 = vcmp.ge.f32.partialorder %v2326_v40, 0.0 }
 0x502   :  { %v5621_v28 = vpop.xlane.xlu0 %2017 }
 0x504   :  { %3855 = vrot.lane.b32.xlu0 %v6772_v52, %s4407_s28 }
 0x505   :  { %1365 = vadd.xlane.f32.xlu1 %v1364_v12  ;;  %v2384_v12 = vsub.f32 %v5259_v5, %v5417_v49 }
 0x507   :  { %v2392_v20 = vmul.f32 1.442695, %v2384_v12 }
 0x50d   :  { %2023 = vmax.xlane.f32.xlu1 %v2022_v35  ;;  %v5627_v6 = vpop.xlane.xlu1 %2364  ;;  %v2350_v35 = vsel %vm2334_vm7, %v2326_v40, %v2342_v22 }
 0x50e   :  { %v5639_v60 = vadd.f32 %v5561_v7, %v2350_v35 }
 0x510   :  { %6777 = vst [vmem:[#allocation3_spill] sm:$0xff] %v5639_v60 }
 0x515   :  { %1368 = vadd.xlane.f32.xlu1 %v1367_v34  ;;  %v990_v34 = vmul.f32 1.442695, %v977_v51  ;;  %v6780_v51 = vld [vmem:[#allocation16_spill] sm:$0xff] }
 0x516   :  { %v978_v12 = vsub.f32 %v6780_v51, %v6779_v13  ;;  %v2325_v51 = vadd.f32 %v5236_v0, %v5415_v36 }
 0x517   :  { %4065 = vpow2.f32 %v990_v34 }
 0x518   :  { %4067 = vpow2.f32 %v2392_v20  ;;  %vm2333_vm2 = vcmp.ge.f32.partialorder %v2325_v51, 0.0 }
 0x51b   :  { %v5625_v62 = vpop.xlane.xlu0 %2720 }
 0x523   :  { %v5631_v32 = vpop.xlane.xlu0 %1009 }
 0x525   :  { %v2301_v50 = vpop.permute.xlu1 %2300 }
 0x526   :  { %v2323_v11 = vadd.f32 %v5236_v0, %v2301_v50 }
 0x528   :  { %vm2331_vm15 = vcmp.ge.f32.partialorder %v2323_v11, 0.0  ;;  %v2339_v55 = vmul.f32 0.2, %v2323_v11 }
 0x52a   :  { %v2347_v2 = vsel %vm2331_vm15, %v2323_v11, %v2339_v55  ;;  %v2378_v55 = vsel %vm121_vm1, %v5639_v60, -inf }
 0x52b   :  { %v5642_v48 = vadd.f32 %v5470_v57, %v2347_v2  ;;  %v5644_v29 = vpop.xlane.xlu0 %1667  ;;  %v5653_v57 = vpop.xlane.xlu2 %2014 }
 0x52c   :  { %v5655_v2 = vpop.eup %4065 }
 0x52d   :  { %v2305_v5 = vpop.permute.xlu1 %2304  ;;  %v2369_v49 = vsel %vm121_vm1, %v5642_v48, -inf  ;;  %v5657_v20 = vpop.eup %4067  ;;  %v1011_v50 = vsel %vm121_vm1, %v5655_v2, 0.0 }
 0x52e   :  { %v2324_v40 = vadd.f32 %v5236_v0, %v2305_v5  ;;  %3840 = vrot.lane.b32.xlu1 %v6771_v21, %s4408_s29  ;;  %2370 = vmax.xlane.f32.xlu2 %v2369_v49  ;;  %6778 = vst [vmem:[#allocation9_spill] sm:$0xff] %v5657_v20  ;;  %v2408_v35 = vsel %vm121_vm1, %v5657_v20, 0.0  ;;  %v992_v5 = vmul.f32 1.442695, %v978_v12 }
 0x52f   :  { %2379 = vmax.xlane.f32.xlu0 %v2378_v55 }
 0x530   :  { %v2340_v22 = vmul.f32 0.2, %v2324_v40  ;;  %vm2332_vm0 = vcmp.ge.f32.partialorder %v2324_v40, 0.0  ;;  %4069 = vpow2.f32 %v992_v5 }
 0x532   :  { %v2348_v34 = vsel %vm2332_vm0, %v2324_v40, %v2340_v22  ;;  %v2341_v40 = vmul.f32 0.2, %v2325_v51  ;;  %vm1219_vm0 = vcmask 195712  }
 0x533   :  { %v5663_v11 = vpop.xlane.xlu0 %2723  ;;  %v5667_v49 = vpop.xlane.xlu2 %2717  ;;  %v5670_v55 = vadd.f32 %v5519_v9, %v2348_v34  ;;  %v1332_v9 = vsub.f32 %v5154_v46, %v5270_v38 }
 0x534   :  { %6781 = vst [vmem:[#allocation7_spill] sm:$0xff] %v5663_v11  ;;  %v2349_v34 = vsel %vm2333_vm2, %v2325_v51, %v2341_v40  ;;  %v1974_v40 = vadd.f32 %v5207_v25, %v5442_v24 }
 0x535   :  { %6782 = vst [vmem:[#allocation8_spill] sm:$0xff] %v5670_v55  ;;  %v2372_v13 = vsel %vm121_vm1, %v5670_v55, -inf  ;;  %v5686_v36 = vadd.f32 %v5542_v56, %v2349_v34  ;;  %v1347_v5 = vmul.f32 1.442695, %v1332_v9  ;;  %v6784_v55 = vld [vmem:[#allocation25_spill] sm:$0xff] }
 0x536   :  { %1012 = vadd.xlane.f32.xlu2 %v1011_v50  ;;  %v5678_v60 = vpop.eup %4069  ;;  %v979_v11 = vsub.f32 %v6784_v55, %v5405_v58  ;;  %v6785_v58 = vld [vmem:[#allocation5_spill] sm:$0xff]  ;;  %v6786_v55 = vld [vmem:[#allocation26_spill] sm:$0xff]  ;;  %v1990_v34 = vmul.f32 0.2, %v1974_v40  ;;  %vm1982_vm4 = vcmp.ge.f32.partialorder %v1974_v40, 0.0 }
 0x537   :  { %2409 = vadd.xlane.f32.xlu0 %v2408_v35  ;;  %v1014_v12 = vsel %vm121_vm1, %v5678_v60, 0.0  ;;  %v2375_v46 = vsel %vm121_vm1, %v5686_v36, -inf  ;;  %4071 = vpow2.f32 %v1347_v5  ;;  %v1678_v9 = vsub.f32 %v6786_v55, %v6785_v58  ;;  %v6787_v58 = vld [vmem:[#allocation29_spill] sm:$0xff] }
 0x538   :  { %v994_v51 = vmul.f32 1.442695, %v979_v11  ;;  %v2679_v11 = vadd.f32 %v5347_v31, %v5497_v47  ;;  %v2031_v55 = vsub.f32 %v6787_v58, %v5411_v44  ;;  %v1024_v58 = vmax.f32 %v5631_v32, 1e-30 }
 0x53a   :  { %4073 = vpow2.f32 %v994_v51  ;;  %vm2687_vm5 = vcmp.ge.f32.partialorder %v2679_v11, 0.0 }
 0x53b   :  { %v5676_v50 = vpop.xlane.xlu0 %1670  ;;  %v2662_v22 = vpop.permute.xlu2 %2661 }
 0x53c   :  { %v2678_v35 = vadd.f32 %v5347_v31, %v2662_v22 }
 0x53e   :  { %2373 = vmax.xlane.f32.xlu2 %v2372_v13  ;;  %v2694_v13 = vmul.f32 0.2, %v2678_v35  ;;  %vm2686_vm3 = vcmp.ge.f32.partialorder %v2678_v35, 0.0 }
 0x540   :  { %v2702_v38 = vsel %vm2686_vm3, %v2678_v35, %v2694_v13  ;;  %v5715_v35 = vpop.permute.xlu1 %2316  ;;  %v1998_v13 = vsel %vm1982_vm4, %v1974_v40, %v1990_v34 }
 0x541   :  { %v5699_v22 = vadd.f32 %v5542_v56, %v2702_v38  ;;  %v1686_v56 = vmul.f32 1.442695, %v1678_v9  ;;  %v5722_v38 = vld [vmem:[%s6677_s1 + $0x38] sm:$0xff]  ;;  %v2695_v9 = vmul.f32 0.2, %v2679_v11 }
 0x542   :  { %v5725_v51 = vadd.f32 %v5722_v38, %v1998_v13 }
 0x543   :  { %v5688_v20 = vpop.xlane.xlu0 %2726  ;;  %v2728_v25 = vsel %vm121_vm1, %v5699_v22, -inf  ;;  %4075 = vpow2.f32 %v1686_v56  ;;  %v2703_v13 = vsel %vm2687_vm5, %v2679_v11, %v2695_v9 }
 0x544   :  { %6783 = vst [vmem:[#allocation13_spill] sm:$0xff] %v5688_v20  ;;  %v2028_v34 = vsel %vm121_vm1, %v5725_v51, -inf  ;;  %v5738_v44 = vadd.f32 %v5561_v7, %v2703_v13 }
 0x546   :  { %1015 = vadd.xlane.f32.xlu2 %v1014_v12  ;;  %v5703_v12 = vpop.eup %4071  ;;  %v2731_v11 = vsel %vm121_vm1, %v5738_v44, -inf }
 0x547   :  { %v1370_v24 = vsel %vm121_vm1, %v5703_v12, 0.0 }
 0x54b   :  { %3880 = vrot.lane.b32.xlu0 %v5179_v61, %s4408_s29  ;;  %v5707_v5 = vpop.xlane.xlu0 %1673 }
 0x54e   :  { %2376 = vmax.xlane.f32.xlu2 %v2375_v46  ;;  %v5717_v46 = vpop.eup %4073 }
 0x54f   :  { %v1017_v47 = vsel %vm121_vm1, %v5717_v46, 0.0  ;;  %v5735_v56 = vpop.eup %4075 }
 0x553   :  { %3885 = vrot.lane.b32.xlu0 %v6772_v52, %s4409_s30  ;;  %v5731_v40 = vpop.xlane.xlu0 %2026 }
 0x554   :  { %6788 = vst [vmem:[#allocation12_spill] sm:$0xff] %v5731_v40  ;;  %v1621_v40 = vadd.f32 %v5123_v4, %v5429_v16  ;;  %v2737_v4 = vsub.f32 %v5365_v41, %v5480_v3 }
 0x556   :  { %2729 = vmax.xlane.f32.xlu2 %v2728_v25  ;;  %v2039_v25 = vmul.f32 1.442695, %v2031_v55  ;;  %vm1629_vm6 = vcmp.ge.f32.partialorder %v1621_v40, 0.0 }
 0x558   :  { %1371 = vadd.xlane.f32.xlu1 %v1370_v24 }
 0x55e   :  { %1018 = vadd.xlane.f32.xlu2 %v1017_v47  ;;  %v1702_v47 = vsel %vm121_vm1, %v5735_v56, 0.0 }
 0x560   :  { %2029 = vmax.xlane.f32.xlu1 %v2028_v34  ;;  %v1007_v24 = vpop.xlane.xlu1 %1006 }
 0x561   :  { %v1023_v20 = vmax.f32 %v1007_v24, 1e-30  ;;  %v1637_v24 = vmul.f32 0.2, %v1621_v40 }
 0x563   :  { %4077 = vrcp.f32 %v1023_v20 }
 0x564   :  { %4079 = vpow2.f32 %v2039_v25 }
 0x565   :  { %4081 = vrcp.f32 %v1024_v58 }
 0x566   :  { %1703 = vadd.xlane.f32.xlu2 %v1702_v47  ;;  %v3846_v55 = vpop.permute.xlu0 %3845  ;;  %v1645_v47 = vsel %vm1629_vm6, %v1621_v40, %v1637_v24 }
 0x567   :  { %v3847_v34 = vunpack.i.l.bf16 %v3846_v55  ;;  %v3848_v7 = vunpack.i.h.bf16 %v3846_v55 }
 0x568   :  { %v1363_v9 = vpop.xlane.xlu1 %1362  ;;  %2732 = vmax.xlane.f32.xlu1 %v2731_v11 }
 0x569   :  { %v4078_v20 = vpop.eup %4077  ;;  %v1377_v25 = vmax.f32 %v1363_v9, 1e-30  ;;  %2165 = vmatpush.msra.mxu3 %v3847_v34  ;;  %v2745_v34 = vmul.f32 1.442695, %v2737_v4 }
 0x56a   :  { %v5747_v32 = vpop.eup %4079  ;;  %v1039_v13 = vmul.f32 %v4078_v20, %v5577_v54  ;;  %v5758_v54 = vadd.f32 %v5722_v38, %v1645_v47 }
 0x56b   :  { %4083 = vrcp.f32 %v1377_v25  ;;  %2166 = vmatpush.msra.mxu3 %v3848_v7  ;;  %v2055_v16 = vsel %vm121_vm1, %v5747_v32, 0.0  ;;  %v4082_v55 = vpop.eup %4081 }
 0x56c   :  { %3582 = vmatmul.msk.f32.gmra.mxu0 %vm121_vm1, %v1039_v13  ;;  %v1040_v41 = vmul.f32 %v4082_v55, %v5503_v15  ;;  %4085 = vpow2.f32 %v2745_v34  ;;  %v1675_v40 = vsel %vm121_vm1, %v5758_v54, -inf }
 0x56e   :  { %2056 = vadd.xlane.f32.xlu2 %v2055_v16  ;;  %v3851_v58 = vpop.permute.xlu0 %3850 }
 0x570   :  { %v5755_v11 = vpop.xlane.xlu1 %2020 }
 0x571   :  { %v4084_v9 = vpop.eup %4083 }
 0x572   :  { %v1393_v3 = vmul.f32 %v4084_v9, %v5585_v27  ;;  %v5766_v24 = vpop.eup %4085  ;;  %v6789_v9 = vld [vmem:[#allocation27_spill] sm:$0xff] }
 0x573   :  { %v2761_v15 = vsel %vm121_vm1, %v5766_v24, 0.0 }
 0x574   :  { %3583 = vmatmul.msk.f32.gmra.mxu0 %vm121_vm1, %v1040_v41  ;;  %3599 = vmatmul.msk.f32.gmra.mxu1 %vm121_vm1, %v1393_v3  ;;  %v5778_v3 = vpop.permute.xlu2 %2669 }
 0x576   :  { %1676 = vmax.xlane.f32.xlu2 %v1675_v40  ;;  %v3856_v20 = vpop.permute.xlu0 %3855 }
 0x577   :  { %v3857_v7 = vunpack.i.l.bf16 %v3856_v20  ;;  %v3858_v13 = vunpack.i.h.bf16 %v3856_v20 }
 0x578   :  { %v1366_v25 = vpop.xlane.xlu1 %1365 }
 0x579   :  { %v1378_v4 = vmax.f32 %v1366_v25, 1e-30  ;;  %2167 = vmatpush.msra.mxu3 %v3857_v7 }
 0x57b   :  { %4087 = vrcp.f32 %v1378_v4  ;;  %2168 = vmatpush.msra.mxu3 %v3858_v13 }
 0x57c   :  { %v5788_v7 = vpop.xlane.xlu2 %1664 }
 0x57d   :  { %2762 = vadd.xlane.f32.xlu0 %v2761_v15 }
 0x580   :  { %v5770_v27 = vpop.xlane.xlu1 %2023 }
 0x581   :  { %v4088_v16 = vpop.eup %4087  ;;  %3875 = vrot.lane.b32.xlu1 %v6771_v21, %s4410_s11 }
 0x582   :  { %v1394_v47 = vmul.f32 %v4088_v16, %v5604_v39  ;;  %v6790_v39 = vld [vmem:[#allocation28_spill] sm:$0xff]  ;;  %v3852_v16 = vunpack.i.l.bf16 %v3851_v58 }
 0x583   :  { %v2032_v20 = vsub.f32 %v6790_v39, %v5397_v1  ;;  %v3853_v1 = vunpack.i.h.bf16 %v3851_v58  ;;  %v1679_v58 = vsub.f32 %v5356_v30, %v5475_v33 }
 0x584   :  { %3600 = vmatmul.msk.f32.gmra.mxu1 %vm121_vm1, %v1394_v47 }
 0x585   :  { %v2041_v25 = vmul.f32 1.442695, %v2032_v20 }
 0x588   :  { %v1369_v55 = vpop.xlane.xlu1 %1368 }
 0x589   :  { %v1379_v34 = vmax.f32 %v1369_v55, 1e-30 }
 0x58b   :  { %4089 = vrcp.f32 %v1379_v34 }
 0x58c   :  { %4091 = vpow2.f32 %v2041_v25  ;;  %v1688_v25 = vmul.f32 1.442695, %v1679_v58 }
 0x58e   :  { %3860 = vrot.lane.b32.xlu2 %v6789_v9, %s4408_s29 }
 0x591   :  { %v4090_v41 = vpop.eup %4089  ;;  %3900 = vrot.lane.b32.xlu0 %v6789_v9, %s4409_s30 }
 0x592   :  { %v1395_v40 = vmul.f32 %v4090_v41, %v5619_v43 }
 0x594   :  { %3601 = vmatmul.msk.f32.gmra.mxu1 %vm121_vm1, %v1395_v40 }
 0x596   :  { %3865 = vrot.lane.b32.xlu2 %v6771_v21, %s4409_s30  ;;  %v5794_v21 = vpop.eup %4091 }
 0x597   :  { %v2058_v34 = vsel %vm121_vm1, %v5794_v21, 0.0 }
 0x599   :  { %3905 = vrot.lane.b32.xlu0 %v6789_v9, %s4410_s11 }
 0x59e   :  { %3870 = vrot.lane.b32.xlu2 %v6789_v9, %s4407_s28  ;;  %v2385_v9 = vsub.f32 %v5483_v14, %v5627_v6 }
 0x5a0   :  { %v3841_v13 = vpop.permute.xlu1 %3840  ;;  %v2394_v20 = vmul.f32 1.442695, %v2385_v9 }
 0x5a1   :  { %v3842_v43 = vunpack.i.l.bf16 %v3841_v13  ;;  %v2371_v4 = vpop.xlane.xlu2 %2370  ;;  %v3843_v15 = vunpack.i.h.bf16 %v3841_v13  ;;  %v2386_v13 = vsub.f32 %v5460_v26, %v5615_v17 }
 0x5a3   :  { %1812 = vmatpush.msra.mxu2 %v3842_v43  ;;  %v2396_v14 = vmul.f32 1.442695, %v2386_v13  ;;  %v5837_v13 = vpop.xlane.xlu0 %2379 }
 0x5a5   :  { %1813 = vmatpush.msra.mxu2 %v3843_v15 }
 0x5a7   :  { %1814 = vmatpush.msra.mxu2 %v3852_v16 }
 0x5a9   :  { %v1013_v47 = vpop.xlane.xlu2 %1012  ;;  %1815 = vmatpush.msra.mxu2 %v3853_v1 }
 0x5aa   :  { %v1025_v55 = vmax.f32 %v1013_v47, 1e-30  ;;  %v1682_v47 = vsub.f32 %v5522_v8, %v5644_v29 }
 0x5ab   :  { %2059 = vadd.xlane.f32.xlu1 %v2058_v34 }
 0x5ac   :  { %4093 = vrcp.f32 %v1025_v55  ;;  %v1694_v9 = vmul.f32 1.442695, %v1682_v47 }
 0x5ad   :  { %4095 = vpow2.f32 %v2394_v20 }
 0x5b1   :  { %v5800_v41 = vpop.xlane.xlu2 %2373 }
 0x5b2   :  { %v4094_v40 = vpop.eup %4093 }
 0x5b3   :  { %v1041_v39 = vmul.f32 %v4094_v40, %v5655_v2  ;;  %v5808_v6 = vpop.eup %4095  ;;  %v2034_v2 = vsub.f32 %v5473_v19, %v5621_v28 }
 0x5b4   :  { %v2411_v16 = vsel %vm121_vm1, %v5808_v6, 0.0 }
 0x5b5   :  { %3584 = vmatmul.msk.f32.gmra.mxu0 %vm121_vm1, %v1041_v39  ;;  %v2045_v17 = vmul.f32 1.442695, %v2034_v2  ;;  %v2387_v39 = vsub.f32 %v5642_v48, %v2371_v4  ;;  %v2035_v48 = vsub.f32 %v5594_v53, %v5755_v11  ;;  %v5855_v53 = vpop.xlane.xlu0 %2409  ;;  %v1683_v11 = vsub.f32 %v5545_v23, %v5676_v50 }
 0x5b6   :  { %v2036_v23 = vsub.f32 %v5613_v18, %v5770_v27 }
 0x5b9   :  { %v1016_v43 = vpop.xlane.xlu2 %1015 }
 0x5ba   :  { %v1026_v15 = vmax.f32 %v1016_v43, 1e-30 }
 0x5bc   :  { %4097 = vrcp.f32 %v1026_v15 }
 0x5bd   :  { %4099 = vpow2.f32 %v1688_v25  ;;  %v2398_v25 = vmul.f32 1.442695, %v2387_v39  ;;  %v3881_v50 = vpop.permute.xlu0 %3880 }
 0x5be   :  { %4101 = vpow2.f32 %v2396_v14 }
 0x5bf   :  { %4103 = vpow2.f32 %v2045_v17 }
 0x5c1   :  { %v5812_v30 = vpop.xlane.xlu2 %2376 }
 0x5c2   :  { %v4098_v33 = vpop.eup %4097  ;;  %v2389_v18 = vsub.f32 %v5686_v36, %v5812_v30 }
 0x5c3   :  { %v5816_v1 = vpop.eup %4099  ;;  %2412 = vadd.xlane.f32.xlu0 %v2411_v16  ;;  %v1042_v26 = vmul.f32 %v4098_v33, %v5678_v60  ;;  %v2047_v16 = vmul.f32 1.442695, %v2035_v48 }
 0x5c4   :  { %3895 = vrot.lane.b32.xlu1 %v6772_v52, %s4410_s11  ;;  %v1705_v19 = vsel %vm121_vm1, %v5816_v1, 0.0  ;;  %v5824_v28 = vpop.eup %4101 }
 0x5c5   :  { %3585 = vmatmul.msk.f32.gmra.mxu0 %vm121_vm1, %v1042_v26  ;;  %v2414_v60 = vsel %vm121_vm1, %v5824_v28, 0.0  ;;  %v5832_v40 = vpop.eup %4103 }
 0x5c6   :  { %v2064_v8 = vsel %vm121_vm1, %v5832_v40, 0.0 }
 0x5c7   :  { %1706 = vadd.xlane.f32.xlu2 %v1705_v19 }
 0x5c9   :  { %v5828_v55 = vpop.xlane.xlu2 %2729 }
 0x5cb   :  { %2415 = vadd.xlane.f32.xlu0 %v2414_v60  ;;  %v1372_v52 = vpop.xlane.xlu1 %1371 }
 0x5cc   :  { %v1380_v34 = vmax.f32 %v1372_v52, 1e-30 }
 0x5ce   :  { %4105 = vrcp.f32 %v1380_v34 }
 0x5cf   :  { %4107 = vpow2.f32 %v1694_v9 }
 0x5d1   :  { %v1019_v58 = vpop.xlane.xlu2 %1018 }
 0x5d2   :  { %v1027_v20 = vmax.f32 %v1019_v58, 1e-30 }
 0x5d3   :  { %2065 = vadd.xlane.f32.xlu0 %v2064_v8  ;;  %v5859_v17 = vpop.xlane.xlu1 %2029 }
 0x5d4   :  { %4109 = vrcp.f32 %v1027_v20  ;;  %v4106_v29 = vpop.eup %4105 }
 0x5d5   :  { %v1396_v43 = vmul.f32 %v4106_v29, %v5703_v12  ;;  %v5840_v15 = vpop.eup %4107  ;;  %4111 = vpow2.f32 %v2398_v25  ;;  %v2680_v12 = vadd.f32 %v5347_v31, %v5778_v3  ;;  %v2738_v31 = vsub.f32 %v5433_v59, %v5667_v49 }
 0x5d6   :  { %v1714_v2 = vsel %vm121_vm1, %v5840_v15, 0.0  ;;  %4113 = vpow2.f32 %v2047_v16  ;;  %v1696_v3 = vmul.f32 1.442695, %v1683_v11  ;;  %v2049_v49 = vmul.f32 1.442695, %v2036_v23 }
 0x5d7   :  { %3602 = vmatmul.msk.f32.gmra.mxu1 %vm121_vm1, %v1396_v43  ;;  %v2696_v19 = vmul.f32 0.2, %v2680_v12  ;;  %vm2688_vm8 = vcmp.ge.f32.partialorder %v2680_v12, 0.0  ;;  %v2747_v34 = vmul.f32 1.442695, %v2738_v31  ;;  %v3883_v31 = vunpack.i.h.bf16 %v3881_v50 }
 0x5d8   :  { %4115 = vpow2.f32 %v1696_v3  ;;  %v2402_v16 = vmul.f32 1.442695, %v2389_v18 }
 0x5d9   :  { %v1704_v4 = vpop.xlane.xlu2 %1703  ;;  %v2704_v60 = vsel %vm2688_vm8, %v2680_v12, %v2696_v19  ;;  %4117 = vpow2.f32 %v2747_v34  ;;  %v3882_v19 = vunpack.i.l.bf16 %v3881_v50 }
 0x5da   :  { %v4110_v14 = vpop.eup %4109  ;;  %v5872_v39 = vadd.f32 %v5722_v38, %v2704_v60  ;;  %v1726_v59 = vmax.f32 %v1704_v4, 1e-30  ;;  %v3886_v4 = vpop.permute.xlu0 %3885 }
 0x5db   :  { %1715 = vadd.xlane.f32.xlu0 %v1714_v2  ;;  %v1043_v33 = vmul.f32 %v4110_v14, %v5717_v46  ;;  %v5851_v26 = vpop.eup %4111  ;;  %v5876_v20 = vpop.xlane.xlu1 %2732 }
 0x5dc   :  { %v2417_v47 = vsel %vm121_vm1, %v5851_v26, 0.0  ;;  %v5867_v52 = vpop.eup %4113  ;;  %v2734_v8 = vsel %vm121_vm1, %v5872_v39, -inf  ;;  %4119 = vrcp.f32 %v1726_v59  ;;  %v2743_v18 = vsub.f32 %v5738_v44, %v5876_v20 }
 0x5dd   :  { %3586 = vmatmul.msk.f32.gmra.mxu0 %vm121_vm1, %v1043_v33  ;;  %v2067_v58 = vsel %vm121_vm1, %v5867_v52, 0.0  ;;  %4121 = vpow2.f32 %v2049_v49  ;;  %v3888_v49 = vunpack.i.h.bf16 %v3886_v4  ;;  %v2033_v44 = vsub.f32 %v5394_v10, %v5653_v57 }
 0x5de   :  { %v5880_v29 = vpop.eup %4115  ;;  %4123 = vpow2.f32 %v2402_v16 }
 0x5df   :  { %3890 = vrot.lane.b32.xlu2 %v5179_v61, %s4407_s28  ;;  %v5884_v25 = vpop.eup %4117  ;;  %v1717_v48 = vsel %vm121_vm1, %v5880_v29, 0.0 }
 0x5e0   :  { %v2764_v12 = vsel %vm121_vm1, %v5884_v25, 0.0 }
 0x5e1   :  { %v5861_v46 = vpop.xlane.xlu2 %2056 }
 0x5e2   :  { %v4120_v11 = vpop.eup %4119 }
 0x5e3   :  { %2418 = vadd.xlane.f32.xlu0 %v2417_v47  ;;  %v5890_v36 = vpop.eup %4121  ;;  %v2327_v47 = vadd.f32 %v5236_v0, %v5715_v35  ;;  %v1742_v3 = vmul.f32 %v4120_v11, %v5735_v56  ;;  %v1680_v56 = vsub.f32 %v5446_v42, %v5579_v63 }
 0x5e5   :  { %v2343_v0 = vmul.f32 0.2, %v2327_v47  ;;  %vm2335_vm9 = vcmp.ge.f32.partialorder %v2327_v47, 0.0 }
 0x5e9   :  { %v1677_v9 = vpop.xlane.xlu2 %1676 }
 0x5ea   :  { %v1685_v60 = vsub.f32 %v5758_v54, %v1677_v9  ;;  %v3887_v54 = vunpack.i.l.bf16 %v3886_v4  ;;  %v5903_v9 = vpop.eup %4123 }
 0x5eb   :  { %2068 = vadd.xlane.f32.xlu0 %v2067_v58  ;;  %v2070_v58 = vsel %vm121_vm1, %v5890_v36, 0.0 }
 0x5ec   :  { %v1700_v50 = vmul.f32 1.442695, %v1685_v60  ;;  %v2739_v60 = vsub.f32 %v5495_v37, %v5625_v62  ;;  %v2742_v37 = vsub.f32 %v5699_v22, %v5828_v55 }
 0x5ee   :  { %2735 = vmax.xlane.f32.xlu1 %v2734_v8  ;;  %v2351_v8 = vsel %vm2335_vm9, %v2327_v47, %v2343_v0  ;;  %4125 = vpow2.f32 %v1700_v50  ;;  %v1684_v0 = vsub.f32 %v5564_v45, %v5707_v5 }
 0x5ef   :  { %v5910_v63 = vadd.f32 %v5722_v38, %v2351_v8  ;;  %v2043_v38 = vmul.f32 1.442695, %v2033_v44 }
 0x5f0   :  { %v5898_v59 = vpop.xlane.xlu0 %2762 }
 0x5f1   :  { %v3861_v27 = vpop.permute.xlu2 %3860 }
 0x5f2   :  { %v3862_v43 = vunpack.i.l.bf16 %v3861_v27  ;;  %v3863_v2 = vunpack.i.h.bf16 %v3861_v27 }
 0x5f3   :  { %1718 = vadd.xlane.f32.xlu0 %v1717_v48  ;;  %v3876_v14 = vpop.permute.xlu1 %3875 }
 0x5f4   :  { %v3877_v33 = vunpack.i.l.bf16 %v3876_v14  ;;  %1816 = vmatpush.msra.mxu2 %v3862_v43  ;;  %v3878_v30 = vunpack.i.h.bf16 %v3876_v14  ;;  %v1690_v43 = vmul.f32 1.442695, %v1680_v56  ;;  %v2423_v14 = vsel %vm121_vm1, %v5903_v9, 0.0  ;;  %v5914_v16 = vpop.eup %4125 }
 0x5f5   :  { %v1723_v11 = vsel %vm121_vm1, %v5914_v16, 0.0 }
 0x5f6   :  { %2765 = vadd.xlane.f32.xlu1 %v2764_v12  ;;  %1817 = vmatpush.msra.mxu2 %v3863_v2  ;;  %4127 = vpow2.f32 %v1690_v43  ;;  %v2381_v12 = vsel %vm121_vm1, %v5910_v63, -inf }
 0x5f7   :  { %2871 = vmatpush.msrb.mxu1 %v3877_v33  ;;  %v2757_v33 = vmul.f32 1.442695, %v2743_v18  ;;  %v2755_v18 = vmul.f32 1.442695, %v2742_v37 }
 0x5f8   :  { %1818 = vmatpush.msra.mxu2 %v3882_v19 }
 0x5f9   :  { %2872 = vmatpush.msrb.mxu1 %v3878_v30  ;;  %v3866_v34 = vpop.permute.xlu2 %3865  ;;  %4129 = vpow2.f32 %v2757_v33 }
 0x5fa   :  { %v3867_v23 = vunpack.i.l.bf16 %v3866_v34  ;;  %1819 = vmatpush.msra.mxu2 %v3883_v31  ;;  %v3868_v35 = vunpack.i.h.bf16 %v3866_v34  ;;  %4131 = vpow2.f32 %v2043_v38  ;;  %v2749_v34 = vmul.f32 1.442695, %v2739_v60 }
 0x5fb   :  { %2071 = vadd.xlane.f32.xlu0 %v2070_v58  ;;  %3611 = vmatmul.msk.f32.vlgmr.msra.gmra.mxu2 %vm121_vm1, %v1742_v3  ;;  %v3924_v3 = vld [vmem:[%s6676_s4] ss:$0 sm:$0xff] }
 0x5fc   :  { %2518 = vmatpush.msra.mxu0 %v3867_v23  ;;  %v5920_v19 = vpop.eup %4127  ;;  %4133 = vpow2.f32 %v2749_v34 }
 0x5fd   :  { %v1708_v57 = vsel %vm121_vm1, %v5920_v19, 0.0 }
 0x5fe   :  { %2519 = vmatpush.msra.mxu0 %v3868_v35  ;;  %v1698_v35 = vmul.f32 1.442695, %v1684_v0 }
 0x5ff   :  { %v5922_v10 = vpop.eup %4129 }
 0x600   :  { %2520 = vmatpush.msra.mxu0 %v3887_v54  ;;  %v2779_v30 = vsel %vm121_vm1, %v5922_v10, 0.0  ;;  %v5930_v47 = vpop.eup %4131  ;;  %4135 = vpow2.f32 %v1698_v35 }
 0x601   :  { %v3871_v27 = vpop.permute.xlu2 %3870  ;;  %v2061_v31 = vsel %vm121_vm1, %v5930_v47, 0.0 }
 0x602   :  { %v3872_v48 = vunpack.i.l.bf16 %v3871_v27  ;;  %2521 = vmatpush.msra.mxu0 %v3888_v49  ;;  %v3873_v2 = vunpack.i.h.bf16 %v3871_v27  ;;  %v5944_v50 = vpop.eup %4133  ;;  %v2079_v49 = vmax.f32 %v5861_v46, 1e-30 }
 0x603   :  { %2424 = vadd.xlane.f32.xlu0 %v2423_v14  ;;  %v3901_v42 = vpop.permute.xlu0 %3900  ;;  %v2767_v8 = vsel %vm121_vm1, %v5944_v50, 0.0 }
 0x604   :  { %v3902_v4 = vunpack.i.l.bf16 %v3901_v42  ;;  %2169 = vmatpush.msra.mxu3 %v3872_v48  ;;  %v3903_v20 = vunpack.i.h.bf16 %v3901_v42  ;;  %4137 = vrcp.f32 %v2079_v49  ;;  %v2038_v48 = vsub.f32 %v5725_v51, %v5859_v17 }
 0x606   :  { %2522 = vmatpush.msra.mxu0 %v3902_v4  ;;  %2170 = vmatpush.msra.mxu3 %v3873_v2  ;;  %v5957_v22 = vpop.eup %4135  ;;  %v2053_v44 = vmul.f32 1.442695, %v2038_v48 }
 0x607   :  { %v1720_v14 = vsel %vm121_vm1, %v5957_v22, 0.0 }
 0x608   :  { %2523 = vmatpush.msra.mxu0 %v3903_v20  ;;  %2382 = vmax.xlane.f32.xlu2 %v2381_v12 }
 0x60a   :  { %v4138_v2 = vpop.eup %4137 }
 0x60b   :  { %1724 = vadd.xlane.f32.xlu0 %v1723_v11  ;;  %v3906_v23 = vpop.permute.xlu0 %3905  ;;  %v2095_v51 = vmul.f32 %v4138_v2, %v5747_v32  ;;  %v6797_v2 = vld [vmem:[#allocation12_spill] sm:$0xff] }
 0x60c   :  { %v3907_v27 = vunpack.i.l.bf16 %v3906_v23  ;;  %v3908_v55 = vunpack.i.h.bf16 %v3906_v23  ;;  %v6792_v23 = vld [vmem:[#allocation7_spill] sm:$0xff] }
 0x60f   :  { %3915 = vrot.lane.b32.xlu1 %v5179_v61, %s4410_s11 }
 0x610   :  { %1709 = vadd.xlane.f32.xlu2 %v1708_v57  ;;  %v6791_v57 = vld [vmem:[#allocation10_spill] sm:$0xff] }
 0x613   :  { %2780 = vadd.xlane.f32.xlu0 %v2779_v30  ;;  %v1681_v30 = vsub.f32 %v6791_v57, %v5788_v7  ;;  %v6799_v57 = vld [vmem:[#allocation3_spill] sm:$0xff] }
 0x618   :  { %2062 = vadd.xlane.f32.xlu2 %v2061_v31 }
 0x61e   :  { %v2060_v58 = vpop.xlane.xlu1 %2059 }
 0x61f   :  { %v2080_v42 = vmax.f32 %v2060_v58, 1e-30  ;;  %v6793_v58 = vld [vmem:[#allocation6_spill] sm:$0xff] }
 0x620   :  { %v2740_v7 = vsub.f32 %v6793_v58, %v6792_v23  ;;  %v2785_v23 = vmax.f32 %v5898_v59, 1e-30 }
 0x622   :  { %v2751_v35 = vmul.f32 1.442695, %v2740_v7 }
 0x627   :  { %1071 = vrot.lane.b32.xlu0 %v3924_v3, %s4404_s12  ;;  %v1692_v3 = vmul.f32 1.442695, %v1681_v30  ;;  %v2390_v30 = vsub.f32 %v6799_v57, %v5837_v13 }
 0x630   :  { %3910 = vrot.lane.b32.xlu2 %v5179_v61, %s4409_s30  ;;  %v3925_v61 = vld [vmem:[%s6676_s4] ss:$0 sm:$0xff] }
 0x631   :  { %2130 = vrot.lane.b32.xlu0 %v3925_v61, %s4407_s28  ;;  %v6795_v61 = vld [vmem:[#allocation13_spill] sm:$0xff] }
 0x636   :  { %v5946_v56 = vpop.xlane.xlu0 %2412  ;;  %v3896_v54 = vpop.permute.xlu1 %3895 }
 0x637   :  { %v3897_v62 = vunpack.i.l.bf16 %v3896_v54  ;;  %v3898_v45 = vunpack.i.h.bf16 %v3896_v54 }
 0x639   :  { %2768 = vadd.xlane.f32.xlu1 %v2767_v8  ;;  %2873 = vmatpush.msrb.mxu1 %v3897_v62  ;;  %v6794_v62 = vld [vmem:[#allocation8_spill] sm:$0xff] }
 0x63a   :  { %v1707_v5 = vpop.xlane.xlu2 %1706  ;;  %v2388_v49 = vsub.f32 %v6794_v62, %v5800_v41 }
 0x63b   :  { %v1727_v43 = vmax.f32 %v1707_v5, 1e-30  ;;  %2874 = vmatpush.msrb.mxu1 %v3898_v45  ;;  %v6796_v5 = vld [vmem:[#allocation4_spill] sm:$0xff] }
 0x63c   :  { %v2400_v8 = vmul.f32 1.442695, %v2388_v49 }
 0x63d   :  { %4139 = vrcp.f32 %v1727_v43  ;;  %2875 = vmatpush.msrb.mxu1 %v3907_v27 }
 0x63e   :  { %v5959_v46 = vpop.xlane.xlu0 %2415  ;;  %4141 = vpow2.f32 %v2755_v18  ;;  %v2741_v18 = vsub.f32 %v6796_v5, %v6795_v61  ;;  %v3927_v5 = vld [vmem:[%s6676_s4] ss:$0 sm:$0xff] }
 0x63f   :  { %2876 = vmatpush.msrb.mxu1 %v3908_v55  ;;  %4143 = vrcp.f32 %v2080_v42  ;;  %2483 = vrot.lane.b32.xlu0 %v3927_v5, %s4409_s30 }
 0x640   :  { %4145 = vpow2.f32 %v2053_v44  ;;  %v2753_v48 = vmul.f32 1.442695, %v2741_v18 }
 0x641   :  { %1721 = vadd.xlane.f32.xlu1 %v1720_v14  ;;  %4147 = vpow2.f32 %v1692_v3 }
 0x642   :  { %v3891_v4 = vpop.permute.xlu2 %3890  ;;  %4149 = vpow2.f32 %v2751_v35 }
 0x643   :  { %v4140_v33 = vpop.eup %4139  ;;  %v3892_v20 = vunpack.i.l.bf16 %v3891_v4  ;;  %v3893_v11 = vunpack.i.h.bf16 %v3891_v4  ;;  %4151 = vpow2.f32 %v2400_v8  ;;  %v6798_v4 = vld [vmem:[#allocation11_spill] sm:$0xff] }
 0x644   :  { %v1743_v12 = vmul.f32 %v4140_v33, %v5816_v1  ;;  %v5966_v38 = vpop.eup %4141  ;;  %v2037_v33 = vsub.f32 %v6798_v4, %v6797_v2 }
 0x645   :  { %2171 = vmatpush.msra.mxu3 %v3892_v20  ;;  %v2776_v1 = vsel %vm121_vm1, %v5966_v38, 0.0  ;;  %v4144_v31 = vpop.eup %4143 }
 0x646   :  { %v5969_v17 = vpop.xlane.xlu0 %2065  ;;  %3612 = vmatmul.msk.f32.gmra.mxu2 %vm121_vm1, %v1743_v12  ;;  %v5977_v60 = vpop.eup %4145  ;;  %v2096_v34 = vmul.f32 %v4144_v31, %v5794_v21  ;;  %v2051_v12 = vmul.f32 1.442695, %v2037_v33  ;;  %v2404_v31 = vmul.f32 1.442695, %v2390_v30 }
 0x647   :  { %2172 = vmatpush.msra.mxu3 %v3893_v11  ;;  %v2076_v0 = vsel %vm121_vm1, %v5977_v60, 0.0  ;;  %v5987_v54 = vpop.eup %4147 }
 0x648   :  { %3627 = vmatmul.msk.f32.vlgmr.msra.gmra.mxu3 %vm121_vm1, %v2095_v51  ;;  %v1711_v21 = vsel %vm121_vm1, %v5987_v54, 0.0  ;;  %v5995_v45 = vpop.eup %4149 }
 0x649   :  { %2777 = vadd.xlane.f32.xlu1 %v2776_v1  ;;  %v2770_v43 = vsel %vm121_vm1, %v5995_v45, 0.0  ;;  %v6004_v42 = vpop.eup %4151 }
 0x64a   :  { %v2420_v44 = vsel %vm121_vm1, %v6004_v42, 0.0 }
 0x64e   :  { %v5979_v32 = vpop.xlane.xlu0 %1715 }
 0x650   :  { %3628 = vmatmul.msk.f32.gmra.mxu3 %vm121_vm1, %v2096_v34 }
 0x651   :  { %2077 = vadd.xlane.f32.xlu1 %v2076_v0 }
 0x656   :  { %v5989_v37 = vpop.xlane.xlu0 %2418 }
 0x659   :  { %1712 = vadd.xlane.f32.xlu2 %v1711_v21  ;;  %v1115_v21 = vpop.f32.mrf.mxu0 }
 0x65e   :  { %v5999_v27 = vpop.xlane.xlu0 %2068 }
 0x661   :  { %v2736_v55 = vpop.xlane.xlu1 %2735  ;;  %2771 = vadd.xlane.f32.xlu2 %v2770_v43  ;;  %v6046_v4 = vpop.f32.mrf.mxu0 }
 0x662   :  { %v2744_v41 = vsub.f32 %v5872_v39, %v2736_v55  ;;  %v3926_v55 = vld [vmem:[%s6676_s4] ss:$0 sm:$0xff] }
 0x664   :  { %v2759_v14 = vmul.f32 1.442695, %v2744_v41 }
 0x666   :  { %4153 = vpow2.f32 %v2759_v14  ;;  %v6010_v20 = vpop.xlane.xlu0 %1718 }
 0x667   :  { %4155 = vpow2.f32 %v2753_v48 }
 0x668   :  { %4157 = vpow2.f32 %v2051_v12  ;;  %v2432_v12 = vmax.f32 %v5855_v53, 1e-30 }
 0x669   :  { %2421 = vadd.xlane.f32.xlu2 %v2420_v44  ;;  %4159 = vpow2.f32 %v2404_v31  ;;  %v2766_v7 = vpop.xlane.xlu1 %2765 }
 0x66a   :  { %4161 = vrcp.f32 %v2785_v23  ;;  %v2786_v8 = vmax.f32 %v2766_v7, 1e-30  ;;  %v6057_v23 = vpop.f32.mrf.mxu0  ;;  %v2433_v7 = vmax.f32 %v5946_v56, 1e-30 }
 0x66c   :  { %v6012_v11 = vpop.eup %4153 }
 0x66d   :  { %v6014_v51 = vpop.eup %4155  ;;  %v2782_v39 = vsel %vm121_vm1, %v6012_v11, 0.0 }
 0x66e   :  { %2783 = vadd.xlane.f32.xlu1 %v2782_v39  ;;  %v2773_v1 = vsel %vm121_vm1, %v6014_v51, 0.0  ;;  %v6022_v3 = vpop.xlane.xlu0 %2071  ;;  %v6024_v34 = vpop.eup %4157 }
 0x66f   :  { %v2073_v58 = vsel %vm121_vm1, %v6024_v34, 0.0  ;;  %v6030_v35 = vpop.eup %4159 }
 0x670   :  { %v2426_v59 = vsel %vm121_vm1, %v6030_v35, 0.0  ;;  %v4162_v18 = vpop.eup %4161 }
 0x671   :  { %2774 = vadd.xlane.f32.xlu2 %v2773_v1  ;;  %v2801_v14 = vmul.f32 %v4162_v18, %v5766_v24 }
 0x672   :  { %v6067_v5 = vpop.f32.mrf.mxu0 }
 0x676   :  { %v6032_v62 = vpop.xlane.xlu0 %2424 }
 0x679   :  { %2074 = vadd.xlane.f32.xlu2 %v2073_v58  ;;  %v2082_v58 = vmax.f32 %v5969_v17, 1e-30  ;;  %v2083_v17 = vmax.f32 %v5999_v27, 1e-30 }
 0x67b   :  { %v2383_v0 = vpop.xlane.xlu2 %2382 }
 0x67c   :  { %v2391_v13 = vsub.f32 %v5910_v63, %v2383_v0 }
 0x67e   :  { %v2406_v49 = vmul.f32 1.442695, %v2391_v13  ;;  %v6048_v33 = vpop.xlane.xlu0 %1724 }
 0x680   :  { %4163 = vpow2.f32 %v2406_v49 }
 0x681   :  { %v3916_v61 = vpop.permute.xlu1 %3915  ;;  %2427 = vadd.xlane.f32.xlu2 %v2426_v59  ;;  %4165 = vrcp.f32 %v2786_v8  ;;  %v6800_v59 = vld [vmem:[#allocation9_spill] sm:$0xff] }
 0x682   :  { %v3917_v43 = vunpack.i.l.bf16 %v3916_v61  ;;  %v3918_v41 = vunpack.i.h.bf16 %v3916_v61 }
 0x683   :  { %v1710_v63 = vpop.xlane.xlu2 %1709 }
 0x684   :  { %v1728_v48 = vmax.f32 %v1710_v63, 1e-30  ;;  %2877 = vmatpush.msrb.mxu1 %v3917_v43  ;;  %v2434_v43 = vmax.f32 %v5959_v46, 1e-30  ;;  %v6083_v46 = vpop.f32.mrf.mxu0 }
 0x686   :  { %v6044_v2 = vpop.eup %4163  ;;  %4167 = vrcp.f32 %v1728_v48  ;;  %2878 = vmatpush.msrb.mxu1 %v3918_v41  ;;  %v6062_v53 = vpop.xlane.xlu0 %2780  ;;  %v3928_v48 = vld [vmem:[%s6676_s4] ss:$0 sm:$0xff] }
 0x687   :  { %1777 = vrot.lane.b32.xlu1 %v3926_v55, %s4408_s29  ;;  %3659 = vmatmul.msk.f32.vlgmr.msrb.gmra.mxu1 %vm121_vm1, %v2801_v14  ;;  %v2429_v44 = vsel %vm121_vm1, %v6044_v2, 0.0  ;;  %v4166_v39 = vpop.eup %4165  ;;  %4169 = vrcp.f32 %v2432_v12 }
 0x688   :  { %v2802_v31 = vmul.f32 %v4166_v39, %v5884_v25 }
 0x689   :  { %2430 = vadd.xlane.f32.xlu2 %v2429_v44  ;;  %v2084_v44 = vmax.f32 %v6022_v3, 1e-30 }
 0x68b   :  { %v2063_v24 = vpop.xlane.xlu2 %2062 }
 0x68c   :  { %v4168_v57 = vpop.eup %4167  ;;  %v2081_v30 = vmax.f32 %v2063_v24, 1e-30 }
 0x68d   :  { %v1744_v1 = vmul.f32 %v4168_v57, %v5920_v19  ;;  %v4170_v0 = vpop.eup %4169 }
 0x68e   :  { %4171 = vrcp.f32 %v2081_v30  ;;  %v2448_v61 = vmul.f32 %v4170_v0, %v6800_v59  ;;  %v1130_v30 = vpop.f32.mrf.mxu0 }
 0x68f   :  { %3613 = vmatmul.msk.f32.gmra.mxu2 %vm121_vm1, %v1744_v1  ;;  %3660 = vmatmul.msk.f32.gmra.mxu1 %vm121_vm1, %v2802_v31  ;;  %4173 = vrcp.f32 %v2082_v58 }
 0x690   :  { %4175 = vrcp.f32 %v2433_v7 }
 0x691   :  { %4177 = vrcp.f32 %v2083_v17 }
 0x692   :  { %4179 = vrcp.f32 %v2434_v43 }
 0x693   :  { %v3911_v13 = vpop.permute.xlu2 %3910 }
 0x694   :  { %v4172_v49 = vpop.eup %4171  ;;  %v3912_v19 = vunpack.i.l.bf16 %v3911_v13  ;;  %v3913_v8 = vunpack.i.h.bf16 %v3911_v13 }
 0x695   :  { %v2097_v25 = vmul.f32 %v4172_v49, %v5930_v47  ;;  %v4174_v18 = vpop.eup %4173 }
 0x696   :  { %2524 = vmatpush.msra.mxu0 %v3912_v19  ;;  %v4176_v63 = vpop.eup %4175  ;;  %v2098_v41 = vmul.f32 %v4174_v18, %v5832_v40  ;;  %v6106_v19 = vpop.f32.mrf.mxu1 }
 0x697   :  { %3629 = vmatmul.msk.f32.gmra.mxu3 %vm121_vm1, %v2097_v25  ;;  %v2449_v14 = vmul.f32 %v4176_v63, %v5808_v6  ;;  %v4178_v40 = vpop.eup %4177  ;;  %v3929_v6 = vld [vmem:[%s6676_s4] ss:$0 sm:$0xff]  ;;  %s4412_s4 = smov 40  }
 0x698   :  { %2525 = vmatpush.msra.mxu0 %v3913_v8  ;;  %v4180_v12 = vpop.eup %4179  ;;  %v2099_v39 = vmul.f32 %v4178_v40, %v5867_v52 }
 0x699   :  { %v6071_v56 = vpop.permute.xlu0 %1071  ;;  %3643 = vmatmul.msk.f32.vlgmr.msra.gmra.mxu0 %vm121_vm1, %v2448_v61  ;;  %v2450_v57 = vmul.f32 %v4180_v12, %v5824_v28  ;;  %v1731_v12 = vmax.f32 %v6010_v20, 1e-30 }
 0x69a   :  { %v1116_v47 = vadd.f32 %v1115_v21, %v6071_v56  ;;  %v2435_v21 = vmax.f32 %v5989_v37, 1e-30  ;;  %v6098_v52 = vadd.f32 %v1130_v30, %v6071_v56  ;;  %v1119_v8 = vadd.f32 %v6046_v4, %v6071_v56 }
 0x69c   :  { %v1147_v55 = vmin.f32 %v1116_v47, 0.0  ;;  %vm1139_vm10 = vcmp.gt.f32.partialorder %v1116_v47, 0.0  ;;  %v1148_v43 = vmin.f32 %v1119_v8, 0.0  ;;  %vm1140_vm12 = vcmp.gt.f32.partialorder %v1119_v8, 0.0 }
 0x69e   :  { %v1155_v27 = vmul.f32 1.442695, %v1147_v55  ;;  %v6112_v59 = vpop.f32.mrf.mxu1  ;;  %v1157_v63 = vmul.f32 1.442695, %v1148_v43 }
 0x69f   :  { %3630 = vmatmul.msk.f32.gmra.mxu3 %vm121_vm1, %v2098_v41 }
 0x6a0   :  { %4181 = vpow2.f32 %v1155_v27 }
 0x6a1   :  { %3644 = vmatmul.msk.f32.gmra.mxu0 %vm121_vm1, %v2449_v14  ;;  %1424 = vrot.lane.b32.xlu2 %v3928_v48, %s4405_s13  ;;  %4183 = vrcp.f32 %v2084_v44  ;;  %s4411_s13 = smov 16  }
 0x6a2   :  { %4185 = vrcp.f32 %v2435_v21 }
 0x6a3   :  { %v6108_v25 = vpop.permute.xlu0 %2130 }
 0x6a6   :  { %v4182_v24 = vpop.eup %4181  ;;  %v6119_v44 = vpop.f32.mrf.mxu1 }
 0x6a7   :  { %3631 = vmatmul.msk.f32.gmra.mxu3 %vm121_vm1, %v2099_v39  ;;  %v3587_v3 = vadd.f32 -1.0, %v4182_v24  ;;  %v4184_v37 = vpop.eup %4183  ;;  %v6127_v24 = vadd.f32 %v6057_v23, %v6071_v56 }
 0x6a8   :  { %v4186_v31 = vpop.eup %4185  ;;  %v2100_v0 = vmul.f32 %v4184_v37, %v5890_v36 }
 0x6a9   :  { %v1179_v1 = vsel %vm1139_vm10, %v1116_v47, %v3587_v3  ;;  %3645 = vmatmul.msk.f32.gmra.mxu0 %vm121_vm1, %v2450_v57  ;;  %2836 = vrot.lane.b32.xlu2 %v3929_v6, %s4410_s11  ;;  %v2451_v28 = vmul.f32 %v4186_v31, %v5851_v26  ;;  %v1730_v47 = vmax.f32 %v5979_v32, 1e-30  ;;  %v1149_v23 = vmin.f32 %v6127_v24, 0.0 }
 0x6aa   :  { %1195 = vrot.lane.b32.xlu1 %v1179_v1, %s4411_s13  ;;  %vm1141_vm14 = vcmp.gt.f32.partialorder %v6127_v24, 0.0 }
 0x6ac   :  { %v2769_v58 = vpop.xlane.xlu1 %2768 }
 0x6ad   :  { %v2787_v7 = vmax.f32 %v2769_v58, 1e-30 }
 0x6ae   :  { %v6130_v31 = vpop.f32.mrf.mxu1 }
 0x6af   :  { %4187 = vrcp.f32 %v2787_v7  ;;  %3632 = vmatmul.msk.f32.gmra.mxu3 %vm121_vm1, %v2100_v0 }
 0x6b1   :  { %3646 = vmatmul.msk.f32.gmra.mxu0 %vm121_vm1, %v2451_v28  ;;  %v2437_v28 = vmax.f32 %v6032_v62, 1e-30 }
 0x6b4   :  { %v1722_v27 = vpop.xlane.xlu1 %1721 }
 0x6b5   :  { %v4188_v13 = vpop.eup %4187 }
 0x6b6   :  { %v2803_v49 = vmul.f32 %v4188_v13, %v5944_v50  ;;  %v1732_v13 = vmax.f32 %v1722_v27, 1e-30 }
 0x6b8   :  { %3661 = vmatmul.msk.f32.gmra.mxu1 %vm121_vm1, %v2803_v49  ;;  %v1159_v49 = vmul.f32 1.442695, %v1149_v23 }
 0x6bc   :  { %v2778_v7 = vpop.xlane.xlu1 %2777 }
 0x6cb   :  { %v2174_v36 = vpop.f32.mrf.mxu3 }
 0x6cc   :  { %v2175_v61 = vadd.f32 %v2174_v36, %v6108_v25  ;;  %v1713_v26 = vpop.xlane.xlu2 %1712 }
 0x6cd   :  { %v1729_v17 = vmax.f32 %v1713_v26, 1e-30 }
 0x6ce   :  { %v2206_v18 = vmin.f32 %v2175_v61, 0.0  ;;  %vm2198_vm11 = vcmp.gt.f32.partialorder %v2175_v61, 0.0 }
 0x6cf   :  { %4189 = vrcp.f32 %v1729_v17 }
 0x6d0   :  { %v2214_v50 = vmul.f32 1.442695, %v2206_v18  ;;  %v6139_v18 = vpop.f32.mrf.mxu1 }
 0x6d2   :  { %4191 = vpow2.f32 %v2214_v50 }
 0x6d3   :  { %v2177_v55 = vpop.f32.mrf.mxu3  ;;  %4193 = vrcp.f32 %v1730_v47  ;;  %v2078_v47 = vpop.xlane.xlu1 %2077 }
 0x6d4   :  { %v6117_v41 = vadd.f32 %v2177_v55, %v6108_v25  ;;  %v2772_v4 = vpop.xlane.xlu2 %2771  ;;  %4195 = vpow2.f32 %v1157_v63  ;;  %v2790_v55 = vmax.f32 %v2778_v7, 1e-30 }
 0x6d5   :  { %v4190_v48 = vpop.eup %4189  ;;  %v2788_v14 = vmax.f32 %v2772_v4, 1e-30 }
 0x6d6   :  { %v2207_v40 = vmin.f32 %v6117_v41, 0.0  ;;  %v1745_v21 = vmul.f32 %v4190_v48, %v5987_v54  ;;  %vm2199_vm13 = vcmp.gt.f32.partialorder %v6117_v41, 0.0 }
 0x6d7   :  { %4197 = vrcp.f32 %v2788_v14 }
 0x6d8   :  { %v4192_v32 = vpop.eup %4191  ;;  %3614 = vmatmul.msk.f32.gmra.mxu2 %vm121_vm1, %v1745_v21  ;;  %v2216_v6 = vmul.f32 1.442695, %v2207_v40  ;;  %4199 = vrcp.f32 %v1731_v12  ;;  %v6149_v40 = vpop.f32.mrf.mxu1 }
 0x6d9   :  { %v3635_v39 = vadd.f32 -1.0, %v4192_v32  ;;  %v4194_v3 = vpop.eup %4193 }
 0x6da   :  { %v4196_v30 = vpop.eup %4195  ;;  %4201 = vpow2.f32 %v2216_v6  ;;  %v1746_v20 = vmul.f32 %v4194_v3, %v5840_v15  ;;  %v2791_v6 = vmax.f32 %v6062_v53, 1e-30 }
 0x6db   :  { %v2238_v57 = vsel %vm2198_vm11, %v2175_v61, %v3635_v39  ;;  %v3588_v0 = vadd.f32 -1.0, %v4196_v30 }
 0x6dc   :  { %v2422_v1 = vpop.xlane.xlu2 %2421  ;;  %2254 = vrot.lane.b32.xlu1 %v2238_v57, %s4412_s4 }
 0x6dd   :  { %v4198_v54 = vpop.eup %4197  ;;  %v2436_v37 = vmax.f32 %v2422_v1, 1e-30  ;;  %v1180_v61 = vsel %vm1140_vm12, %v1119_v8, %v3588_v0  ;;  %v1733_v8 = vmax.f32 %v6048_v33, 1e-30 }
 0x6de   :  { %v2804_v58 = vmul.f32 %v4198_v54, %v5995_v45  ;;  %v4200_v36 = vpop.eup %4199 }
 0x6df   :  { %4203 = vrcp.f32 %v2436_v37  ;;  %v1747_v62 = vmul.f32 %v4200_v36, %v5880_v29 }
 0x6e0   :  { %3615 = vmatmul.msk.f32.gmra.mxu2 %vm121_vm1, %v1746_v20  ;;  %3662 = vmatmul.msk.f32.gmra.mxu1 %vm121_vm1, %v2804_v58  ;;  %v4202_v26 = vpop.eup %4201  ;;  %4205 = vrcp.f32 %v2437_v28  ;;  %v6161_v1 = vpop.f32.mrf.mxu1 }
 0x6e1   :  { %4207 = vrcp.f32 %v1732_v13  ;;  %v3636_v50 = vadd.f32 -1.0, %v4202_v26  ;;  %v2784_v39 = vpop.xlane.xlu1 %2783 }
 0x6e2   :  { %4209 = vpow2.f32 %v1159_v49  ;;  %v2792_v58 = vmax.f32 %v2784_v39, 1e-30 }
 0x6e3   :  { %v2239_v48 = vsel %vm2199_vm13, %v6117_v41, %v3636_v50  ;;  %v2086_v41 = vmax.f32 %v2078_v47, 1e-30 }
 0x6e4   :  { %v2775_v15 = vpop.xlane.xlu2 %2774  ;;  %1197 = vrot.lane.b32.xlu1 %v1180_v61, %s4411_s13 }
 0x6e5   :  { %v4204_v45 = vpop.eup %4203  ;;  %v2789_v17 = vmax.f32 %v2775_v15, 1e-30 }
 0x6e6   :  { %v2452_v43 = vmul.f32 %v4204_v45, %v6004_v42  ;;  %v4206_v63 = vpop.eup %4205 }
 0x6e7   :  { %4211 = vrcp.f32 %v2789_v17  ;;  %v4208_v4 = vpop.eup %4207  ;;  %v2453_v21 = vmul.f32 %v4206_v63, %v5903_v9 }
 0x6e8   :  { %3616 = vmatmul.msk.f32.gmra.mxu2 %vm121_vm1, %v1747_v62  ;;  %3647 = vmatmul.msk.f32.gmra.mxu0 %vm121_vm1, %v2452_v43  ;;  %v4210_v29 = vpop.eup %4209  ;;  %4213 = vrcp.f32 %v1733_v8  ;;  %v1748_v33 = vmul.f32 %v4208_v4, %v5957_v22  ;;  %v6172_v49 = vpop.f32.mrf.mxu1 }
 0x6e9   :  { %4215 = vrcp.f32 %v2790_v55  ;;  %v3589_v12 = vadd.f32 -1.0, %v4210_v29 }
 0x6eb   :  { %v1181_v22 = vsel %vm1141_vm14, %v6127_v24, %v3589_v12  ;;  %v1821_v24 = vpop.f32.mrf.mxu2 }
 0x6ec   :  { %v2075_v27 = vpop.xlane.xlu2 %2074  ;;  %2256 = vrot.lane.b32.xlu1 %v2239_v48, %s4412_s4 }
 0x6ed   :  { %v4212_v42 = vpop.eup %4211  ;;  %v2085_v14 = vmax.f32 %v2075_v27, 1e-30 }
 0x6ee   :  { %v2805_v32 = vmul.f32 %v4212_v42, %v6014_v51  ;;  %v4214_v3 = vpop.eup %4213 }
 0x6ef   :  { %4217 = vrcp.f32 %v2085_v14  ;;  %v4216_v9 = vpop.eup %4215  ;;  %v1749_v54 = vmul.f32 %v4214_v3, %v5914_v16 }
 0x6f0   :  { %3617 = vmatmul.msk.f32.gmra.mxu2 %vm121_vm1, %v1748_v33  ;;  %3648 = vmatmul.msk.f32.gmra.mxu0 %vm121_vm1, %v2453_v21  ;;  %4219 = vrcp.f32 %v2086_v41  ;;  %v2806_v53 = vmul.f32 %v4216_v9, %v5966_v38  ;;  %v6203_v41 = vpop.permute.xlu0 %2483 }
 0x6f1   :  { %3663 = vmatmul.msk.f32.gmra.mxu1 %vm121_vm1, %v2805_v32  ;;  %4221 = vrcp.f32 %v2791_v6 }
 0x6f4   :  { %v2428_v57 = vpop.xlane.xlu2 %2427  ;;  %1199 = vrot.lane.b32.xlu1 %v1181_v22, %s4411_s13  ;;  %v6212_v22 = vadd.f32 %v6067_v5, %v6071_v56 }
 0x6f5   :  { %v4218_v51 = vpop.eup %4217  ;;  %v2438_v30 = vmax.f32 %v2428_v57, 1e-30 }
 0x6f6   :  { %v2101_v37 = vmul.f32 %v4218_v51, %v6024_v34  ;;  %v4220_v7 = vpop.eup %4219  ;;  %vm1142_vm9 = vcmp.gt.f32.partialorder %v6212_v22, 0.0 }
 0x6f7   :  { %4223 = vrcp.f32 %v2438_v30  ;;  %v4222_v0 = vpop.eup %4221  ;;  %v2102_v38 = vmul.f32 %v4220_v7, %v5977_v60 }
 0x6f8   :  { %3618 = vmatmul.msk.f32.gmra.mxu2 %vm121_vm1, %v1749_v54  ;;  %3633 = vmatmul.msk.f32.gmra.mxu3 %vm121_vm1, %v2101_v37  ;;  %4225 = vrcp.f32 %v2792_v58  ;;  %v2807_v26 = vmul.f32 %v4222_v0, %v5922_v10 }
 0x6f9   :  { %3664 = vmatmul.msk.f32.gmra.mxu1 %vm121_vm1, %v2806_v53  ;;  %v6169_v20 = vpop.permute.xlu1 %1777 }
 0x6fa   :  { %v1822_v23 = vadd.f32 %v1821_v24, %v6169_v20 }
 0x6fc   :  { %v2431_v16 = vpop.xlane.xlu2 %2430  ;;  %v1853_v28 = vmin.f32 %v1822_v23, 0.0  ;;  %vm1845_vm7 = vcmp.gt.f32.partialorder %v1822_v23, 0.0 }
 0x6fd   :  { %v4224_v34 = vpop.eup %4223  ;;  %v2439_v13 = vmax.f32 %v2431_v16, 1e-30 }
 0x6fe   :  { %v2454_v36 = vmul.f32 %v4224_v34, %v6030_v35  ;;  %v1861_v61 = vmul.f32 1.442695, %v1853_v28  ;;  %v4226_v15 = vpop.eup %4225  ;;  %v6184_v35 = vpop.f32.mrf.mxu0 }
 0x6ff   :  { %4227 = vrcp.f32 %v2439_v13  ;;  %v2808_v50 = vmul.f32 %v4226_v15, %v6012_v11 }
 0x700   :  { %3634 = vmatmul.msk.f32.gmra.mxu3 %vm121_vm1, %v2102_v38  ;;  %3649 = vmatmul.msk.f32.gmra.mxu0 %vm121_vm1, %v2454_v36  ;;  %4229 = vpow2.f32 %v1861_v61 }
 0x701   :  { %3665 = vmatmul.msk.f32.gmra.mxu1 %vm121_vm1, %v2807_v26 }
 0x704   :  { %v6180_v45 = vpop.permute.xlu2 %1424  ;;  %v2880_v43 = vpop.f32.mrf.mxu1 }
 0x705   :  { %v4228_v17 = vpop.eup %4227  ;;  %v1469_v60 = vadd.f32 %v6106_v19, %v6180_v45  ;;  %v1824_v19 = vpop.f32.mrf.mxu2  ;;  %v6208_v6 = vadd.f32 %v6112_v59, %v6180_v45  ;;  %v1150_v59 = vmin.f32 %v6212_v22, 0.0 }
 0x706   :  { %v4230_v62 = vpop.eup %4229  ;;  %v2455_v10 = vmul.f32 %v4228_v17, %v6044_v2  ;;  %v6194_v2 = vadd.f32 %v1824_v19, %v6169_v20  ;;  %v6197_v48 = vpop.f32.mrf.mxu0 }
 0x707   :  { %v3619_v8 = vadd.f32 -1.0, %v4230_v62  ;;  %v1500_v47 = vmin.f32 %v1469_v60, 0.0  ;;  %vm1492_vm15 = vcmp.gt.f32.partialorder %v1469_v60, 0.0  ;;  %v1501_v51 = vmin.f32 %v6208_v6, 0.0 }
 0x708   :  { %3650 = vmatmul.msk.f32.gmra.mxu0 %vm121_vm1, %v2455_v10  ;;  %v1854_v42 = vmin.f32 %v6194_v2, 0.0  ;;  %v1161_v26 = vmul.f32 1.442695, %v1150_v59  ;;  %v6231_v62 = vadd.f32 %v6172_v49, %v6180_v45  ;;  %vm1846_vm3 = vcmp.gt.f32.partialorder %v6194_v2, 0.0 }
 0x709   :  { %3666 = vmatmul.msk.f32.gmra.mxu1 %vm121_vm1, %v2808_v50  ;;  %v1885_v63 = vsel %vm1845_vm7, %v1822_v23, %v3619_v8  ;;  %v1508_v55 = vmul.f32 1.442695, %v1500_v47  ;;  %v1510_v16 = vmul.f32 1.442695, %v1501_v51  ;;  %vm1493_vm8 = vcmp.gt.f32.partialorder %v6208_v6, 0.0 }
 0x70a   :  { %1901 = vrot.lane.b32.xlu2 %v1885_v63, %s4413_s22  ;;  %v1863_v39 = vmul.f32 1.442695, %v1854_v42  ;;  %v6239_v63 = vadd.f32 %v6119_v44, %v6180_v45 }
 0x70b   :  { %4231 = vpow2.f32 %v1508_v55 }
 0x70c   :  { %v6191_v4 = vpop.permute.xlu2 %2836  ;;  %v2883_v27 = vpop.f32.mrf.mxu1  ;;  %v1502_v44 = vmin.f32 %v6239_v63, 0.0  ;;  %vm1494_vm13 = vcmp.gt.f32.partialorder %v6239_v63, 0.0 }
 0x70d   :  { %v2881_v11 = vadd.f32 %v2880_v43, %v6191_v4  ;;  %v6201_v32 = vadd.f32 %v2883_v27, %v6191_v4 }
 0x70f   :  { %v2912_v29 = vmin.f32 %v2881_v11, 0.0  ;;  %v2913_v9 = vmin.f32 %v6201_v32, 0.0  ;;  %vm2904_vm2 = vcmp.gt.f32.partialorder %v2881_v11, 0.0  ;;  %vm2905_vm6 = vcmp.gt.f32.partialorder %v6201_v32, 0.0 }
 0x711   :  { %v4232_v14 = vpop.eup %4231  ;;  %v2920_v33 = vmul.f32 1.442695, %v2912_v29  ;;  %v2922_v24 = vmul.f32 1.442695, %v2913_v9 }
 0x712   :  { %v3603_v21 = vadd.f32 -1.0, %v4232_v14  ;;  %v1827_v30 = vpop.f32.mrf.mxu2 }
 0x713   :  { %4233 = vpow2.f32 %v2920_v33  ;;  %v6220_v7 = vadd.f32 %v1827_v30, %v6169_v20  ;;  %v6248_v33 = vadd.f32 %v6083_v46, %v6071_v56  ;;  %v1512_v30 = vmul.f32 1.442695, %v1502_v44 }
 0x714   :  { %v1532_v12 = vsel %vm1492_vm15, %v1469_v60, %v3603_v21  ;;  %4235 = vpow2.f32 %v1863_v39 }
 0x715   :  { %1548 = vrot.lane.b32.xlu0 %v1532_v12, %s4414_s23  ;;  %v1855_v15 = vmin.f32 %v6220_v7, 0.0  ;;  %vm1847_vm10 = vcmp.gt.f32.partialorder %v6220_v7, 0.0  ;;  %vm1143_vm14 = vcmp.gt.f32.partialorder %v6248_v33, 0.0 }
 0x716   :  { %v2527_v3 = vpop.f32.mrf.mxu0 }
 0x717   :  { %v2528_v57 = vadd.f32 %v2527_v3, %v6203_v41  ;;  %v1865_v8 = vmul.f32 1.442695, %v1855_v15 }
 0x719   :  { %v2559_v54 = vmin.f32 %v2528_v57, 0.0  ;;  %v4234_v37 = vpop.eup %4233  ;;  %vm2551_vm4 = vcmp.gt.f32.partialorder %v2528_v57, 0.0 }
 0x71a   :  { %v2180_v53 = vpop.f32.mrf.mxu3  ;;  %v3667_v5 = vadd.f32 -1.0, %v4234_v37  ;;  %v4236_v13 = vpop.eup %4235 }
 0x71b   :  { %v2567_v58 = vmul.f32 1.442695, %v2559_v54  ;;  %v2181_v23 = vadd.f32 %v2180_v53, %v6108_v25  ;;  %v3620_v60 = vadd.f32 -1.0, %v4236_v13 }
 0x71c   :  { %v1196_v0 = vpop.permute.xlu1 %1195  ;;  %v2944_v34 = vsel %vm2904_vm2, %v2881_v11, %v3667_v5 }
 0x71d   :  { %4237 = vpow2.f32 %v2567_v58  ;;  %v2208_v28 = vmin.f32 %v2181_v23, 0.0  ;;  %1220 = vst.msk [vmem:[#allocation2] sm:$0xff] %vm1219_vm0, %v1196_v0  ;;  %2960 = vrot.lane.b32.xlu2 %v2944_v34, %s4415_s24  ;;  %v1886_v11 = vsel %vm1846_vm3, %v6194_v2, %v3620_v60  ;;  %vm2200_vm5 = vcmp.gt.f32.partialorder %v2181_v23, 0.0 }
 0x71e   :  { %v2530_v38 = vpop.f32.mrf.mxu0  ;;  %4239 = vpow2.f32 %v2922_v24 }
 0x71f   :  { %v2218_v36 = vmul.f32 1.442695, %v2208_v28  ;;  %v6225_v61 = vadd.f32 %v2530_v38, %v6203_v41  ;;  %4241 = vpow2.f32 %v1510_v16 }
 0x721   :  { %4243 = vpow2.f32 %v2218_v36  ;;  %v2560_v17 = vmin.f32 %v6225_v61, 0.0  ;;  %vm2552_vm11 = vcmp.gt.f32.partialorder %v6225_v61, 0.0 }
 0x722   :  { %v2183_v43 = vpop.f32.mrf.mxu3  ;;  %4245 = vpow2.f32 %v1161_v26 }
 0x723   :  { %v4238_v10 = vpop.eup %4237  ;;  %v6234_v50 = vadd.f32 %v2183_v43, %v6108_v25  ;;  %v2569_v19 = vmul.f32 1.442695, %v2560_v17  ;;  %4247 = vpow2.f32 %v1865_v8 }
 0x724   :  { %v3651_v47 = vadd.f32 -1.0, %v4238_v10  ;;  %v4240_v55 = vpop.eup %4239 }
 0x725   :  { %v2209_v49 = vmin.f32 %v6234_v50, 0.0  ;;  %v4242_v29 = vpop.eup %4241  ;;  %1903 = vrot.lane.b32.xlu2 %v1886_v11, %s4413_s22  ;;  %v3668_v12 = vadd.f32 -1.0, %v4240_v55  ;;  %4249 = vpow2.f32 %v2569_v19  ;;  %vm2201_vm12 = vcmp.gt.f32.partialorder %v6234_v50, 0.0 }
 0x726   :  { %v2591_v27 = vsel %vm2551_vm4, %v2528_v57, %v3651_v47  ;;  %v2533_v39 = vpop.f32.mrf.mxu0  ;;  %v3604_v9 = vadd.f32 -1.0, %v4242_v29  ;;  %v1151_v57 = vmin.f32 %v6248_v33, 0.0  ;;  %vm1144_vm4 = vcmp.gt.f32.partialorder %v6098_v52, 0.0 }
 0x727   :  { %v4244_v42 = vpop.eup %4243  ;;  %2607 = vrot.lane.b32.xlu0 %v2591_v27, %s4416_s25  ;;  %v2220_v2 = vmul.f32 1.442695, %v2209_v49  ;;  %v6255_v46 = vadd.f32 %v2533_v39, %v6203_v41  ;;  %v2945_v51 = vsel %vm2905_vm6, %v6201_v32, %v3668_v12 }
 0x728   :  { %v3637_v14 = vadd.f32 -1.0, %v4244_v42  ;;  %v4246_v21 = vpop.eup %4245  ;;  %v1533_v53 = vsel %vm1493_vm8, %v6208_v6, %v3604_v9  ;;  %v1163_v58 = vmul.f32 1.442695, %v1151_v57  ;;  %v6271_v6 = vadd.f32 %v6130_v31, %v6180_v45 }
 0x729   :  { %4251 = vpow2.f32 %v2220_v2  ;;  %v4248_v54 = vpop.eup %4247  ;;  %v3590_v59 = vadd.f32 -1.0, %v4246_v21  ;;  %v2561_v5 = vmin.f32 %v6255_v46, 0.0  ;;  %vm2553_vm15 = vcmp.gt.f32.partialorder %v6255_v46, 0.0 }
 0x72a   :  { %v2240_v3 = vsel %vm2200_vm5, %v2181_v23, %v3637_v14  ;;  %v2186_v37 = vpop.f32.mrf.mxu3  ;;  %v3621_v23 = vadd.f32 -1.0, %v4248_v54  ;;  %4253 = vpow2.f32 %v1512_v30  ;;  %v1503_v43 = vmin.f32 %v6271_v6, 0.0 }
 0x72b   :  { %2258 = vrot.lane.b32.xlu1 %v2240_v3, %s4412_s4  ;;  %v4250_v24 = vpop.eup %4249  ;;  %v6264_v0 = vadd.f32 %v2186_v37, %v6108_v25  ;;  %v1182_v16 = vsel %vm1142_vm9, %v6212_v22, %v3590_v59  ;;  %4255 = vpow2.f32 %v1163_v58  ;;  %v2571_v34 = vmul.f32 1.442695, %v2561_v5 }
 0x72c   :  { %v3652_v32 = vadd.f32 -1.0, %v4250_v24  ;;  %v1887_v36 = vsel %vm1847_vm10, %v6220_v7, %v3621_v23  ;;  %v1514_v49 = vmul.f32 1.442695, %v1503_v43  ;;  %v1134_v37 = vadd.f32 %v6184_v35, %v6071_v56 }
 0x72d   :  { %2962 = vrot.lane.b32.xlu2 %v2945_v51, %s4415_s24  ;;  %v2210_v13 = vmin.f32 %v6264_v0, 0.0  ;;  %4257 = vpow2.f32 %v2571_v34  ;;  %vm2202_vm2 = vcmp.gt.f32.partialorder %v6264_v0, 0.0  ;;  %vm1495_vm3 = vcmp.gt.f32.partialorder %v6271_v6, 0.0 }
 0x72e   :  { %v2592_v15 = vsel %vm2552_vm11, %v6225_v61, %v3652_v32  ;;  %v2536_v8 = vpop.f32.mrf.mxu0  ;;  %v1152_v61 = vmin.f32 %v6098_v52, 0.0  ;;  %v1153_v23 = vmin.f32 %v1134_v37, 0.0  ;;  %vm1145_vm9 = vcmp.gt.f32.partialorder %v1134_v37, 0.0 }
 0x72f   :  { %1550 = vrot.lane.b32.xlu0 %v1533_v53, %s4414_s23  ;;  %v4252_v28 = vpop.eup %4251  ;;  %v2222_v60 = vmul.f32 1.442695, %v2210_v13  ;;  %v2537_v19 = vadd.f32 %v2536_v8, %v6203_v41 }
 0x730   :  { %v3638_v26 = vadd.f32 -1.0, %v4252_v28  ;;  %v4254_v17 = vpop.eup %4253 }
 0x731   :  { %v4256_v10 = vpop.eup %4255  ;;  %v3605_v55 = vadd.f32 -1.0, %v4254_v17  ;;  %v2562_v14 = vmin.f32 %v2537_v19, 0.0  ;;  %vm2554_vm5 = vcmp.gt.f32.partialorder %v2537_v19, 0.0 }
 0x732   :  { %v2241_v47 = vsel %vm2201_vm12, %v6234_v50, %v3638_v26  ;;  %v2189_v11 = vpop.f32.mrf.mxu3  ;;  %v3591_v27 = vadd.f32 -1.0, %v4256_v10  ;;  %v1165_v50 = vmul.f32 1.442695, %v1152_v61 }
 0x733   :  { %1201 = vrot.lane.b32.xlu1 %v1182_v16, %s4411_s13  ;;  %v1534_v29 = vsel %vm1494_vm13, %v6239_v63, %v3605_v55  ;;  %v4258_v42 = vpop.eup %4257  ;;  %v2190_v44 = vadd.f32 %v2189_v11, %v6108_v25  ;;  %v1481_v63 = vadd.f32 %v6139_v18, %v6180_v45  ;;  %v2573_v9 = vmul.f32 1.442695, %v2562_v14 }
 0x734   :  { %v3653_v12 = vadd.f32 -1.0, %v4258_v42  ;;  %v1183_v2 = vsel %vm1143_vm14, %v6248_v33, %v3591_v27  ;;  %v3008_v27 = vld [vmem:[%s6678_s5 + $0x38] sm:$0xff]  ;;  %v6329_v42 = vadd.f32 %v6149_v40, %v6180_v45 }
 0x735   :  { %v2886_v38 = vpop.f32.mrf.mxu1  ;;  %1905 = vrot.lane.b32.xlu2 %v1887_v36, %s4413_s22  ;;  %v2211_v57 = vmin.f32 %v2190_v44, 0.0  ;;  %v1504_v53 = vmin.f32 %v1481_v63, 0.0  ;;  %vm2203_vm6 = vcmp.gt.f32.partialorder %v2190_v44, 0.0  ;;  %vm1496_vm8 = vcmp.gt.f32.partialorder %v1481_v63, 0.0  ;;  %3041 = vmatpush.msrb.mxu2 %v3008_v27 }
 0x736   :  { %v2887_v22 = vadd.f32 %v2886_v38, %v6191_v4  ;;  %v2593_v54 = vsel %vm2553_vm15, %v6255_v46, %v3653_v12  ;;  %vm1497_vm14 = vcmp.gt.f32.partialorder %v6329_v42, 0.0 }
 0x737   :  { %2609 = vrot.lane.b32.xlu0 %v2592_v15, %s4416_s25  ;;  %v2224_v18 = vmul.f32 1.442695, %v2211_v57  ;;  %v1516_v46 = vmul.f32 1.442695, %v1504_v53 }
 0x738   :  { %v2914_v31 = vmin.f32 %v2887_v22, 0.0  ;;  %vm2906_vm7 = vcmp.gt.f32.partialorder %v2887_v22, 0.0 }
 0x73a   :  { %v2924_v7 = vmul.f32 1.442695, %v2914_v31 }
 0x73b   :  { %2260 = vrot.lane.b32.xlu1 %v2241_v47, %s4412_s4 }
 0x73c   :  { %4259 = vpow2.f32 %v2924_v7 }
 0x73d   :  { %4261 = vpow2.f32 %v2222_v60 }
 0x73e   :  { %4263 = vpow2.f32 %v1514_v49 }
 0x73f   :  { %1552 = vrot.lane.b32.xlu0 %v1534_v29, %s4414_s23  ;;  %4265 = vpow2.f32 %v1165_v50 }
 0x740   :  { %4267 = vpow2.f32 %v2573_v9 }
 0x741   :  { %4269 = vpow2.f32 %v2224_v18 }
 0x742   :  { %v4260_v21 = vpop.eup %4259  ;;  %4271 = vpow2.f32 %v1516_v46 }
 0x743   :  { %v4262_v39 = vpop.eup %4261  ;;  %v3669_v3 = vadd.f32 -1.0, %v4260_v21  ;;  %1203 = vrot.lane.b32.xlu1 %v1183_v2, %s4411_s13 }
 0x744   :  { %v3639_v30 = vadd.f32 -1.0, %v4262_v39  ;;  %v4264_v33 = vpop.eup %4263  ;;  %v1505_v39 = vmin.f32 %v6329_v42, 0.0 }
 0x745   :  { %v2946_v51 = vsel %vm2906_vm7, %v2887_v22, %v3669_v3  ;;  %v4266_v59 = vpop.eup %4265  ;;  %v3606_v58 = vadd.f32 -1.0, %v4264_v33 }
 0x746   :  { %2964 = vrot.lane.b32.xlu2 %v2946_v51, %s4415_s24  ;;  %v2242_v24 = vsel %vm2202_vm2, %v6264_v0, %v3639_v30  ;;  %v3592_v32 = vadd.f32 -1.0, %v4266_v59  ;;  %v4268_v16 = vpop.eup %4267  ;;  %v1167_v0 = vmul.f32 1.442695, %v1153_v23  ;;  %v1518_v51 = vmul.f32 1.442695, %v1505_v39 }
 0x747   :  { %2611 = vrot.lane.b32.xlu0 %v2593_v54, %s4416_s25  ;;  %v1535_v35 = vsel %vm1495_vm3, %v6271_v6, %v3606_v58  ;;  %v3654_v28 = vadd.f32 -1.0, %v4268_v16  ;;  %v4270_v13 = vpop.eup %4269  ;;  %v3007_v54 = vld [vmem:[%s6678_s5 + $0x30] sm:$0xff]  ;;  %vm1572_vm2 = vcmask 261312   ;;  %vm1925_vm3 = vcmask 326912  }
 0x748   :  { %v1184_v34 = vsel %vm1144_vm4, %v6098_v52, %v3592_v32  ;;  %4273 = vpow2.f32 %v1167_v0  ;;  %v3640_v38 = vadd.f32 -1.0, %v4270_v13  ;;  %v4272_v6 = vpop.eup %4271  ;;  %3042 = vmatpush.msrb.mxu2 %v3007_v54  ;;  %v3005_v13 = vld [vmem:[%s6678_s5 + $0x20] sm:$0xff]  ;;  %vm2278_vm4 = vcmask 392512  }
 0x749   :  { %v2594_v26 = vsel %vm2554_vm5, %v2537_v19, %v3654_v28  ;;  %v3607_v15 = vadd.f32 -1.0, %v4272_v6 }
 0x74a   :  { %v2243_v22 = vsel %vm2203_vm6, %v2190_v44, %v3640_v38  ;;  %v6359_v38 = vadd.f32 %v6161_v1, %v6180_v45 }
 0x74b   :  { %2262 = vrot.lane.b32.xlu1 %v2242_v24, %s4412_s4  ;;  %v1536_v7 = vsel %vm1496_vm8, %v1481_v63, %v3607_v15 }
 0x74c   :  { %vm1498_vm8 = vcmp.gt.f32.partialorder %v6359_v38, 0.0 }
 0x74e   :  { %v6305_v5 = vpop.permute.xlu1 %2254  ;;  %v4274_v17 = vpop.eup %4273 }
 0x74f   :  { %1554 = vrot.lane.b32.xlu0 %v1535_v35, %s4414_s23  ;;  %v3593_v47 = vadd.f32 -1.0, %v4274_v17 }
 0x751   :  { %v1185_v49 = vsel %vm1145_vm9, %v1134_v37, %v3593_v47 }
 0x753   :  { %1205 = vrot.lane.b32.xlu1 %v1184_v34, %s4411_s13  ;;  %v3006_v34 = vld [vmem:[%s6678_s5 + $0x28] sm:$0xff] }
 0x754   :  { %3043 = vmatpush.msrb.mxu2 %v3006_v34 }
 0x756   :  { %v1198_v36 = vpop.permute.xlu1 %1197  ;;  %3044 = vmatpush.msrb.mxu2 %v3005_v13 }
 0x757   :  { %1221 = vst.msk [vmem:[#allocation2 + $0x8] sm:$0xff] %vm1219_vm0, %v1198_v36  ;;  %2613 = vrot.lane.b32.xlu0 %v2594_v26, %s4416_s25 }
 0x75b   :  { %v1830_v31 = vpop.f32.mrf.mxu2  ;;  %2264 = vrot.lane.b32.xlu1 %v2243_v22, %s4412_s4  ;;  %v3004_v22 = vld [vmem:[%s6678_s5 + $0x18] sm:$0xff] }
 0x75c   :  { %v1831_v52 = vadd.f32 %v1830_v31, %v6169_v20  ;;  %v1506_v31 = vmin.f32 %v6359_v38, 0.0  ;;  %3045 = vmatpush.msrb.mxu2 %v3004_v22 }
 0x75d   :  { %v2889_v60 = vpop.f32.mrf.mxu1 }
 0x75e   :  { %v1856_v43 = vmin.f32 %v1831_v52, 0.0  ;;  %v2890_v10 = vadd.f32 %v2889_v60, %v6191_v4  ;;  %v6317_v8 = vpop.permute.xlu1 %2256  ;;  %vm1848_vm10 = vcmp.gt.f32.partialorder %v1831_v52, 0.0 }
 0x75f   :  { %1556 = vrot.lane.b32.xlu0 %v1536_v7, %s4414_s23 }
 0x760   :  { %v1867_v55 = vmul.f32 1.442695, %v1856_v43  ;;  %v2915_v61 = vmin.f32 %v2890_v10, 0.0  ;;  %vm2907_vm11 = vcmp.gt.f32.partialorder %v2890_v10, 0.0 }
 0x762   :  { %4275 = vpow2.f32 %v1867_v55  ;;  %v2926_v19 = vmul.f32 1.442695, %v2915_v61  ;;  %v1520_v55 = vmul.f32 1.442695, %v1506_v31 }
 0x763   :  { %v1833_v11 = vpop.f32.mrf.mxu2  ;;  %1207 = vrot.lane.b32.xlu1 %v1185_v49, %s4411_s13  ;;  %v3003_v49 = vld [vmem:[%s6678_s5 + $0x10] sm:$0xff] }
 0x764   :  { %v6322_v29 = vadd.f32 %v1833_v11, %v6169_v20  ;;  %4277 = vpow2.f32 %v2926_v19  ;;  %3046 = vmatpush.msrb.mxu2 %v3003_v49 }
 0x765   :  { %v2539_v50 = vpop.f32.mrf.mxu0 }
 0x766   :  { %v1857_v14 = vmin.f32 %v6322_v29, 0.0  ;;  %v2540_v44 = vadd.f32 %v2539_v50, %v6203_v41  ;;  %v1200_v21 = vpop.permute.xlu1 %1199  ;;  %vm1849_vm13 = vcmp.gt.f32.partialorder %v6322_v29, 0.0 }
 0x767   :  { %1222 = vst.msk [vmem:[#allocation2 + $0x10] sm:$0xff] %vm1219_vm0, %v1200_v21 }
 0x768   :  { %v4276_v12 = vpop.eup %4275  ;;  %v2563_v2 = vmin.f32 %v2540_v44, 0.0  ;;  %v1869_v63 = vmul.f32 1.442695, %v1857_v14  ;;  %vm2555_vm12 = vcmp.gt.f32.partialorder %v2540_v44, 0.0 }
 0x769   :  { %v3622_v3 = vadd.f32 -1.0, %v4276_v12 }
 0x76a   :  { %v2575_v9 = vmul.f32 1.442695, %v2563_v2  ;;  %v4278_v57 = vpop.eup %4277 }
 0x76b   :  { %v1888_v40 = vsel %vm1848_vm10, %v1831_v52, %v3622_v3  ;;  %v3670_v18 = vadd.f32 -1.0, %v4278_v57  ;;  %v1836_v53 = vpop.f32.mrf.mxu2 }
 0x76c   :  { %4279 = vpow2.f32 %v2575_v9  ;;  %1907 = vrot.lane.b32.xlu2 %v1888_v40, %s4413_s22  ;;  %v6348_v23 = vadd.f32 %v1836_v53, %v6169_v20 }
 0x76d   :  { %v2542_v30 = vpop.f32.mrf.mxu0  ;;  %4281 = vpow2.f32 %v1869_v63  ;;  %v2947_v16 = vsel %vm2907_vm11, %v2890_v10, %v3670_v18  ;;  %v6374_v10 = vadd.f32 %v6197_v48, %v6071_v56 }
 0x76e   :  { %v6340_v33 = vadd.f32 %v2542_v30, %v6203_v41  ;;  %v2892_v37 = vpop.f32.mrf.mxu1  ;;  %4283 = vpow2.f32 %v1518_v51  ;;  %v1858_v6 = vmin.f32 %v6348_v23, 0.0  ;;  %v3001_v30 = vld [vmem:[%s6678_s5] sm:$0xff]  ;;  %vm1850_vm5 = vcmp.gt.f32.partialorder %v6348_v23, 0.0 }
 0x76f   :  { %v6343_v59 = vadd.f32 %v2892_v37, %v6191_v4  ;;  %v1154_v14 = vmin.f32 %v6374_v10, 0.0  ;;  %vm1146_vm10 = vcmp.gt.f32.partialorder %v6374_v10, 0.0 }
 0x770   :  { %v2564_v24 = vmin.f32 %v6340_v33, 0.0  ;;  %v1871_v45 = vmul.f32 1.442695, %v1858_v6  ;;  %vm2556_vm15 = vcmp.gt.f32.partialorder %v6340_v33, 0.0 }
 0x771   :  { %v2916_v58 = vmin.f32 %v6343_v59, 0.0  ;;  %vm2908_vm7 = vcmp.gt.f32.partialorder %v6343_v59, 0.0  ;;  %v1169_v9 = vmul.f32 1.442695, %v1154_v14 }
 0x772   :  { %v4280_v46 = vpop.eup %4279  ;;  %v2577_v28 = vmul.f32 1.442695, %v2564_v24 }
 0x773   :  { %v3655_v35 = vadd.f32 -1.0, %v4280_v46  ;;  %v2928_v32 = vmul.f32 1.442695, %v2916_v58  ;;  %v4282_v0 = vpop.eup %4281  ;;  %v1839_v50 = vpop.f32.mrf.mxu2 }
 0x774   :  { %2966 = vrot.lane.b32.xlu2 %v2947_v16, %s4415_s24  ;;  %v4284_v26 = vpop.eup %4283  ;;  %v3623_v15 = vadd.f32 -1.0, %v4282_v0  ;;  %v6398_v2 = vadd.f32 %v1839_v50, %v6169_v20  ;;  %v1902_v58 = vpop.permute.xlu2 %1901 }
 0x775   :  { %v2595_v36 = vsel %vm2555_vm12, %v2540_v44, %v3655_v35  ;;  %4285 = vpow2.f32 %v2928_v32  ;;  %v3608_v1 = vadd.f32 -1.0, %v4284_v26  ;;  %vm2631_vm12 = vcmask 458112  }
 0x776   :  { %2615 = vrot.lane.b32.xlu0 %v2595_v36, %s4416_s25  ;;  %v2895_v17 = vpop.f32.mrf.mxu1  ;;  %4287 = vpow2.f32 %v2577_v28  ;;  %v1889_v43 = vsel %vm1849_vm13, %v6322_v29, %v3623_v15  ;;  %v3002_v29 = vld [vmem:[%s6678_s5 + $0x8] sm:$0xff]  ;;  %v1859_v18 = vmin.f32 %v6398_v2, 0.0  ;;  %vm2984_vm13 = vcmask 523712  }
 0x777   :  { %v6369_v52 = vadd.f32 %v2895_v17, %v6191_v4  ;;  %v1537_v19 = vsel %vm1497_vm14, %v6329_v42, %v3608_v1  ;;  %4289 = vpow2.f32 %v1871_v45  ;;  %3047 = vmatpush.msrb.mxu2 %v3002_v29  ;;  %vm1851_vm14 = vcmp.gt.f32.partialorder %v6398_v2, 0.0 }
 0x778   :  { %4291 = vpow2.f32 %v1520_v55  ;;  %v1873_v16 = vmul.f32 1.442695, %v1859_v18 }
 0x779   :  { %v2917_v56 = vmin.f32 %v6369_v52, 0.0  ;;  %3048 = vmatpush.msrb.mxu2 %v3001_v30  ;;  %vm2909_vm9 = vcmp.gt.f32.partialorder %v6369_v52, 0.0 }
 0x77b   :  { %v2192_v60 = vpop.f32.mrf.mxu3  ;;  %v4286_v7 = vpop.eup %4285  ;;  %v2930_v39 = vmul.f32 1.442695, %v2917_v56 }
 0x77c   :  { %v6377_v47 = vadd.f32 %v2192_v60, %v6108_v25  ;;  %1909 = vrot.lane.b32.xlu2 %v1889_v43, %s4413_s22  ;;  %v4288_v11 = vpop.eup %4287  ;;  %v3671_v27 = vadd.f32 -1.0, %v4286_v7  ;;  %v1842_v31 = vpop.f32.mrf.mxu2 }
 0x77d   :  { %v2545_v61 = vpop.f32.mrf.mxu0  ;;  %v3656_v21 = vadd.f32 -1.0, %v4288_v11  ;;  %v4290_v40 = vpop.eup %4289  ;;  %v6437_v43 = vadd.f32 %v1842_v31, %v6169_v20 }
 0x77e   :  { %v2212_v48 = vmin.f32 %v6377_v47, 0.0  ;;  %1558 = vrot.lane.b32.xlu0 %v1537_v19, %s4414_s23  ;;  %v6392_v42 = vadd.f32 %v2545_v61, %v6203_v41  ;;  %v2948_v63 = vsel %vm2908_vm7, %v6343_v59, %v3671_v27  ;;  %v4292_v37 = vpop.eup %4291  ;;  %v3624_v53 = vadd.f32 -1.0, %v4290_v40  ;;  %v2961_v55 = vpop.permute.xlu2 %2960 }
 0x77f   :  { %v2596_v54 = vsel %vm2556_vm15, %v6340_v33, %v3656_v21  ;;  %v1507_v33 = vmin.f32 %v6231_v62, 0.0  ;;  %v3609_v32 = vadd.f32 -1.0, %v4292_v37  ;;  %vm2204_vm6 = vcmp.gt.f32.partialorder %v6377_v47, 0.0 }
 0x780   :  { %v2226_v44 = vmul.f32 1.442695, %v2212_v48  ;;  %v2565_v12 = vmin.f32 %v6392_v42, 0.0  ;;  %v1890_v13 = vsel %vm1850_vm5, %v6348_v23, %v3624_v53  ;;  %vm2557_vm11 = vcmp.gt.f32.partialorder %v6392_v42, 0.0 }
 0x781   :  { %v1522_v22 = vmul.f32 1.442695, %v1507_v33  ;;  %v1860_v56 = vmin.f32 %v6437_v43, 0.0  ;;  %vm1499_vm15 = vcmp.gt.f32.partialorder %v6231_v62, 0.0 }
 0x782   :  { %4293 = vpow2.f32 %v2226_v44  ;;  %v2579_v57 = vmul.f32 1.442695, %v2565_v12 }
 0x783   :  { %v2195_v3 = vpop.f32.mrf.mxu3  ;;  %4295 = vpow2.f32 %v2930_v39  ;;  %v1875_v50 = vmul.f32 1.442695, %v1860_v56 }
 0x784   :  { %v6403_v51 = vadd.f32 %v2195_v3, %v6108_v25  ;;  %2968 = vrot.lane.b32.xlu2 %v2948_v63, %s4415_s24  ;;  %v2898_v25 = vpop.f32.mrf.mxu1  ;;  %4297 = vpow2.f32 %v1169_v9 }
 0x785   :  { %4299 = vpow2.f32 %v2579_v57  ;;  %v2548_v35 = vpop.f32.mrf.mxu0  ;;  %v6418_v28 = vadd.f32 %v2898_v25, %v6191_v4 }
 0x786   :  { %2617 = vrot.lane.b32.xlu0 %v2596_v54, %s4416_s25  ;;  %v2213_v59 = vmin.f32 %v6403_v51, 0.0  ;;  %v6425_v26 = vadd.f32 %v2548_v35, %v6203_v41  ;;  %4301 = vpow2.f32 %v1873_v16  ;;  %vm2205_vm7 = vcmp.gt.f32.partialorder %v6403_v51, 0.0  ;;  %v1904_v3 = vpop.permute.xlu2 %1903 }
 0x787   :  { %v1549_v24 = vpop.permute.xlu0 %1548  ;;  %v2918_v23 = vmin.f32 %v6418_v28, 0.0  ;;  %vm2910_vm5 = vcmp.gt.f32.partialorder %v6418_v28, 0.0 }
 0x788   :  { %1573 = vst.msk [vmem:[#allocation2] sm:$0xff] %vm1572_vm2, %v1549_v24  ;;  %v4294_v46 = vpop.eup %4293  ;;  %v2228_v34 = vmul.f32 1.442695, %v2213_v59  ;;  %v2566_v1 = vmin.f32 %v6425_v26, 0.0 }
 0x789   :  { %1926 = vst.msk [vmem:[#allocation2] sm:$0xff] %vm1925_vm3, %v1902_v58  ;;  %v3641_v0 = vadd.f32 -1.0, %v4294_v46  ;;  %v4296_v36 = vpop.eup %4295 }
 0x78a   :  { %2279 = vst.msk [vmem:[#allocation2] sm:$0xff] %vm2278_vm4, %v6305_v5  ;;  %v4298_v15 = vpop.eup %4297  ;;  %v1538_v5 = vsel %vm1498_vm8, %v6359_v38, %v3609_v32  ;;  %v3672_v41 = vadd.f32 -1.0, %v4296_v36  ;;  %4303 = vpow2.f32 %v2228_v34  ;;  %v2932_v38 = vmul.f32 1.442695, %v2918_v23 }
 0x78b   :  { %v2244_v6 = vsel %vm2204_vm6, %v6377_v47, %v3641_v0  ;;  %v4300_v17 = vpop.eup %4299  ;;  %v3594_v45 = vadd.f32 -1.0, %v4298_v15  ;;  %4305 = vpow2.f32 %v1522_v22  ;;  %v2581_v61 = vmul.f32 1.442695, %v2566_v1  ;;  %v3074_v1 = vld [vmem:[%s6679_s6] sm:$0xf] }
 0x78c   :  { %1911 = vrot.lane.b32.xlu2 %v1890_v13, %s4413_s22  ;;  %2266 = vrot.lane.b32.xlu1 %v2244_v6, %s4412_s4  ;;  %v3657_v60 = vadd.f32 -1.0, %v4300_v17  ;;  %v2949_v7 = vsel %vm2909_vm9, %v6369_v52, %v3672_v41  ;;  %v4302_v47 = vpop.eup %4301  ;;  %4307 = vpow2.f32 %v2932_v38  ;;  %v2901_v48 = vpop.f32.mrf.mxu1  ;;  %vm2558_vm6 = vcmp.gt.f32.partialorder %v6425_v26, 0.0 }
 0x78d   :  { %v1186_v19 = vsel %vm1146_vm10, %v6374_v10, %v3594_v45  ;;  %v3625_v52 = vadd.f32 -1.0, %v4302_v47  ;;  %4309 = vpow2.f32 %v2581_v61  ;;  %v2902_v14 = vadd.f32 %v2901_v48, %v6191_v4 }
 0x78e   :  { %1560 = vrot.lane.b32.xlu0 %v1538_v5, %s4414_s23  ;;  %v2597_v20 = vsel %vm2557_vm11, %v6392_v42, %v3657_v60  ;;  %4311 = vpow2.f32 %v1875_v50  ;;  %v2963_v53 = vpop.permute.xlu2 %2962  ;;  %vm1852_vm8 = vcmp.gt.f32.partialorder %v6437_v43, 0.0  ;;  %vm3100_vm10 = vcmask 1043456  }
 0x78f   :  { %v1891_v42 = vsel %vm1851_vm14, %v6398_v2, %v3625_v52  ;;  %v2919_v63 = vmin.f32 %v2902_v14, 0.0  ;;  %vm2911_vm9 = vcmp.gt.f32.partialorder %v2902_v14, 0.0  ;;  %3683 = vmatpush.msk.msrb.mxu3 %vm3100_vm10, %v3074_v1 }
 0x790   :  { %v4304_v49 = vpop.eup %4303 }
 0x791   :  { %v4306_v11 = vpop.eup %4305  ;;  %v3642_v29 = vadd.f32 -1.0, %v4304_v49  ;;  %v2934_v57 = vmul.f32 1.442695, %v2919_v63  ;;  %v4417_v63 = vmov 1  }
 0x792   :  { %v3610_v27 = vadd.f32 -1.0, %v4306_v11  ;;  %v4308_v44 = vpop.eup %4307  ;;  %3919 = vset.pattern.permute.xlu1 %v4417_v63  ;;  %3920 = vset.pattern.permute.xlu0 %v4417_v63 }
 0x793   :  { %v2245_v21 = vsel %vm2205_vm7, %v6403_v51, %v3642_v29  ;;  %v4310_v39 = vpop.eup %4309  ;;  %v3673_v9 = vadd.f32 -1.0, %v4308_v44  ;;  %4313 = vpow2.f32 %v2934_v57  ;;  %3921 = vset.pattern.permute.xlu2 %v4417_v63 }
 0x794   :  { %2970 = vrot.lane.b32.xlu2 %v2949_v7, %s4415_s24  ;;  %1209 = vrot.lane.b32.xlu1 %v1186_v19, %s4411_s13  ;;  %v1539_v4 = vsel %vm1499_vm15, %v6231_v62, %v3610_v27  ;;  %v3658_v2 = vadd.f32 -1.0, %v4310_v39  ;;  %v4312_v30 = vpop.eup %4311 }
 0x795   :  { %v2950_v62 = vsel %vm2910_vm5, %v6418_v28, %v3673_v9  ;;  %v3626_v18 = vadd.f32 -1.0, %v4312_v30 }
 0x796   :  { %2619 = vrot.lane.b32.xlu0 %v2597_v20, %s4416_s25  ;;  %v2598_v37 = vsel %vm2558_vm6, %v6425_v26, %v3658_v2  ;;  %v1906_v46 = vpop.permute.xlu2 %1905 }
 0x799   :  { %v2608_v10 = vpop.permute.xlu0 %2607  ;;  %v4314_v59 = vpop.eup %4313 }
 0x79a   :  { %2632 = vst.msk [vmem:[#allocation2] sm:$0xff] %vm2631_vm12, %v2608_v10  ;;  %v3674_v58 = vadd.f32 -1.0, %v4314_v59 }
 0x79b   :  { %2985 = vst.msk [vmem:[#allocation2] sm:$0xff] %vm2984_vm13, %v2961_v55 }
 0x79c   :  { %1913 = vrot.lane.b32.xlu2 %v1891_v42, %s4413_s22  ;;  %2268 = vrot.lane.b32.xlu1 %v2245_v21, %s4412_s4  ;;  %v2951_v32 = vsel %vm2911_vm9, %v2902_v14, %v3674_v58 }
 0x79d   :  { %v2259_v12 = vpop.permute.xlu1 %2258 }
 0x79e   :  { %1562 = vrot.lane.b32.xlu0 %v1539_v4, %s4414_s23 }
 0x7a0   :  { %v2965_v28 = vpop.permute.xlu2 %2964 }
 0x7a1   :  { %v1551_v40 = vpop.permute.xlu0 %1550 }
 0x7a2   :  { %1574 = vst.msk [vmem:[#allocation2 + $0x8] sm:$0xff] %vm1572_vm2, %v1551_v40  ;;  %v2993_v51 = vld [vmem:[#allocation2] sm:$0xff] }
 0x7a3   :  { %1927 = vst.msk [vmem:[#allocation2 + $0x8] sm:$0xff] %vm1925_vm3, %v1904_v3  ;;  %3675 = vmatmul.msk.f32.vlgmr.msrb.gmra.mxu2 %vm121_vm1, %v2993_v51 }
 0x7a4   :  { %2280 = vst.msk [vmem:[#allocation2 + $0x8] sm:$0xff] %vm2278_vm4, %v6317_v8  ;;  %2972 = vrot.lane.b32.xlu2 %v2950_v62, %s4415_s24  ;;  %v1892_v8 = vsel %vm1852_vm8, %v6437_v43, %v3626_v18 }
 0x7a5   :  { %v1202_v54 = vpop.permute.xlu1 %1201 }
 0x7a6   :  { %1223 = vst.msk [vmem:[#allocation2 + $0x18] sm:$0xff] %vm1219_vm0, %v1202_v54  ;;  %2621 = vrot.lane.b32.xlu0 %v2598_v37, %s4416_s25 }
 0x7a9   :  { %v2610_v25 = vpop.permute.xlu0 %2609 }
 0x7aa   :  { %2633 = vst.msk [vmem:[#allocation2 + $0x8] sm:$0xff] %vm2631_vm12, %v2610_v25 }
 0x7ab   :  { %2986 = vst.msk [vmem:[#allocation2 + $0x8] sm:$0xff] %vm2984_vm13, %v2963_v53 }
 0x7ac   :  { %1915 = vrot.lane.b32.xlu2 %v1892_v8, %s4413_s22 }
 0x7ad   :  { %v2261_v24 = vpop.permute.xlu1 %2260 }
 0x7b1   :  { %v1553_v33 = vpop.permute.xlu0 %1552 }
 0x7b2   :  { %1575 = vst.msk [vmem:[#allocation2 + $0x10] sm:$0xff] %vm1572_vm2, %v1553_v33  ;;  %v2994_v35 = vld [vmem:[#allocation2 + $0x8] sm:$0xff] }
 0x7b3   :  { %1928 = vst.msk [vmem:[#allocation2 + $0x10] sm:$0xff] %vm1925_vm3, %v1906_v46  ;;  %3676 = vmatmul.msk.f32.gmra.mxu2 %vm121_vm1, %v2994_v35 }
 0x7b4   :  { %2281 = vst.msk [vmem:[#allocation2 + $0x10] sm:$0xff] %vm2278_vm4, %v2259_v12  ;;  %2974 = vrot.lane.b32.xlu2 %v2951_v32, %s4415_s24 }
 0x7b5   :  { %v1204_v16 = vpop.permute.xlu1 %1203 }
 0x7b6   :  { %1224 = vst.msk [vmem:[#allocation2 + $0x20] sm:$0xff] %vm1219_vm0, %v1204_v16 }
 0x7b9   :  { %v2612_v0 = vpop.permute.xlu0 %2611 }
 0x7ba   :  { %2634 = vst.msk [vmem:[#allocation2 + $0x10] sm:$0xff] %vm2631_vm12, %v2612_v0 }
 0x7bb   :  { %2987 = vst.msk [vmem:[#allocation2 + $0x10] sm:$0xff] %vm2984_vm13, %v2965_v28 }
 0x7bd   :  { %v2263_v34 = vpop.permute.xlu1 %2262 }
 0x7c1   :  { %v1555_v13 = vpop.permute.xlu0 %1554 }
 0x7c2   :  { %1576 = vst.msk [vmem:[#allocation2 + $0x18] sm:$0xff] %vm1572_vm2, %v1555_v13  ;;  %v2995_v36 = vld [vmem:[#allocation2 + $0x10] sm:$0xff] }
 0x7c3   :  { %3677 = vmatmul.msk.f32.gmra.mxu2 %vm121_vm1, %v2995_v36  ;;  %v4388_v36 = vld [vmem:[%s6677_s1 + $0x8] sm:$0xff] }
 0x7c5   :  { %v1206_v26 = vpop.permute.xlu1 %1205 }
 0x7c6   :  { %1225 = vst.msk [vmem:[#allocation2 + $0x28] sm:$0xff] %vm1219_vm0, %v1206_v26  ;;  %v1908_v6 = vpop.permute.xlu2 %1907 }
 0x7c7   :  { %1929 = vst.msk [vmem:[#allocation2 + $0x18] sm:$0xff] %vm1925_vm3, %v1908_v6 }
 0x7c8   :  { %2282 = vst.msk [vmem:[#allocation2 + $0x18] sm:$0xff] %vm2278_vm4, %v2261_v24 }
 0x7c9   :  { %v2614_v22 = vpop.permute.xlu0 %2613 }
 0x7ca   :  { %2635 = vst.msk [vmem:[#allocation2 + $0x18] sm:$0xff] %vm2631_vm12, %v2614_v22 }
 0x7cd   :  { %v2265_v15 = vpop.permute.xlu1 %2264 }
 0x7ce   :  { %v2967_v5 = vpop.permute.xlu2 %2966 }
 0x7cf   :  { %2988 = vst.msk [vmem:[#allocation2 + $0x18] sm:$0xff] %vm2984_vm13, %v2967_v5 }
 0x7d1   :  { %v1557_v17 = vpop.permute.xlu0 %1556 }
 0x7d2   :  { %1577 = vst.msk [vmem:[#allocation2 + $0x20] sm:$0xff] %vm1572_vm2, %v1557_v17 }
 0x7d5   :  { %v1208_v23 = vpop.permute.xlu1 %1207 }
 0x7d6   :  { %1226 = vst.msk [vmem:[#allocation2 + $0x30] sm:$0xff] %vm1219_vm0, %v1208_v23  ;;  %v1910_v41 = vpop.permute.xlu2 %1909  ;;  %v2996_v31 = vld [vmem:[#allocation2 + $0x18] sm:$0xff]  ;;  %v4389_v23 = vld [vmem:[%s6677_s1 + $0x10] sm:$0xff] }
 0x7d7   :  { %1930 = vst.msk [vmem:[#allocation2 + $0x20] sm:$0xff] %vm1925_vm3, %v1910_v41  ;;  %3678 = vmatmul.msk.f32.gmra.mxu2 %vm121_vm1, %v2996_v31 }
 0x7d8   :  { %2283 = vst.msk [vmem:[#allocation2 + $0x20] sm:$0xff] %vm2278_vm4, %v2263_v34  ;;  %v4387_v34 = vld [vmem:[%s6677_s1] sm:$0xff] }
 0x7de   :  { %v2969_v45 = vpop.permute.xlu2 %2968 }
 0x7e6   :  { %v1912_v60 = vpop.permute.xlu2 %1911 }
 0x7e8   :  { %v2616_v43 = vpop.permute.xlu0 %2615 }
 0x7e9   :  { %2636 = vst.msk [vmem:[#allocation2 + $0x20] sm:$0xff] %vm2631_vm12, %v2616_v43 }
 0x7ea   :  { %2989 = vst.msk [vmem:[#allocation2 + $0x20] sm:$0xff] %vm2984_vm13, %v2969_v45 }
 0x7ee   :  { %v2971_v7 = vpop.permute.xlu2 %2970 }
 0x7f0   :  { %v1559_v38 = vpop.permute.xlu0 %1558 }
 0x7f1   :  { %1578 = vst.msk [vmem:[#allocation2 + $0x28] sm:$0xff] %vm1572_vm2, %v1559_v38  ;;  %v2997_v47 = vld [vmem:[#allocation2 + $0x20] sm:$0xff]  ;;  %v4390_v38 = vld [vmem:[%s6677_s1 + $0x18] sm:$0xff] }
 0x7f2   :  { %1931 = vst.msk [vmem:[#allocation2 + $0x28] sm:$0xff] %vm1925_vm3, %v1912_v60  ;;  %3679 = vmatmul.msk.f32.gmra.mxu2 %vm121_vm1, %v2997_v47 }
 0x7f3   :  { %2284 = vst.msk [vmem:[#allocation2 + $0x28] sm:$0xff] %vm2278_vm4, %v2265_v15 }
 0x7f6   :  { %v1914_v61 = vpop.permute.xlu2 %1913 }
 0x7f8   :  { %v2618_v55 = vpop.permute.xlu0 %2617 }
 0x7f9   :  { %2637 = vst.msk [vmem:[#allocation2 + $0x28] sm:$0xff] %vm2631_vm12, %v2618_v55 }
 0x7fa   :  { %2990 = vst.msk [vmem:[#allocation2 + $0x28] sm:$0xff] %vm2984_vm13, %v2971_v7 }
 0x7fe   :  { %v2267_v19 = vpop.permute.xlu1 %2266  ;;  %v2973_v11 = vpop.permute.xlu2 %2972 }
 0x800   :  { %v1561_v49 = vpop.permute.xlu0 %1560 }
 0x801   :  { %1579 = vst.msk [vmem:[#allocation2 + $0x30] sm:$0xff] %vm1572_vm2, %v1561_v49  ;;  %v2998_v20 = vld [vmem:[#allocation2 + $0x28] sm:$0xff] }
 0x802   :  { %1932 = vst.msk [vmem:[#allocation2 + $0x30] sm:$0xff] %vm1925_vm3, %v1914_v61  ;;  %3680 = vmatmul.msk.f32.gmra.mxu2 %vm121_vm1, %v2998_v20  ;;  %v4391_v20 = vld [vmem:[%s6677_s1 + $0x28] sm:$0xff] }
 0x803   :  { %2285 = vst.msk [vmem:[#allocation2 + $0x30] sm:$0xff] %vm2278_vm4, %v2267_v19 }
 0x806   :  { %v1210_v56 = vpop.permute.xlu1 %1209  ;;  %v1916_v48 = vpop.permute.xlu2 %1915 }
 0x807   :  { %1227 = vst.msk [vmem:[#allocation2 + $0x38] sm:$0xff] %vm1219_vm0, %v1210_v56  ;;  %vm3075_vm0 = vcmask 31744  }
 0x808   :  { %v2620_v52 = vpop.permute.xlu0 %2619 }
 0x809   :  { %2638 = vst.msk [vmem:[#allocation2 + $0x30] sm:$0xff] %vm2631_vm12, %v2620_v52 }
 0x80a   :  { %2991 = vst.msk [vmem:[#allocation2 + $0x30] sm:$0xff] %vm2984_vm13, %v2973_v11 }
 0x80e   :  { %v2269_v27 = vpop.permute.xlu1 %2268  ;;  %v2975_v14 = vpop.permute.xlu2 %2974 }
 0x810   :  { %v1563_v29 = vpop.permute.xlu0 %1562 }
 0x811   :  { %1580 = vst.msk [vmem:[#allocation2 + $0x38] sm:$0xff] %vm1572_vm2, %v1563_v29  ;;  %v2999_v10 = vld [vmem:[#allocation2 + $0x30] sm:$0xff] }
 0x812   :  { %1933 = vst.msk [vmem:[#allocation2 + $0x38] sm:$0xff] %vm1925_vm3, %v1916_v48  ;;  %3681 = vmatmul.msk.f32.gmra.mxu2 %vm121_vm1, %v2999_v10  ;;  %v4392_v29 = vld [vmem:[%s6677_s1 + $0x30] sm:$0xff] }
 0x813   :  { %2286 = vst.msk [vmem:[#allocation2 + $0x38] sm:$0xff] %vm2278_vm4, %v2269_v27 }
 0x818   :  { %v2622_v50 = vpop.permute.xlu0 %2621 }
 0x819   :  { %2639 = vst.msk [vmem:[#allocation2 + $0x38] sm:$0xff] %vm2631_vm12, %v2622_v50 }
 0x81a   :  { %2992 = vst.msk [vmem:[#allocation2 + $0x38] sm:$0xff] %vm2984_vm13, %v2975_v14 }
 0x821   :  { %v3000_v42 = vld [vmem:[#allocation2 + $0x38] sm:$0xff] }
 0x822   :  { %3682 = vmatmul.msk.f32.gmra.mxu2 %vm121_vm1, %v3000_v42 }
 0x826   :  { %v3050_v44 = vpop.f32.mrf.mxu2 }
 0x827   :  { %3684 = vmatmul.msk.f32.vlgmr.msrb.gmra.mxu3 %vm3075_vm0, %v3050_v44 }
 0x836   :  { %v3053_v21 = vpop.f32.mrf.mxu2 }
 0x837   :  { %3685 = vmatmul.msk.f32.gmra.mxu3 %vm3075_vm0, %v3053_v21 }
 0x846   :  { %v3056_v12 = vpop.f32.mrf.mxu2 }
 0x847   :  { %3686 = vmatmul.msk.f32.gmra.mxu3 %vm3075_vm0, %v3056_v12 }
 0x85a   :  { %v3059_v4 = vpop.f32.mrf.mxu2 }
 0x85b   :  { %3687 = vmatmul.msk.f32.gmra.mxu3 %vm3075_vm0, %v3059_v4 }
 0x875   :  { %v3062_v39 = vpop.f32.mrf.mxu2 }
 0x876   :  { %3688 = vmatmul.msk.f32.gmra.mxu3 %vm3075_vm0, %v3062_v39 }
 0x885   :  { %v3065_v3 = vpop.f32.mrf.mxu2 }
 0x886   :  { %3689 = vmatmul.msk.f32.gmra.mxu3 %vm3075_vm0, %v3065_v3 }
 0x895   :  { %v3068_v9 = vpop.f32.mrf.mxu2 }
 0x896   :  { %3690 = vmatmul.msk.f32.gmra.mxu3 %vm3075_vm0, %v3068_v9 }
 0x8a5   :  { %v3071_v2 = vpop.f32.mrf.mxu2 }
 0x8a6   :  { %3691 = vmatmul.msk.f32.gmra.mxu3 %vm3075_vm0, %v3071_v2  ;;  %3390 = vmatpush.msrb.mxu0 %v3071_v2 }
 0x8a8   :  { %3391 = vmatpush.msrb.mxu0 %v3068_v9 }
 0x8aa   :  { %v3121_v40 = vpop.f32.mrf.mxu3  ;;  %3392 = vmatpush.msrb.mxu0 %v3065_v3 }
 0x8ab   :  { %3179 = vperm.xlu1 %3919, %v3121_v40  }
 0x8ac   :  { %3393 = vmatpush.msrb.mxu0 %v3062_v39 }
 0x8ae   :  { %3394 = vmatpush.msrb.mxu0 %v3059_v4 }
 0x8b0   :  { %3395 = vmatpush.msrb.mxu0 %v3056_v12 }
 0x8b2   :  { %3396 = vmatpush.msrb.mxu0 %v3053_v21 }
 0x8b4   :  { %3397 = vmatpush.msrb.mxu0 %v3050_v44 }
 0x8ba   :  { %v3124_v57 = vpop.f32.mrf.mxu3 }
 0x8bb   :  { %3184 = vperm.xlu0 %3920, %v3124_v57  }
 0x8ca   :  { %v3127_v51 = vpop.f32.mrf.mxu3 }
 0x8cb   :  { %3189 = vperm.xlu2 %3921, %v3127_v51  }
 0x8de   :  { %v3130_v62 = vpop.f32.mrf.mxu3 }
 0x8df   :  { %3194 = vperm.xlu2 %3921, %v3130_v62  }
 0x8e0   :  { %3145 = vxpose.xlu1.b32.start [1/8] (short) (narrow) %v3121_v40, 8 }
 0x8e8   :  { %3146 = vxpose.xlu1.b32.cont [2/8] (short) (narrow) %v3124_v57, 8 }
 0x8f0   :  { %3147 = vxpose.xlu1.b32.cont [3/8] (short) (narrow) %v3127_v51, 8 }
 0x8f8   :  { %3148 = vxpose.xlu1.b32.cont [4/8] (short) (narrow) %v3130_v62, 8 }
 0x8f9   :  { %v3133_v30 = vpop.f32.mrf.mxu3 }
 0x900   :  { %3149 = vxpose.xlu1.b32.cont [5/8] (short) (narrow) %v3133_v30, 8 }
 0x909   :  { %v3136_v54 = vpop.f32.mrf.mxu3 }
 0x90a   :  { %3204 = vperm.xlu2 %3921, %v3136_v54   ;;  %3150 = vxpose.xlu1.b32.cont [6/8] (short) (narrow) %v3136_v54, 8 }
 0x919   :  { %v3139_v37 = vpop.f32.mrf.mxu3 }
 0x91a   :  { %3209 = vperm.xlu2 %3921, %v3139_v37   ;;  %3151 = vxpose.xlu1.b32.cont [7/8] (short) (narrow) %v3139_v37, 8 }
 0x91d   :  { %v3180_v53 = vpop.permute.xlu1 %3179 }
 0x925   :  { %v3190_v59 = vpop.permute.xlu2 %3189 }
 0x929   :  { %v3142_v18 = vpop.f32.mrf.mxu3 }
 0x92a   :  { %3152 = vxpose.xlu1.b32.end [8/8] (short) (narrow) %v3142_v18, 8 }
 0x92d   :  { %v3185_v24 = vpop.permute.xlu0 %3184 }
 0x939   :  { %v3195_v6 = vpop.permute.xlu2 %3194 }
 0x964   :  { %v3205_v1 = vpop.permute.xlu2 %3204 }
 0x974   :  { %v3210_v55 = vpop.permute.xlu2 %3209 }
 0x996   :  { %v3161_v25 = vpop.trf.xlu1 }
 0x997   :  { %v6530_v8 = vperm.slane %v3161_v25, 0  ;;  %v4393_v25 = vld [vmem:[%s6677_s1 + $0x20] sm:$0xff] }
 0x999   :  { %v3218_v58 = vadd.f32 %v6530_v8, %v3180_v53  ;;  %v3219_v33 = vadd.f32 %v6530_v8, %v3185_v24  ;;  %v3220_v46 = vadd.f32 %v6530_v8, %v3190_v59  ;;  %v3221_v17 = vadd.f32 %v6530_v8, %v3195_v6 }
 0x99a   :  { %v3223_v43 = vadd.f32 %v6530_v8, %v3205_v1  ;;  %v3224_v49 = vadd.f32 %v6530_v8, %v3210_v55 }
 0x99b   :  { %vm3226_vm2 = vcmp.ge.f32.partialorder %v3218_v58, 0.0  ;;  %v3234_v35 = vmul.f32 0.2, %v3218_v58  ;;  %vm3227_vm3 = vcmp.ge.f32.partialorder %v3219_v33, 0.0  ;;  %v3235_v32 = vmul.f32 0.2, %v3219_v33 }
 0x99c   :  { %v3236_v28 = vmul.f32 0.2, %v3220_v46  ;;  %vm3228_vm4 = vcmp.ge.f32.partialorder %v3220_v46, 0.0  ;;  %v3237_v31 = vmul.f32 0.2, %v3221_v17  ;;  %vm3229_vm11 = vcmp.ge.f32.partialorder %v3221_v17, 0.0 }
 0x99d   :  { %v3242_v16 = vsel %vm3226_vm2, %v3218_v58, %v3234_v35  ;;  %v3243_v0 = vsel %vm3227_vm3, %v3219_v33, %v3235_v32  ;;  %v3239_v47 = vmul.f32 0.2, %v3223_v43  ;;  %vm3231_vm12 = vcmp.ge.f32.partialorder %v3223_v43, 0.0 }
 0x99e   :  { %v3250_v13 = vadd.f32 %v4387_v34, %v3242_v16  ;;  %v3251_v26 = vadd.f32 %v4388_v36, %v3243_v0  ;;  %v3244_v5 = vsel %vm3228_vm4, %v3220_v46, %v3236_v28  ;;  %v3245_v60 = vsel %vm3229_vm11, %v3221_v17, %v3237_v31 }
 0x99f   :  { %v3252_v41 = vadd.f32 %v4389_v23, %v3244_v5  ;;  %v3253_v7 = vadd.f32 %v4390_v38, %v3245_v60  ;;  %v3247_v19 = vsel %vm3231_vm12, %v3223_v43, %v3239_v47  ;;  %v3240_v56 = vmul.f32 0.2, %v3224_v49 }
 0x9a0   :  { %v3258_v22 = vsel %vm121_vm1, %v3250_v13, -inf  ;;  %v3261_v15 = vsel %vm121_vm1, %v3251_v26, -inf  ;;  %v3255_v11 = vadd.f32 %v4391_v20, %v3247_v19  ;;  %vm3232_vm13 = vcmp.ge.f32.partialorder %v3224_v49, 0.0 }
 0x9a1   :  { %3259 = vmax.xlane.f32.xlu0 %v3258_v22  ;;  %3262 = vmax.xlane.f32.xlu2 %v3261_v15  ;;  %v3264_v45 = vsel %vm121_vm1, %v3252_v41, -inf  ;;  %v3267_v61 = vsel %vm121_vm1, %v3253_v7, -inf  ;;  %v3248_v48 = vsel %vm3232_vm13, %v3224_v49, %v3240_v56 }
 0x9a2   :  { %v3273_v52 = vsel %vm121_vm1, %v3255_v11, -inf  ;;  %v6561_v10 = vadd.f32 %v4392_v29, %v3248_v48 }
 0x9a4   :  { %v3276_v27 = vsel %vm121_vm1, %v6561_v10, -inf }
 0x9a9   :  { %3265 = vmax.xlane.f32.xlu2 %v3264_v45 }
 0x9b1   :  { %3268 = vmax.xlane.f32.xlu2 %v3267_v61 }
 0x9b5   :  { %3199 = vperm.xlu0 %3920, %v3133_v30  }
 0x9b9   :  { %3274 = vmax.xlane.f32.xlu2 %v3273_v52 }
 0x9bd   :  { %3214 = vperm.xlu0 %3920, %v3142_v18  }
 0x9c1   :  { %3277 = vmax.xlane.f32.xlu2 %v3276_v27 }
 0xa14   :  { %v3263_v50 = vpop.xlane.xlu2 %3262  ;;  %v3260_v14 = vpop.xlane.xlu0 %3259 }
 0xa15   :  { %v3282_v42 = vsub.f32 %v3250_v13, %v3260_v14  ;;  %v3283_v21 = vsub.f32 %v3251_v26, %v3263_v50  ;;  %v4394_v13 = vld [vmem:[%s6677_s1 + $0x38] sm:$0xff] }
 0xa17   :  { %v3290_v44 = vmul.f32 1.442695, %v3282_v42  ;;  %v3292_v12 = vmul.f32 1.442695, %v3283_v21 }
 0xa19   :  { %4315 = vpow2.f32 %v3290_v44 }
 0xa1a   :  { %4317 = vpow2.f32 %v3292_v12 }
 0xa1c   :  { %v3266_v4 = vpop.xlane.xlu2 %3265 }
 0xa1d   :  { %v3284_v3 = vsub.f32 %v3252_v41, %v3266_v4  ;;  %v6594_v4 = vld [vmem:[%s6680_s7] ss:$0 sm:$0xff] }
 0xa1f   :  { %v4316_v39 = vpop.eup %4315  ;;  %v3294_v9 = vmul.f32 1.442695, %v3284_v3 }
 0xa20   :  { %v3306_v63 = vsel %vm121_vm1, %v4316_v39, 0.0  ;;  %v4318_v40 = vpop.eup %4317 }
 0xa21   :  { %3307 = vadd.xlane.f32.xlu2 %v3306_v63  ;;  %4319 = vpow2.f32 %v3294_v9  ;;  %v3309_v30 = vsel %vm121_vm1, %v4318_v40, 0.0 }
 0xa24   :  { %v3269_v2 = vpop.xlane.xlu2 %3268 }
 0xa25   :  { %v3285_v57 = vsub.f32 %v3253_v7, %v3269_v2 }
 0xa27   :  { %v3200_v51 = vpop.permute.xlu0 %3199  ;;  %v3296_v54 = vmul.f32 1.442695, %v3285_v57  ;;  %v4320_v24 = vpop.eup %4319 }
 0xa28   :  { %v3222_v62 = vadd.f32 %v6530_v8, %v3200_v51  ;;  %v3312_v32 = vsel %vm121_vm1, %v4320_v24, 0.0 }
 0xa29   :  { %3310 = vadd.xlane.f32.xlu2 %v3309_v30  ;;  %4321 = vpow2.f32 %v3296_v54 }
 0xa2a   :  { %vm3230_vm14 = vcmp.ge.f32.partialorder %v3222_v62, 0.0  ;;  %v3238_v37 = vmul.f32 0.2, %v3222_v62 }
 0xa2c   :  { %v3275_v18 = vpop.xlane.xlu2 %3274  ;;  %v3246_v53 = vsel %vm3230_vm14, %v3222_v62, %v3238_v37 }
 0xa2d   :  { %v3254_v59 = vadd.f32 %v4393_v25, %v3246_v53  ;;  %v3287_v58 = vsub.f32 %v3255_v11, %v3275_v18 }
 0xa2f   :  { %v3215_v33 = vpop.permute.xlu0 %3214  ;;  %v3270_v46 = vsel %vm121_vm1, %v3254_v59, -inf  ;;  %v3300_v16 = vmul.f32 1.442695, %v3287_v58  ;;  %v4322_v28 = vpop.eup %4321 }
 0xa30   :  { %v3225_v35 = vadd.f32 %v6530_v8, %v3215_v33  ;;  %3271 = vmax.xlane.f32.xlu0 %v3270_v46  ;;  %v3315_v26 = vsel %vm121_vm1, %v4322_v28, 0.0 }
 0xa31   :  { %3313 = vadd.xlane.f32.xlu2 %v3312_v32  ;;  %4323 = vpow2.f32 %v3300_v16 }
 0xa32   :  { %vm3233_vm7 = vcmp.ge.f32.partialorder %v3225_v35, 0.0  ;;  %v3241_v0 = vmul.f32 0.2, %v3225_v35 }
 0xa34   :  { %v3249_v34 = vsel %vm3233_vm7, %v3225_v35, %v3241_v0  ;;  %v3278_v15 = vpop.xlane.xlu2 %3277 }
 0xa35   :  { %v3257_v36 = vadd.f32 %v4394_v13, %v3249_v34  ;;  %v3288_v43 = vsub.f32 %v6561_v10, %v3278_v15 }
 0xa37   :  { %v3279_v6 = vsel %vm121_vm1, %v3257_v36, -inf  ;;  %v6579_v8 = vpop.eup %4323  ;;  %v3302_v19 = vmul.f32 1.442695, %v3288_v43 }
 0xa38   :  { %3316 = vadd.xlane.f32.xlu0 %v3315_v26  ;;  %3280 = vmax.xlane.f32.xlu1 %v3279_v6  ;;  %v3321_v22 = vsel %vm121_vm1, %v6579_v8, 0.0 }
 0xa40   :  { %3322 = vadd.xlane.f32.xlu0 %v3321_v22 }
 0xa94   :  { %v3308_v5 = vpop.xlane.xlu2 %3307 }
 0xa95   :  { %v3330_v17 = vmax.f32 %v3308_v5, 1e-30 }
 0xa97   :  { %4325 = vrcp.f32 %v3330_v17 }
 0xa9c   :  { %v3311_v23 = vpop.xlane.xlu2 %3310 }
 0xa9d   :  { %v4326_v41 = vpop.eup %4325  ;;  %v3331_v31 = vmax.f32 %v3311_v23, 1e-30 }
 0xa9e   :  { %v3346_v1 = vmul.f32 %v4326_v41, %v4316_v39 }
 0xa9f   :  { %4327 = vrcp.f32 %v3331_v31 }
 0xaa0   :  { %3692 = vmatmul.msk.f32.vlgmr.msrb.gmra.mxu0 %vm121_vm1, %v3346_v1 }
 0xaa3   :  { %v3272_v45 = vpop.xlane.xlu0 %3271 }
 0xaa4   :  { %v3286_v60 = vsub.f32 %v3254_v59, %v3272_v45  ;;  %v3314_v38 = vpop.xlane.xlu2 %3313 }
 0xaa5   :  { %v4328_v7 = vpop.eup %4327  ;;  %v3332_v55 = vmax.f32 %v3314_v38, 1e-30 }
 0xaa6   :  { %v3298_v47 = vmul.f32 1.442695, %v3286_v60  ;;  %v3347_v61 = vmul.f32 %v4328_v7, %v4318_v40 }
 0xaa8   :  { %4329 = vpow2.f32 %v3298_v47  ;;  %3693 = vmatmul.msk.f32.gmra.mxu0 %vm121_vm1, %v3347_v61 }
 0xaa9   :  { %4331 = vrcp.f32 %v3332_v55 }
 0xaaa   :  { %4333 = vpow2.f32 %v3302_v19 }
 0xaab   :  { %v3281_v49 = vpop.xlane.xlu1 %3280  ;;  %v3317_v20 = vpop.xlane.xlu0 %3316 }
 0xaac   :  { %v3289_v11 = vsub.f32 %v3257_v36, %v3281_v49  ;;  %v3333_v56 = vmax.f32 %v3317_v20, 1e-30 }
 0xaae   :  { %v4330_v52 = vpop.eup %4329  ;;  %v3304_v48 = vmul.f32 1.442695, %v3289_v11  ;;  %4335 = vrcp.f32 %v3333_v56 }
 0xaaf   :  { %v4332_v29 = vpop.eup %4331  ;;  %v3318_v10 = vsel %vm121_vm1, %v4330_v52, 0.0 }
 0xab0   :  { %4337 = vpow2.f32 %v3304_v48  ;;  %v3348_v27 = vmul.f32 %v4332_v29, %v4320_v24  ;;  %3319 = vadd.xlane.f32.xlu2 %v3318_v10  ;;  %v4334_v50 = vpop.eup %4333 }
 0xab1   :  { %v3324_v12 = vsel %vm121_vm1, %v4334_v50, 0.0 }
 0xab2   :  { %3694 = vmatmul.msk.f32.gmra.mxu0 %vm121_vm1, %v3348_v27 }
 0xab3   :  { %v3323_v40 = vpop.xlane.xlu0 %3322 }
 0xab4   :  { %v4336_v14 = vpop.eup %4335  ;;  %v3335_v62 = vmax.f32 %v3323_v40, 1e-30 }
 0xab5   :  { %v3349_v44 = vmul.f32 %v4336_v14, %v4322_v28 }
 0xab6   :  { %v4338_v42 = vpop.eup %4337 }
 0xab7   :  { %v3327_v21 = vsel %vm121_vm1, %v4338_v42, 0.0 }
 0xab8   :  { %3328 = vadd.xlane.f32.xlu0 %v3327_v21  ;;  %3325 = vadd.xlane.f32.xlu2 %v3324_v12 }
 0xaba   :  { %3695 = vmatmul.msk.f32.gmra.mxu0 %vm121_vm1, %v3349_v44 }
 0xb1d   :  { %v3399_v39 = vpop.f32.mrf.mxu0 }
 0xb1e   :  { %v3400_v3 = vadd.f32 %v6594_v4, %v3399_v39 }
 0xb20   :  { %v3423_v63 = vsel %vm3075_vm0, %v3400_v3, -inf }
 0xb21   :  { %3424 = vmax.xlane.f32.xlu2 %v3423_v63 }
 0xb23   :  { %v3320_v9 = vpop.xlane.xlu2 %3319 }
 0xb24   :  { %v3334_v2 = vmax.f32 %v3320_v9, 1e-30 }
 0xb25   :  { %v3402_v57 = vpop.f32.mrf.mxu0 }
 0xb26   :  { %4339 = vrcp.f32 %v3334_v2  ;;  %v3403_v51 = vadd.f32 %v6594_v4, %v3402_v57 }
 0xb27   :  { %4341 = vrcp.f32 %v3335_v62 }
 0xb28   :  { %v3426_v30 = vsel %vm3075_vm0, %v3403_v51, -inf }
 0xb29   :  { %3427 = vmax.xlane.f32.xlu0 %v3426_v30 }
 0xb2b   :  { %v3326_v37 = vpop.xlane.xlu2 %3325  ;;  %v3329_v33 = vpop.xlane.xlu0 %3328 }
 0xb2c   :  { %v4340_v54 = vpop.eup %4339  ;;  %v3336_v25 = vmax.f32 %v3326_v37, 1e-30  ;;  %v3337_v32 = vmax.f32 %v3329_v33, 1e-30 }
 0xb2d   :  { %v3350_v18 = vmul.f32 %v4340_v54, %v4330_v52  ;;  %v4342_v24 = vpop.eup %4341 }
 0xb2e   :  { %4343 = vrcp.f32 %v3336_v25  ;;  %v3351_v46 = vmul.f32 %v4342_v24, %v6579_v8 }
 0xb2f   :  { %v3405_v53 = vpop.f32.mrf.mxu0  ;;  %3696 = vmatmul.msk.f32.gmra.mxu0 %vm121_vm1, %v3350_v18  ;;  %4345 = vrcp.f32 %v3337_v32 }
 0xb30   :  { %v3406_v59 = vadd.f32 %v6594_v4, %v3405_v53 }
 0xb32   :  { %v3429_v58 = vsel %vm3075_vm0, %v3406_v59, -inf }
 0xb33   :  { %3430 = vmax.xlane.f32.xlu2 %v3429_v58 }
 0xb34   :  { %v4344_v0 = vpop.eup %4343 }
 0xb35   :  { %v3352_v34 = vmul.f32 %v4344_v0, %v4334_v50  ;;  %v4346_v13 = vpop.eup %4345 }
 0xb36   :  { %v3353_v36 = vmul.f32 %v4346_v13, %v4338_v42 }
 0xb37   :  { %v3408_v35 = vpop.f32.mrf.mxu0  ;;  %3697 = vmatmul.msk.f32.gmra.mxu0 %vm121_vm1, %v3351_v46 }
 0xb38   :  { %v3409_v16 = vadd.f32 %v6594_v4, %v3408_v35 }
 0xb3a   :  { %v3432_v28 = vsel %vm3075_vm0, %v3409_v16, -inf }
 0xb3b   :  { %3433 = vmax.xlane.f32.xlu0 %v3432_v28 }
 0xb3f   :  { %3698 = vmatmul.msk.f32.gmra.mxu0 %vm121_vm1, %v3352_v34 }
 0xb47   :  { %3699 = vmatmul.msk.f32.gmra.mxu0 %vm121_vm1, %v3353_v36 }
 0xb94   :  { %v3425_v22 = vpop.xlane.xlu2 %3424 }
 0xb95   :  { %v6612_v17 = vsub.f32 %v3400_v3, %v3425_v22 }
 0xb97   :  { %v3455_v41 = vmul.f32 1.442695, %v6612_v17 }
 0xb99   :  { %4347 = vpow2.f32 %v3455_v41 }
 0xb9c   :  { %v3428_v31 = vpop.xlane.xlu0 %3427 }
 0xb9d   :  { %v6616_v60 = vsub.f32 %v3403_v51, %v3428_v31 }
 0xb9f   :  { %v3457_v47 = vmul.f32 1.442695, %v6616_v60  ;;  %v4348_v19 = vpop.eup %4347 }
 0xba0   :  { %v3471_v56 = vsel %vm3075_vm0, %v4348_v19, 0.0 }
 0xba1   :  { %4349 = vpow2.f32 %v3457_v47 }
 0xba6   :  { %v3431_v1 = vpop.xlane.xlu2 %3430 }
 0xba7   :  { %v6619_v38 = vsub.f32 %v3406_v59, %v3431_v1  ;;  %v4350_v29 = vpop.eup %4349 }
 0xba8   :  { %v3474_v50 = vsel %vm3075_vm0, %v4350_v29, 0.0 }
 0xba9   :  { %v3459_v55 = vmul.f32 1.442695, %v6619_v38 }
 0xbab   :  { %4351 = vpow2.f32 %v3459_v55 }
 0xbac   :  { %v3411_v26 = vpop.f32.mrf.mxu0 }
 0xbad   :  { %v3412_v6 = vadd.f32 %v6594_v4, %v3411_v26 }
 0xbae   :  { %v3434_v61 = vpop.xlane.xlu0 %3433 }
 0xbaf   :  { %v3435_v8 = vsel %vm3075_vm0, %v3412_v6, -inf  ;;  %v6625_v11 = vsub.f32 %v3409_v16, %v3434_v61 }
 0xbb0   :  { %3436 = vmax.xlane.f32.xlu2 %v3435_v8 }
 0xbb1   :  { %v3461_v48 = vmul.f32 1.442695, %v6625_v11  ;;  %v4352_v10 = vpop.eup %4351 }
 0xbb2   :  { %v3477_v27 = vsel %vm3075_vm0, %v4352_v10, 0.0 }
 0xbb3   :  { %4353 = vpow2.f32 %v3461_v48 }
 0xbb4   :  { %v3414_v15 = vpop.f32.mrf.mxu0 }
 0xbb5   :  { %v3415_v5 = vadd.f32 %v6594_v4, %v3414_v15 }
 0xbb7   :  { %v3438_v23 = vsel %vm3075_vm0, %v3415_v5, -inf }
 0xbb8   :  { %3439 = vmax.xlane.f32.xlu0 %v3438_v23 }
 0xbb9   :  { %v4354_v14 = vpop.eup %4353 }
 0xbba   :  { %v3480_v42 = vsel %vm3075_vm0, %v4354_v14, 0.0 }
 0xbbc   :  { %v3417_v45 = vpop.f32.mrf.mxu0 }
 0xbbd   :  { %v3418_v43 = vadd.f32 %v6594_v4, %v3417_v45 }
 0xbbf   :  { %v3441_v7 = vsel %vm3075_vm0, %v3418_v43, -inf }
 0xbc0   :  { %3442 = vmax.xlane.f32.xlu2 %v3441_v7 }
 0xbc4   :  { %v3420_v49 = vpop.f32.mrf.mxu0 }
 0xbc5   :  { %v3421_v20 = vadd.f32 %v6594_v4, %v3420_v49 }
 0xbc7   :  { %v3444_v52 = vsel %vm3075_vm0, %v3421_v20, -inf }
 0xbc8   :  { %3472 = vadd.xlane.f32.xlu2 %v3471_v56  ;;  %3445 = vmax.xlane.f32.xlu0 %v3444_v52 }
 0xbd0   :  { %3478 = vadd.xlane.f32.xlu2 %v3477_v27  ;;  %3475 = vadd.xlane.f32.xlu0 %v3474_v50 }
 0xbd8   :  { %3481 = vadd.xlane.f32.xlu0 %v3480_v42 }
 0xc23   :  { %v3437_v44 = vpop.xlane.xlu2 %3436 }
 0xc24   :  { %v3451_v21 = vsub.f32 %v3412_v6, %v3437_v44 }
 0xc26   :  { %v3463_v12 = vmul.f32 1.442695, %v3451_v21 }
 0xc28   :  { %4355 = vpow2.f32 %v3463_v12 }
 0xc2b   :  { %v3440_v4 = vpop.xlane.xlu0 %3439 }
 0xc2c   :  { %v3452_v39 = vsub.f32 %v3415_v5, %v3440_v4 }
 0xc2e   :  { %v4356_v3 = vpop.eup %4355  ;;  %v3465_v63 = vmul.f32 1.442695, %v3452_v39 }
 0xc2f   :  { %v3483_v9 = vsel %vm3075_vm0, %v4356_v3, 0.0 }
 0xc30   :  { %4357 = vpow2.f32 %v3465_v63  ;;  %3484 = vadd.xlane.f32.xlu2 %v3483_v9 }
 0xc33   :  { %v3443_v2 = vpop.xlane.xlu2 %3442 }
 0xc34   :  { %v3453_v40 = vsub.f32 %v3418_v43, %v3443_v2 }
 0xc36   :  { %v4358_v57 = vpop.eup %4357  ;;  %v3467_v51 = vmul.f32 1.442695, %v3453_v40 }
 0xc37   :  { %v3486_v62 = vsel %vm3075_vm0, %v4358_v57, 0.0 }
 0xc38   :  { %4359 = vpow2.f32 %v3467_v51  ;;  %3487 = vadd.xlane.f32.xlu0 %v3486_v62 }
 0xc3b   :  { %v3473_v30 = vpop.xlane.xlu2 %3472  ;;  %v3446_v54 = vpop.xlane.xlu0 %3445 }
 0xc3c   :  { %4361 = vlog2.f32 %v3473_v30  ;;  %v3454_v37 = vsub.f32 %v3421_v20, %v3446_v54 }
 0xc3e   :  { %v4360_v18 = vpop.eup %4359  ;;  %v3469_v53 = vmul.f32 1.442695, %v3454_v37 }
 0xc3f   :  { %v3489_v25 = vsel %vm3075_vm0, %v4360_v18, 0.0 }
 0xc40   :  { %4363 = vpow2.f32 %v3469_v53  ;;  %3490 = vadd.xlane.f32.xlu2 %v3489_v25 }
 0xc42   :  { %v4362_v59 = vpop.eup %4361 }
 0xc43   :  { %v3496_v24 = vmul.f32 0.6931472, %v4362_v59  ;;  %v3479_v58 = vpop.xlane.xlu2 %3478  ;;  %v3476_v33 = vpop.xlane.xlu0 %3475 }
 0xc44   :  { %4365 = vlog2.f32 %v3479_v58 }
 0xc45   :  { %v3511_v46 = vsub.f32 %v6612_v17, %v3496_v24  ;;  %4367 = vlog2.f32 %v3476_v33 }
 0xc46   :  { %v4364_v35 = vpop.eup %4363 }
 0xc47   :  { %3519 = vst.msk [vmem:[%s6681_s8] sm:$0xff] %vm3075_vm0, %v3511_v46  ;;  %v3492_v32 = vsel %vm3075_vm0, %v4364_v35, 0.0 }
 0xc48   :  { %3493 = vadd.xlane.f32.xlu0 %v3492_v32 }
 0xc4a   :  { %v4366_v16 = vpop.eup %4365 }
 0xc4b   :  { %v4368_v0 = vpop.eup %4367  ;;  %v3500_v28 = vmul.f32 0.6931472, %v4366_v16  ;;  %v3482_v34 = vpop.xlane.xlu0 %3481 }
 0xc4c   :  { %v3498_v13 = vmul.f32 0.6931472, %v4368_v0  ;;  %4369 = vlog2.f32 %v3482_v34 }
 0xc4d   :  { %v3513_v36 = vsub.f32 %v6619_v38, %v3500_v28 }
 0xc4e   :  { %v3512_v26 = vsub.f32 %v6616_v60, %v3498_v13 }
 0xc4f   :  { %3521 = vst.msk [vmem:[%s6681_s8 + $0x10] sm:$0xff] %vm3075_vm0, %v3513_v36 }
 0xc50   :  { %3520 = vst.msk [vmem:[%s6681_s8 + $0x8] sm:$0xff] %vm3075_vm0, %v3512_v26 }
 0xc52   :  { %v4370_v6 = vpop.eup %4369 }
 0xc53   :  { %v3502_v8 = vmul.f32 0.6931472, %v4370_v6 }
 0xc55   :  { %v3514_v22 = vsub.f32 %v6625_v11, %v3502_v8 }
 0xc57   :  { %3522 = vst.msk [vmem:[%s6681_s8 + $0x18] sm:$0xff] %vm3075_vm0, %v3514_v22 }
 0xca3   :  { %v3485_v15 = vpop.xlane.xlu2 %3484 }
 0xca4   :  { %4371 = vlog2.f32 %v3485_v15 }
 0xcaa   :  { %v4372_v5 = vpop.eup %4371 }
 0xcab   :  { %v3504_v17 = vmul.f32 0.6931472, %v4372_v5  ;;  %v3488_v23 = vpop.xlane.xlu0 %3487 }
 0xcac   :  { %4373 = vlog2.f32 %v3488_v23 }
 0xcad   :  { %v3515_v41 = vsub.f32 %v3451_v21, %v3504_v17 }
 0xcaf   :  { %3523 = vst.msk [vmem:[%s6681_s8 + $0x20] sm:$0xff] %vm3075_vm0, %v3515_v41 }
 0xcb2   :  { %v4374_v31 = vpop.eup %4373 }
 0xcb3   :  { %v3506_v1 = vmul.f32 0.6931472, %v4374_v31  ;;  %v3491_v45 = vpop.xlane.xlu2 %3490 }
 0xcb4   :  { %4375 = vlog2.f32 %v3491_v45 }
 0xcb5   :  { %v3516_v60 = vsub.f32 %v3452_v39, %v3506_v1 }
 0xcb7   :  { %3524 = vst.msk [vmem:[%s6681_s8 + $0x28] sm:$0xff] %vm3075_vm0, %v3516_v60 }
 0xcba   :  { %v4376_v43 = vpop.eup %4375 }
 0xcbb   :  { %v3508_v38 = vmul.f32 0.6931472, %v4376_v43  ;;  %v3494_v7 = vpop.xlane.xlu0 %3493 }
 0xcbc   :  { %4377 = vlog2.f32 %v3494_v7 }
 0xcbd   :  { %v3517_v47 = vsub.f32 %v3453_v40, %v3508_v38 }
 0xcbf   :  { %3525 = vst.msk [vmem:[%s6681_s8 + $0x30] sm:$0xff] %vm3075_vm0, %v3517_v47 }
 0xcc2   :  { %v4378_v55 = vpop.eup %4377 }
 0xcc3   :  { %v3510_v61 = vmul.f32 0.6931472, %v4378_v55 }
 0xcc5   :  { %v3518_v19 = vsub.f32 %v3454_v37, %v3510_v61 }
 0xcc7   :  { %3526 = vst.msk [vmem:[%s6681_s8 + $0x38] sm:$0xff] %vm3075_vm0, %v3518_v19 }

</bundles_post_ra>
